<compile_context>
chip_gen: v6e
topology: v6e:2x2x1
jax: 0.10.0
libtpu: 0.0.40
codegen_flags: <defaults>
</compile_context>

<pallas_src>
import functools

import jax
import jax.numpy as jnp
from jax.experimental import pallas as pl
from jax.experimental.pallas import tpu as pltpu


# ---------------------------------------------------------------------------
# helpers
# ---------------------------------------------------------------------------
def _round_up(n, m):
    return ((n + m - 1) // m) * m


def _pad_gate_cols(w, H, Hp):
    """(in, 4*H) -> (in, 4*Hp): zero-pad each [i, f, g, o] gate block to Hp."""
    inn = w.shape[0]
    w4 = w.reshape(inn, 4, H)
    w4 = jnp.pad(w4, ((0, 0), (0, 0), (0, Hp - H)))
    return w4.reshape(inn, 4 * Hp)


def _pick_t_block(T, Bp, Ep, Hp, emb_itemsize,
                  budget_bytes=8 * 1024 * 1024, max_block=128):
    """Time-chunk size from a VMEM byte budget (double-buffered embedding chunk
    + f32 gate scratch) instead of requiring a divisor of T."""
    per_t = 2 * Bp * Ep * emb_itemsize + Bp * 4 * Hp * 4
    return max(1, min(T, max_block, budget_bytes // max(per_t, 1)))


# ---------------------------------------------------------------------------
# Pallas kernel: per-chunk input projection + forward LSTM scan over the chunk
# (+ one backward cell step & FC head at the final chunk).  h/c live in VMEM
# scratch and persist across grid steps ("arbitrary" time axis).
# ---------------------------------------------------------------------------
def lstm_model_kernel(emb_ref,       # (TB*Bp, Ep)   embedded chunk (compute dtype)
                      wih_f_ref,     # (Ep, 4*Hp)    fwd input weights
                      b_f_ref,       # (1, 4*Hp)     fwd bias (b_ih + b_hh), f32
                      whh_f_ref,     # (Hp, 4*Hp)    fwd recurrent weights
                      wih_b_ref,     # (Ep, 4*Hp)    bwd input weights
                      b_b_ref,       # (1, 4*Hp)     bwd bias, f32
                      fc1wf_ref,     # (Hp, Fp)      fc1 rows for h_fwd
                      fc1wb_ref,     # (Hp, Fp)      fc1 rows for h_bwd
                      fc1b_ref,      # (1, Fp)       f32
                      fc2w_ref,      # (Fp, Op)
                      fc2b_ref,      # (1, Op)       f32
                      out_ref,       # (Bp, Op)      f32
                      h_ref, c_ref,  # VMEM scratch: (Bp, Hp) f32
                      gx_ref,        # VMEM scratch: (TB*Bp, 4*Hp) f32
                      *, seq_len, t_block, last_local_t, unroll):
    chunk = pl.program_id(0)
    Bp, Hp = h_ref.shape
    cdtype = wih_f_ref.dtype

    @pl.when(chunk == 0)
    def _():
        h_ref[...] = jnp.zeros_like(h_ref)
        c_ref[...] = jnp.zeros_like(c_ref)

    # Hoisted per-chunk input projection: ONE batched MXU matmul for the whole
    # chunk (M = TB*Bp) instead of TB tiny M=Bp matmuls, and no f32 gate tensor
    # ever round-trips through HBM.
    gx_ref[...] = (jnp.dot(emb_ref[...], wih_f_ref[...],
                           preferred_element_type=jnp.float32)
                   + b_f_ref[...])

    def gate_math(gates, c):
        # vreg-aligned gate slices (Hp is a multiple of 128); all f32 math.
        i = jax.nn.sigmoid(gates[:, 0 * Hp:1 * Hp])
        f = jax.nn.sigmoid(gates[:, 1 * Hp:2 * Hp])
        g = jnp.tanh(gates[:, 2 * Hp:3 * Hp])
        o = jax.nn.sigmoid(gates[:, 3 * Hp:4 * Hp])
        c_new = f * c + i * g
        h_new = o * jnp.tanh(c_new)
        return h_new, c_new

    n_valid = seq_len - chunk * t_block       # number of real timesteps here

    def step(t, carry):
        h, c = carry
        row = pl.multiple_of(t * Bp, Bp)
        # TODO(synk): at real sizes, hold whh_f in MXU weight staging across the
        # unrolled loop (pltpu.matmul_push_rhs / matmul_acc_lhs / matmul_pop) to
        # avoid re-pushing the identical RHS every timestep.
        gates = gx_ref[pl.ds(row, Bp), :] + jnp.dot(
            h.astype(cdtype), whh_f_ref[...], preferred_element_type=jnp.float32)
        h_new, c_new = gate_math(gates, c)
        keep = t < n_valid                     # masked tail: padded timesteps
        h = jnp.where(keep, h_new, h)          # must never mutate h/c
        c = jnp.where(keep, c_new, c)
        return h, c

    h, c = jax.lax.fori_loop(0, t_block, step, (h_ref[...], c_ref[...]),
                             unroll=unroll)
    h_ref[...] = h
    c_ref[...] = c

    @pl.when(chunk == pl.num_programs(0) - 1)
    def _():
        # Backward-direction hidden state at t = T-1: one reverse cell step from
        # a zero state (the recurrent term is exactly zero, so only the input
        # projection of x[:, T-1, :] is needed).
        xb = emb_ref[pl.ds(last_local_t * Bp, Bp), :]
        gxb = (jnp.dot(xb, wih_b_ref[...], preferred_element_type=jnp.float32)
               + b_b_ref[...])
        h_bwd, _ = gate_math(gxb, jnp.zeros((Bp, Hp), jnp.float32))
        # fc1 on concat(h_fwd, h_bwd) without a lane-axis concatenate.
        z1 = (jnp.dot(h.astype(cdtype), fc1wf_ref[...],
                      preferred_element_type=jnp.float32)
              + jnp.dot(h_bwd.astype(cdtype), fc1wb_ref[...],
                        preferred_element_type=jnp.float32)
              + fc1b_ref[...])
        z1 = jnp.maximum(z1, 0.0)
        # Dropout(0.5) is training-only; identity at inference.
        z2 = (jnp.dot(z1.astype(cdtype), fc2w_ref[...],
                      preferred_element_type=jnp.float32)
              + fc2b_ref[...])
        out_ref[...] = jax.nn.sigmoid(z2)


# ---------------------------------------------------------------------------
# Wrapper (glue): embedding gather, padding, weight prep, pallas_call.
# ---------------------------------------------------------------------------
def lstm_model_forward(tokens, params, compute_dtype=jnp.bfloat16):
    """tokens: (B, T) int32; returns (B, output_dim) float32."""
    B, T = tokens.shape
    E = params["embedding"].shape[1]
    H = params["whh_f"].shape[0]
    F = params["fc1_b"].shape[1]
    O = params["fc2_w"].shape[1]

    Hp = _round_up(H, 128)   # lane-aligned hidden size
    Ep = _round_up(E, 128)   # lane-aligned embedding size
    Bp = _round_up(B, 8)     # sublane-aligned batch
    Fp = _round_up(F, 128)   # fc hidden width
    Op = _round_up(O, 128)   # lane-dense output stores

    emb_itemsize = jnp.dtype(compute_dtype).itemsize
    TB = _pick_t_block(T, Bp, Ep, Hp, emb_itemsize)
    n_chunks = -(-T // TB)
    Tpad = n_chunks * TB

    # Embedding gather straight into time-major (Tpad, Bp, Ep); padded batch
    # rows / timesteps reuse token 0 (padded timesteps are masked in-kernel,
    # padded batch rows are sliced off, so the values are irrelevant).
    emb_table = jnp.pad(params["embedding"],
                        ((0, 0), (0, Ep - E))).astype(compute_dtype)
    tok = jnp.pad(tokens, ((0, Bp - B), (0, Tpad - T)))
    emb = jnp.take(emb_table, tok.T, axis=0)          # (Tpad, Bp, Ep)
    emb = emb.reshape(Tpad * Bp, Ep)                  # contiguous; no movement

    # Weights: pad each [i,f,g,o] gate block to Hp lanes, input rows to Ep/Hp.
    # Zero padding is exact: padded hidden units stay identically zero through
    # the recurrence (c=0 -> h=o*tanh(0)=0).
    # Note: when importing real PyTorch weights, b_f/b_b must be b_ih + b_hh.
    wih_f = jnp.pad(_pad_gate_cols(params["wih_f"], H, Hp),
                    ((0, Ep - E), (0, 0))).astype(compute_dtype)    # (Ep, 4Hp)
    wih_b = jnp.pad(_pad_gate_cols(params["wih_b"], H, Hp),
                    ((0, Ep - E), (0, 0))).astype(compute_dtype)
    b_f = _pad_gate_cols(params["b_f"], H, Hp)                      # (1, 4Hp) f32
    b_b = _pad_gate_cols(params["b_b"], H, Hp)
    whh_f = jnp.pad(_pad_gate_cols(params["whh_f"], H, Hp),
                    ((0, Hp - H), (0, 0))).astype(compute_dtype)    # (Hp, 4Hp)
    fc1wf = jnp.pad(params["fc1_w"][:H],
                    ((0, Hp - H), (0, Fp - F))).astype(compute_dtype)
    fc1wb = jnp.pad(params["fc1_w"][H:],
                    ((0, Hp - H), (0, Fp - F))).astype(compute_dtype)
    fc1b = jnp.pad(params["fc1_b"], ((0, 0), (0, Fp - F)))          # f32
    fc2w = jnp.pad(params["fc2_w"],
                   ((0, Fp - F), (0, Op - O))).astype(compute_dtype)
    fc2b = jnp.pad(params["fc2_b"], ((0, 0), (0, Op - O)))          # f32

    kernel = functools.partial(
        lstm_model_kernel,
        seq_len=T, t_block=TB, last_local_t=(T - 1) % TB,
        unroll=True if Hp <= 256 else 4)   # avoid vreg bloat at large Hp

    def const(shape):
        return pl.BlockSpec(shape, lambda t, _s=len(shape): (0,) * _s)

    # TODO(synk): on v7x (64 MiB VMEM) single-buffer these constant-index weight
    # inputs (pipeline_mode=pl.Buffered(1)) to free room for a larger TB chunk,
    # and add a leading batch-tile "parallel" grid axis for the 2 TensorCores.
    grid_spec = pltpu.PrefetchScalarGridSpec(
        num_scalar_prefetch=0,
        grid=(n_chunks,),
        in_specs=[
            pl.BlockSpec((TB * Bp, Ep), lambda t: (t, 0)),  # emb chunk (pipelined)
            const((Ep, 4 * Hp)),    # wih_f
            const((1, 4 * Hp)),     # b_f
            const((Hp, 4 * Hp)),    # whh_f
            const((Ep, 4 * Hp)),    # wih_b
            const((1, 4 * Hp)),     # b_b
            const((Hp, Fp)),        # fc1wf
            const((Hp, Fp)),        # fc1wb
            const((1, Fp)),         # fc1b
            const((Fp, Op)),        # fc2w
            const((1, Op)),         # fc2b
        ],
        out_specs=pl.BlockSpec((Bp, Op), lambda t: (0, 0)),
        scratch_shapes=[pltpu.VMEM((Bp, Hp), jnp.float32),           # h
                        pltpu.VMEM((Bp, Hp), jnp.float32),           # c
                        pltpu.VMEM((TB * Bp, 4 * Hp), jnp.float32)],  # gates_x
    )

    out_padded = pl.pallas_call(
        kernel,
        out_shape=jax.ShapeDtypeStruct((Bp, Op), jnp.float32),
        grid_spec=grid_spec,
        compiler_params=pltpu.CompilerParams(
            dimension_semantics=("arbitrary",),          # serial time recurrence
            vmem_limit_bytes=32 * 1024 * 1024),
    )(emb, wih_f, b_f, whh_f, wih_b, b_b, fc1wf, fc1wb, fc1b, fc2w, fc2b)

    return out_padded[:B, :O]


# ---------------------------------------------------------------------------
# Pure-JAX reference (mirrors PyTorch semantics) for correctness checking.
# ---------------------------------------------------------------------------
def lstm_model_reference(tokens, params):
    emb = jnp.take(params["embedding"], tokens, axis=0).astype(jnp.float32)  # (B,T,E)
    B, T, _ = emb.shape
    H = params["whh_f"].shape[0]

    def cell(x_t, h, c, wih, whh, b):
        gates = x_t @ wih + h @ whh + b
        i = jax.nn.sigmoid(gates[:, 0 * H:1 * H])
        f = jax.nn.sigmoid(gates[:, 1 * H:2 * H])
        g = jnp.tanh(gates[:, 2 * H:3 * H])
        o = jax.nn.sigmoid(gates[:, 3 * H:4 * H])
        c = f * c + i * g
        return o * jnp.tanh(c), c

    h = jnp.zeros((B, H), jnp.float32)
    c = jnp.zeros((B, H), jnp.float32)
    for t in range(T):
        h, c = cell(emb[:, t], h, c, params["wih_f"], params["whh_f"], params["b_f"])
    h_bwd, _ = cell(emb[:, T - 1], jnp.zeros((B, H)), jnp.zeros((B, H)),
                    params["wih_b"], params["whh_b"], params["b_b"])
    z = jnp.concatenate([h, h_bwd], axis=-1)
    z = jnp.maximum(z @ params["fc1_w"] + params["fc1_b"], 0.0)
    z = z @ params["fc2_w"] + params["fc2_b"]
    return jax.nn.sigmoid(z)


def init_params(key, vocab_size, embedding_dim, hidden_dim, output_dim):
    ks = jax.random.split(key, 12)
    H, E = hidden_dim, embedding_dim
    s = 1.0 / jnp.sqrt(H)
    u = lambda k, shape: jax.random.uniform(k, shape, jnp.float32, -s, s)
    return {
        "embedding": jax.random.normal(ks[0], (vocab_size, E), jnp.float32) * 0.1,
        # LSTM weights stored transposed: (in_features, 4H). Bias = b_ih + b_hh.
        "wih_f": u(ks[1], (E, 4 * H)),
        "whh_f": u(ks[2], (H, 4 * H)),
        "b_f":   u(ks[3], (1, 4 * H)),
        "wih_b": u(ks[4], (E, 4 * H)),
        "whh_b": u(ks[5], (H, 4 * H)),   # unused in kernel (h0 = 0), kept for parity
        "b_b":   u(ks[6], (1, 4 * H)),
        "fc1_w": u(ks[7], (2 * H, 128)),
        "fc1_b": u(ks[8], (1, 128)),
        "fc2_w": u(ks[9], (128, output_dim)),
        "fc2_b": u(ks[10], (1, output_dim)),
    }


if __name__ == "__main__":
    vocab_size = 50
    embedding_dim = 100
    hidden_dim = 32
    output_dim = 4
    batch, seq_len = 2, 8

    key = jax.random.PRNGKey(0)
    k_tok, k_par = jax.random.split(key)
    tokens = jax.random.randint(k_tok, (batch, seq_len), 0, vocab_size, dtype=jnp.int32)
    params = init_params(k_par, vocab_size, embedding_dim, hidden_dim, output_dim)

    ref = lstm_model_reference(tokens, params)

    # f32 path: tight check of the kernel math.
    out_f32 = jax.block_until_ready(
        lstm_model_forward(tokens, params, compute_dtype=jnp.float32))
    assert out_f32.shape == (batch, output_dim)
    assert jnp.allclose(out_f32, ref, rtol=1e-3, atol=1e-3), "f32 kernel mismatch"

    # bf16 path (default / performance path): matmul operands in bf16,
    # accumulation + gate math in f32 -> slightly looser tolerance.
    out_bf16 = jax.block_until_ready(lstm_model_forward(tokens, params))
    assert out_bf16.shape == (batch, output_dim)
    assert jnp.allclose(out_bf16, ref, rtol=2e-2, atol=2e-2), "bf16 kernel mismatch"

    print("KERNEL_OK")
</pallas_src>

<mosaic_0001>
module attributes {stable_mosaic.version = 11 : i64} {
  func.func @lstm_model_kernel(%arg0: i32, %arg1: memref<64x128xf32, #tpu.memory_space<vmem>>, %arg2: memref<128x512xf32, #tpu.memory_space<vmem>>, %arg3: memref<1x512xf32, #tpu.memory_space<vmem>>, %arg4: memref<128x512xf32, #tpu.memory_space<vmem>>, %arg5: memref<128x512xf32, #tpu.memory_space<vmem>>, %arg6: memref<1x512xf32, #tpu.memory_space<vmem>>, %arg7: memref<128x128xf32, #tpu.memory_space<vmem>>, %arg8: memref<128x128xf32, #tpu.memory_space<vmem>>, %arg9: memref<1x128xf32, #tpu.memory_space<vmem>>, %arg10: memref<128x128xf32, #tpu.memory_space<vmem>>, %arg11: memref<1x128xf32, #tpu.memory_space<vmem>>, %arg12: memref<8x128xf32, #tpu.memory_space<vmem>>, %arg13: memref<8x128xf32, #tpu.memory_space<vmem>>, %arg14: memref<8x128xf32, #tpu.memory_space<vmem>>, %arg15: memref<64x512xf32, #tpu.memory_space<vmem>>) attributes {dimension_semantics = [#tpu.dimension_semantics<arbitrary>], iteration_bounds = array<i64: 1>, scalar_prefetch = 0 : i64, scratch_operands = 3 : i64, tpu.core_type = #tpu.core_type<tc>, window_params = [{transform_indices = @transform_0, window_bounds = array<i64: 64, 128>}, {pipeline_mode = #tpu.pipeline_mode<synchronous>, transform_indices = @transform_1, window_bounds = array<i64: 128, 512>}, {pipeline_mode = #tpu.pipeline_mode<synchronous>, transform_indices = @transform_2, window_bounds = array<i64: 1, 512>}, {pipeline_mode = #tpu.pipeline_mode<synchronous>, transform_indices = @transform_3, window_bounds = array<i64: 128, 512>}, {pipeline_mode = #tpu.pipeline_mode<synchronous>, transform_indices = @transform_4, window_bounds = array<i64: 128, 512>}, {pipeline_mode = #tpu.pipeline_mode<synchronous>, transform_indices = @transform_5, window_bounds = array<i64: 1, 512>}, {pipeline_mode = #tpu.pipeline_mode<synchronous>, transform_indices = @transform_6, window_bounds = array<i64: 128, 128>}, {pipeline_mode = #tpu.pipeline_mode<synchronous>, transform_indices = @transform_7, window_bounds = array<i64: 128, 128>}, {pipeline_mode = #tpu.pipeline_mode<synchronous>, transform_indices = @transform_8, window_bounds = array<i64: 1, 128>}, {pipeline_mode = #tpu.pipeline_mode<synchronous>, transform_indices = @transform_9, window_bounds = array<i64: 128, 128>}, {pipeline_mode = #tpu.pipeline_mode<synchronous>, transform_indices = @transform_10, window_bounds = array<i64: 1, 128>}, {pipeline_mode = #tpu.pipeline_mode<synchronous>, transform_indices = @transform_11, window_bounds = array<i64: 8, 128>}]} {
    %c0_i32 = arith.constant 0 : i32
    %0 = arith.cmpi eq, %arg0, %c0_i32 : i32
    %1 = arith.extui %0 : i1 to i32
    %c0_i32_0 = arith.constant 0 : i32
    %2 = arith.cmpi ne, %1, %c0_i32_0 : i32
    scf.if %2 {
      %cst_85 = arith.constant 0.000000e+00 : f32
      %299 = vector.broadcast %cst_85 : f32 to vector<8x128xf32>
      %c0_86 = arith.constant 0 : index
      %c0_87 = arith.constant 0 : index
      %300 = vector.load %arg13[%c0_86, %c0_87] : memref<8x128xf32, #tpu.memory_space<vmem>>, vector<8x128xf32>
      tpu.vector_store %arg13[%c0_86, %c0_87], %299 {strides = array<i32>} : memref<8x128xf32, #tpu.memory_space<vmem>>, vector<8x128xf32>,
      %cst_88 = arith.constant 0.000000e+00 : f32
      %301 = vector.broadcast %cst_88 : f32 to vector<8x128xf32>
      %c0_89 = arith.constant 0 : index
      %c0_90 = arith.constant 0 : index
      %302 = vector.load %arg14[%c0_89, %c0_90] : memref<8x128xf32, #tpu.memory_space<vmem>>, vector<8x128xf32>
      tpu.vector_store %arg14[%c0_89, %c0_90], %301 {strides = array<i32>} : memref<8x128xf32, #tpu.memory_space<vmem>>, vector<8x128xf32>,
    } else {
    }
    %c0 = arith.constant 0 : index
    %c0_1 = arith.constant 0 : index
    %3 = vector.load %arg1[%c0, %c0_1] : memref<64x128xf32, #tpu.memory_space<vmem>>, vector<64x128xf32>
    %c0_2 = arith.constant 0 : index
    %c0_3 = arith.constant 0 : index
    %4 = vector.load %arg2[%c0_2, %c0_3] : memref<128x512xf32, #tpu.memory_space<vmem>>, vector<128x512xf32>
    %cst = arith.constant dense<0.000000e+00> : vector<64x512xf32>
    %5 = tpu.matmul %3, %4, %cst {dimension_numbers = #tpu.dot_dimension_numbers<[1], [0], [0], [1], [0, 0, 1, 1], [], []>} : vector<64x128xf32>, vector<128x512xf32>, vector<64x512xf32> -> vector<64x512xf32>
    %c0_4 = arith.constant 0 : index
    %c0_5 = arith.constant 0 : index
    %6 = vector.load %arg3[%c0_4, %c0_5] : memref<1x512xf32, #tpu.memory_space<vmem>>, vector<1x512xf32>
    %7 = vector.broadcast %6 : vector<1x512xf32> to vector<64x512xf32>
    %8 = arith.addf %5, %7 : vector<64x512xf32>
    %c0_6 = arith.constant 0 : index
    %c0_7 = arith.constant 0 : index
    %9 = vector.load %arg15[%c0_6, %c0_7] : memref<64x512xf32, #tpu.memory_space<vmem>>, vector<64x512xf32>
    tpu.vector_store %arg15[%c0_6, %c0_7], %8 {strides = array<i32>} : memref<64x512xf32, #tpu.memory_space<vmem>>, vector<64x512xf32>,
    %c8_i32 = arith.constant 8 : i32
    %10 = arith.muli %arg0, %c8_i32 : i32
    %c8_i32_8 = arith.constant 8 : i32
    %11 = arith.subi %c8_i32_8, %10 : i32
    %c0_9 = arith.constant 0 : index
    %c0_10 = arith.constant 0 : index
    %12 = vector.load %arg13[%c0_9, %c0_10] : memref<8x128xf32, #tpu.memory_space<vmem>>, vector<8x128xf32>
    %c0_11 = arith.constant 0 : index
    %c0_12 = arith.constant 0 : index
    %13 = vector.load %arg14[%c0_11, %c0_12] : memref<8x128xf32, #tpu.memory_space<vmem>>, vector<8x128xf32>
    %c0_i32_13 = arith.constant 0 : i32
    %c8_i32_14 = arith.constant 8 : i32
    %14 = arith.muli %c0_i32_13, %c8_i32_14 : i32
    %15 = tpu.assume_multiple %14, 8 : i32
    %16 = arith.index_cast %15 : i32 to index
    %c0_15 = arith.constant 0 : index
    %17 = vector.load %arg15[%16, %c0_15] : memref<64x512xf32, #tpu.memory_space<vmem>>, vector<8x512xf32>
    %c0_16 = arith.constant 0 : index
    %c0_17 = arith.constant 0 : index
    %18 = vector.load %arg4[%c0_16, %c0_17] : memref<128x512xf32, #tpu.memory_space<vmem>>, vector<128x512xf32>
    %cst_18 = arith.constant dense<0.000000e+00> : vector<8x512xf32>
    %19 = tpu.matmul %12, %18, %cst_18 {dimension_numbers = #tpu.dot_dimension_numbers<[1], [0], [0], [1], [0, 0, 1, 1], [], []>} : vector<8x128xf32>, vector<128x512xf32>, vector<8x512xf32> -> vector<8x512xf32>
    %20 = arith.addf %17, %19 : vector<8x512xf32>
    %21 = vector.extract_strided_slice %20 {offsets = [0, 0], sizes = [8, 128], strides = [1, 1]} : vector<8x512xf32> to vector<8x128xf32>
    %22 = arith.negf %21 : vector<8x128xf32>
    %23 = math.exp %22 : vector<8x128xf32>
    %cst_19 = arith.constant 1.000000e+00 : f32
    %24 = vector.broadcast %cst_19 : f32 to vector<8x128xf32>
    %25 = arith.addf %24, %23 : vector<8x128xf32>
    %26 = arith.divf %24, %25 : vector<8x128xf32>
    %27 = vector.extract_strided_slice %20 {offsets = [0, 128], sizes = [8, 128], strides = [1, 1]} : vector<8x512xf32> to vector<8x128xf32>
    %28 = arith.negf %27 : vector<8x128xf32>
    %29 = math.exp %28 : vector<8x128xf32>
    %cst_20 = arith.constant 1.000000e+00 : f32
    %30 = vector.broadcast %cst_20 : f32 to vector<8x128xf32>
    %31 = arith.addf %30, %29 : vector<8x128xf32>
    %32 = arith.divf %30, %31 : vector<8x128xf32>
    %33 = vector.extract_strided_slice %20 {offsets = [0, 256], sizes = [8, 128], strides = [1, 1]} : vector<8x512xf32> to vector<8x128xf32>
    %34 = math.tanh %33 : vector<8x128xf32>
    %35 = vector.extract_strided_slice %20 {offsets = [0, 384], sizes = [8, 128], strides = [1, 1]} : vector<8x512xf32> to vector<8x128xf32>
    %36 = arith.negf %35 : vector<8x128xf32>
    %37 = math.exp %36 : vector<8x128xf32>
    %cst_21 = arith.constant 1.000000e+00 : f32
    %38 = vector.broadcast %cst_21 : f32 to vector<8x128xf32>
    %39 = arith.addf %38, %37 : vector<8x128xf32>
    %40 = arith.divf %38, %39 : vector<8x128xf32>
    %41 = arith.mulf %32, %13 : vector<8x128xf32>
    %42 = arith.mulf %26, %34 : vector<8x128xf32>
    %43 = arith.addf %41, %42 : vector<8x128xf32>
    %44 = math.tanh %43 : vector<8x128xf32>
    %45 = arith.mulf %40, %44 : vector<8x128xf32>
    %46 = arith.cmpi slt, %c0_i32_13, %11 : i32
    %47 = arith.select %46, %45, %12 : vector<8x128xf32>
    %48 = arith.select %46, %43, %13 : vector<8x128xf32>
    %c1_i32 = arith.constant 1 : i32
    %c8_i32_22 = arith.constant 8 : i32
    %49 = arith.muli %c1_i32, %c8_i32_22 : i32
    %50 = tpu.assume_multiple %49, 8 : i32
    %51 = arith.index_cast %50 : i32 to index
    %c0_23 = arith.constant 0 : index
    %52 = vector.load %arg15[%51, %c0_23] : memref<64x512xf32, #tpu.memory_space<vmem>>, vector<8x512xf32>
    %c0_24 = arith.constant 0 : index
    %c0_25 = arith.constant 0 : index
    %53 = vector.load %arg4[%c0_24, %c0_25] : memref<128x512xf32, #tpu.memory_space<vmem>>, vector<128x512xf32>
    %cst_26 = arith.constant dense<0.000000e+00> : vector<8x512xf32>
    %54 = tpu.matmul %47, %53, %cst_26 {dimension_numbers = #tpu.dot_dimension_numbers<[1], [0], [0], [1], [0, 0, 1, 1], [], []>} : vector<8x128xf32>, vector<128x512xf32>, vector<8x512xf32> -> vector<8x512xf32>
    %55 = arith.addf %52, %54 : vector<8x512xf32>
    %56 = vector.extract_strided_slice %55 {offsets = [0, 0], sizes = [8, 128], strides = [1, 1]} : vector<8x512xf32> to vector<8x128xf32>
    %57 = arith.negf %56 : vector<8x128xf32>
    %58 = math.exp %57 : vector<8x128xf32>
    %cst_27 = arith.constant 1.000000e+00 : f32
    %59 = vector.broadcast %cst_27 : f32 to vector<8x128xf32>
    %60 = arith.addf %59, %58 : vector<8x128xf32>
    %61 = arith.divf %59, %60 : vector<8x128xf32>
    %62 = vector.extract_strided_slice %55 {offsets = [0, 128], sizes = [8, 128], strides = [1, 1]} : vector<8x512xf32> to vector<8x128xf32>
    %63 = arith.negf %62 : vector<8x128xf32>
    %64 = math.exp %63 : vector<8x128xf32>
    %cst_28 = arith.constant 1.000000e+00 : f32
    %65 = vector.broadcast %cst_28 : f32 to vector<8x128xf32>
    %66 = arith.addf %65, %64 : vector<8x128xf32>
    %67 = arith.divf %65, %66 : vector<8x128xf32>
    %68 = vector.extract_strided_slice %55 {offsets = [0, 256], sizes = [8, 128], strides = [1, 1]} : vector<8x512xf32> to vector<8x128xf32>
    %69 = math.tanh %68 : vector<8x128xf32>
    %70 = vector.extract_strided_slice %55 {offsets = [0, 384], sizes = [8, 128], strides = [1, 1]} : vector<8x512xf32> to vector<8x128xf32>
    %71 = arith.negf %70 : vector<8x128xf32>
    %72 = math.exp %71 : vector<8x128xf32>
    %cst_29 = arith.constant 1.000000e+00 : f32
    %73 = vector.broadcast %cst_29 : f32 to vector<8x128xf32>
    %74 = arith.addf %73, %72 : vector<8x128xf32>
    %75 = arith.divf %73, %74 : vector<8x128xf32>
    %76 = arith.mulf %67, %48 : vector<8x128xf32>
    %77 = arith.mulf %61, %69 : vector<8x128xf32>
    %78 = arith.addf %76, %77 : vector<8x128xf32>
    %79 = math.tanh %78 : vector<8x128xf32>
    %80 = arith.mulf %75, %79 : vector<8x128xf32>
    %81 = arith.cmpi slt, %c1_i32, %11 : i32
    %82 = arith.select %81, %80, %47 : vector<8x128xf32>
    %83 = arith.select %81, %78, %48 : vector<8x128xf32>
    %c2_i32 = arith.constant 2 : i32
    %c8_i32_30 = arith.constant 8 : i32
    %84 = arith.muli %c2_i32, %c8_i32_30 : i32
    %85 = tpu.assume_multiple %84, 8 : i32
    %86 = arith.index_cast %85 : i32 to index
    %c0_31 = arith.constant 0 : index
    %87 = vector.load %arg15[%86, %c0_31] : memref<64x512xf32, #tpu.memory_space<vmem>>, vector<8x512xf32>
    %c0_32 = arith.constant 0 : index
    %c0_33 = arith.constant 0 : index
    %88 = vector.load %arg4[%c0_32, %c0_33] : memref<128x512xf32, #tpu.memory_space<vmem>>, vector<128x512xf32>
    %cst_34 = arith.constant dense<0.000000e+00> : vector<8x512xf32>
    %89 = tpu.matmul %82, %88, %cst_34 {dimension_numbers = #tpu.dot_dimension_numbers<[1], [0], [0], [1], [0, 0, 1, 1], [], []>} : vector<8x128xf32>, vector<128x512xf32>, vector<8x512xf32> -> vector<8x512xf32>
    %90 = arith.addf %87, %89 : vector<8x512xf32>
    %91 = vector.extract_strided_slice %90 {offsets = [0, 0], sizes = [8, 128], strides = [1, 1]} : vector<8x512xf32> to vector<8x128xf32>
    %92 = arith.negf %91 : vector<8x128xf32>
    %93 = math.exp %92 : vector<8x128xf32>
    %cst_35 = arith.constant 1.000000e+00 : f32
    %94 = vector.broadcast %cst_35 : f32 to vector<8x128xf32>
    %95 = arith.addf %94, %93 : vector<8x128xf32>
    %96 = arith.divf %94, %95 : vector<8x128xf32>
    %97 = vector.extract_strided_slice %90 {offsets = [0, 128], sizes = [8, 128], strides = [1, 1]} : vector<8x512xf32> to vector<8x128xf32>
    %98 = arith.negf %97 : vector<8x128xf32>
    %99 = math.exp %98 : vector<8x128xf32>
    %cst_36 = arith.constant 1.000000e+00 : f32
    %100 = vector.broadcast %cst_36 : f32 to vector<8x128xf32>
    %101 = arith.addf %100, %99 : vector<8x128xf32>
    %102 = arith.divf %100, %101 : vector<8x128xf32>
    %103 = vector.extract_strided_slice %90 {offsets = [0, 256], sizes = [8, 128], strides = [1, 1]} : vector<8x512xf32> to vector<8x128xf32>
    %104 = math.tanh %103 : vector<8x128xf32>
    %105 = vector.extract_strided_slice %90 {offsets = [0, 384], sizes = [8, 128], strides = [1, 1]} : vector<8x512xf32> to vector<8x128xf32>
    %106 = arith.negf %105 : vector<8x128xf32>
    %107 = math.exp %106 : vector<8x128xf32>
    %cst_37 = arith.constant 1.000000e+00 : f32
    %108 = vector.broadcast %cst_37 : f32 to vector<8x128xf32>
    %109 = arith.addf %108, %107 : vector<8x128xf32>
    %110 = arith.divf %108, %109 : vector<8x128xf32>
    %111 = arith.mulf %102, %83 : vector<8x128xf32>
    %112 = arith.mulf %96, %104 : vector<8x128xf32>
    %113 = arith.addf %111, %112 : vector<8x128xf32>
    %114 = math.tanh %113 : vector<8x128xf32>
    %115 = arith.mulf %110, %114 : vector<8x128xf32>
    %116 = arith.cmpi slt, %c2_i32, %11 : i32
    %117 = arith.select %116, %115, %82 : vector<8x128xf32>
    %118 = arith.select %116, %113, %83 : vector<8x128xf32>
    %c3_i32 = arith.constant 3 : i32
    %c8_i32_38 = arith.constant 8 : i32
    %119 = arith.muli %c3_i32, %c8_i32_38 : i32
    %120 = tpu.assume_multiple %119, 8 : i32
    %121 = arith.index_cast %120 : i32 to index
    %c0_39 = arith.constant 0 : index
    %122 = vector.load %arg15[%121, %c0_39] : memref<64x512xf32, #tpu.memory_space<vmem>>, vector<8x512xf32>
    %c0_40 = arith.constant 0 : index
    %c0_41 = arith.constant 0 : index
    %123 = vector.load %arg4[%c0_40, %c0_41] : memref<128x512xf32, #tpu.memory_space<vmem>>, vector<128x512xf32>
    %cst_42 = arith.constant dense<0.000000e+00> : vector<8x512xf32>
    %124 = tpu.matmul %117, %123, %cst_42 {dimension_numbers = #tpu.dot_dimension_numbers<[1], [0], [0], [1], [0, 0, 1, 1], [], []>} : vector<8x128xf32>, vector<128x512xf32>, vector<8x512xf32> -> vector<8x512xf32>
    %125 = arith.addf %122, %124 : vector<8x512xf32>
    %126 = vector.extract_strided_slice %125 {offsets = [0, 0], sizes = [8, 128], strides = [1, 1]} : vector<8x512xf32> to vector<8x128xf32>
    %127 = arith.negf %126 : vector<8x128xf32>
    %128 = math.exp %127 : vector<8x128xf32>
    %cst_43 = arith.constant 1.000000e+00 : f32
    %129 = vector.broadcast %cst_43 : f32 to vector<8x128xf32>
    %130 = arith.addf %129, %128 : vector<8x128xf32>
    %131 = arith.divf %129, %130 : vector<8x128xf32>
    %132 = vector.extract_strided_slice %125 {offsets = [0, 128], sizes = [8, 128], strides = [1, 1]} : vector<8x512xf32> to vector<8x128xf32>
    %133 = arith.negf %132 : vector<8x128xf32>
    %134 = math.exp %133 : vector<8x128xf32>
    %cst_44 = arith.constant 1.000000e+00 : f32
    %135 = vector.broadcast %cst_44 : f32 to vector<8x128xf32>
    %136 = arith.addf %135, %134 : vector<8x128xf32>
    %137 = arith.divf %135, %136 : vector<8x128xf32>
    %138 = vector.extract_strided_slice %125 {offsets = [0, 256], sizes = [8, 128], strides = [1, 1]} : vector<8x512xf32> to vector<8x128xf32>
    %139 = math.tanh %138 : vector<8x128xf32>
    %140 = vector.extract_strided_slice %125 {offsets = [0, 384], sizes = [8, 128], strides = [1, 1]} : vector<8x512xf32> to vector<8x128xf32>
    %141 = arith.negf %140 : vector<8x128xf32>
    %142 = math.exp %141 : vector<8x128xf32>
    %cst_45 = arith.constant 1.000000e+00 : f32
    %143 = vector.broadcast %cst_45 : f32 to vector<8x128xf32>
    %144 = arith.addf %143, %142 : vector<8x128xf32>
    %145 = arith.divf %143, %144 : vector<8x128xf32>
    %146 = arith.mulf %137, %118 : vector<8x128xf32>
    %147 = arith.mulf %131, %139 : vector<8x128xf32>
    %148 = arith.addf %146, %147 : vector<8x128xf32>
    %149 = math.tanh %148 : vector<8x128xf32>
    %150 = arith.mulf %145, %149 : vector<8x128xf32>
    %151 = arith.cmpi slt, %c3_i32, %11 : i32
    %152 = arith.select %151, %150, %117 : vector<8x128xf32>
    %153 = arith.select %151, %148, %118 : vector<8x128xf32>
    %c4_i32 = arith.constant 4 : i32
    %c8_i32_46 = arith.constant 8 : i32
    %154 = arith.muli %c4_i32, %c8_i32_46 : i32
    %155 = tpu.assume_multiple %154, 8 : i32
    %156 = arith.index_cast %155 : i32 to index
    %c0_47 = arith.constant 0 : index
    %157 = vector.load %arg15[%156, %c0_47] : memref<64x512xf32, #tpu.memory_space<vmem>>, vector<8x512xf32>
    %c0_48 = arith.constant 0 : index
    %c0_49 = arith.constant 0 : index
    %158 = vector.load %arg4[%c0_48, %c0_49] : memref<128x512xf32, #tpu.memory_space<vmem>>, vector<128x512xf32>
    %cst_50 = arith.constant dense<0.000000e+00> : vector<8x512xf32>
    %159 = tpu.matmul %152, %158, %cst_50 {dimension_numbers = #tpu.dot_dimension_numbers<[1], [0], [0], [1], [0, 0, 1, 1], [], []>} : vector<8x128xf32>, vector<128x512xf32>, vector<8x512xf32> -> vector<8x512xf32>
    %160 = arith.addf %157, %159 : vector<8x512xf32>
    %161 = vector.extract_strided_slice %160 {offsets = [0, 0], sizes = [8, 128], strides = [1, 1]} : vector<8x512xf32> to vector<8x128xf32>
    %162 = arith.negf %161 : vector<8x128xf32>
    %163 = math.exp %162 : vector<8x128xf32>
    %cst_51 = arith.constant 1.000000e+00 : f32
    %164 = vector.broadcast %cst_51 : f32 to vector<8x128xf32>
    %165 = arith.addf %164, %163 : vector<8x128xf32>
    %166 = arith.divf %164, %165 : vector<8x128xf32>
    %167 = vector.extract_strided_slice %160 {offsets = [0, 128], sizes = [8, 128], strides = [1, 1]} : vector<8x512xf32> to vector<8x128xf32>
    %168 = arith.negf %167 : vector<8x128xf32>
    %169 = math.exp %168 : vector<8x128xf32>
    %cst_52 = arith.constant 1.000000e+00 : f32
    %170 = vector.broadcast %cst_52 : f32 to vector<8x128xf32>
    %171 = arith.addf %170, %169 : vector<8x128xf32>
    %172 = arith.divf %170, %171 : vector<8x128xf32>
    %173 = vector.extract_strided_slice %160 {offsets = [0, 256], sizes = [8, 128], strides = [1, 1]} : vector<8x512xf32> to vector<8x128xf32>
    %174 = math.tanh %173 : vector<8x128xf32>
    %175 = vector.extract_strided_slice %160 {offsets = [0, 384], sizes = [8, 128], strides = [1, 1]} : vector<8x512xf32> to vector<8x128xf32>
    %176 = arith.negf %175 : vector<8x128xf32>
    %177 = math.exp %176 : vector<8x128xf32>
    %cst_53 = arith.constant 1.000000e+00 : f32
    %178 = vector.broadcast %cst_53 : f32 to vector<8x128xf32>
    %179 = arith.addf %178, %177 : vector<8x128xf32>
    %180 = arith.divf %178, %179 : vector<8x128xf32>
    %181 = arith.mulf %172, %153 : vector<8x128xf32>
    %182 = arith.mulf %166, %174 : vector<8x128xf32>
    %183 = arith.addf %181, %182 : vector<8x128xf32>
    %184 = math.tanh %183 : vector<8x128xf32>
    %185 = arith.mulf %180, %184 : vector<8x128xf32>
    %186 = arith.cmpi slt, %c4_i32, %11 : i32
    %187 = arith.select %186, %185, %152 : vector<8x128xf32>
    %188 = arith.select %186, %183, %153 : vector<8x128xf32>
    %c5_i32 = arith.constant 5 : i32
    %c8_i32_54 = arith.constant 8 : i32
    %189 = arith.muli %c5_i32, %c8_i32_54 : i32
    %190 = tpu.assume_multiple %189, 8 : i32
    %191 = arith.index_cast %190 : i32 to index
    %c0_55 = arith.constant 0 : index
    %192 = vector.load %arg15[%191, %c0_55] : memref<64x512xf32, #tpu.memory_space<vmem>>, vector<8x512xf32>
    %c0_56 = arith.constant 0 : index
    %c0_57 = arith.constant 0 : index
    %193 = vector.load %arg4[%c0_56, %c0_57] : memref<128x512xf32, #tpu.memory_space<vmem>>, vector<128x512xf32>
    %cst_58 = arith.constant dense<0.000000e+00> : vector<8x512xf32>
    %194 = tpu.matmul %187, %193, %cst_58 {dimension_numbers = #tpu.dot_dimension_numbers<[1], [0], [0], [1], [0, 0, 1, 1], [], []>} : vector<8x128xf32>, vector<128x512xf32>, vector<8x512xf32> -> vector<8x512xf32>
    %195 = arith.addf %192, %194 : vector<8x512xf32>
    %196 = vector.extract_strided_slice %195 {offsets = [0, 0], sizes = [8, 128], strides = [1, 1]} : vector<8x512xf32> to vector<8x128xf32>
    %197 = arith.negf %196 : vector<8x128xf32>
    %198 = math.exp %197 : vector<8x128xf32>
    %cst_59 = arith.constant 1.000000e+00 : f32
    %199 = vector.broadcast %cst_59 : f32 to vector<8x128xf32>
    %200 = arith.addf %199, %198 : vector<8x128xf32>
    %201 = arith.divf %199, %200 : vector<8x128xf32>
    %202 = vector.extract_strided_slice %195 {offsets = [0, 128], sizes = [8, 128], strides = [1, 1]} : vector<8x512xf32> to vector<8x128xf32>
    %203 = arith.negf %202 : vector<8x128xf32>
    %204 = math.exp %203 : vector<8x128xf32>
    %cst_60 = arith.constant 1.000000e+00 : f32
    %205 = vector.broadcast %cst_60 : f32 to vector<8x128xf32>
    %206 = arith.addf %205, %204 : vector<8x128xf32>
    %207 = arith.divf %205, %206 : vector<8x128xf32>
    %208 = vector.extract_strided_slice %195 {offsets = [0, 256], sizes = [8, 128], strides = [1, 1]} : vector<8x512xf32> to vector<8x128xf32>
    %209 = math.tanh %208 : vector<8x128xf32>
    %210 = vector.extract_strided_slice %195 {offsets = [0, 384], sizes = [8, 128], strides = [1, 1]} : vector<8x512xf32> to vector<8x128xf32>
    %211 = arith.negf %210 : vector<8x128xf32>
    %212 = math.exp %211 : vector<8x128xf32>
    %cst_61 = arith.constant 1.000000e+00 : f32
    %213 = vector.broadcast %cst_61 : f32 to vector<8x128xf32>
    %214 = arith.addf %213, %212 : vector<8x128xf32>
    %215 = arith.divf %213, %214 : vector<8x128xf32>
    %216 = arith.mulf %207, %188 : vector<8x128xf32>
    %217 = arith.mulf %201, %209 : vector<8x128xf32>
    %218 = arith.addf %216, %217 : vector<8x128xf32>
    %219 = math.tanh %218 : vector<8x128xf32>
    %220 = arith.mulf %215, %219 : vector<8x128xf32>
    %221 = arith.cmpi slt, %c5_i32, %11 : i32
    %222 = arith.select %221, %220, %187 : vector<8x128xf32>
    %223 = arith.select %221, %218, %188 : vector<8x128xf32>
    %c6_i32 = arith.constant 6 : i32
    %c8_i32_62 = arith.constant 8 : i32
    %224 = arith.muli %c6_i32, %c8_i32_62 : i32
    %225 = tpu.assume_multiple %224, 8 : i32
    %226 = arith.index_cast %225 : i32 to index
    %c0_63 = arith.constant 0 : index
    %227 = vector.load %arg15[%226, %c0_63] : memref<64x512xf32, #tpu.memory_space<vmem>>, vector<8x512xf32>
    %c0_64 = arith.constant 0 : index
    %c0_65 = arith.constant 0 : index
    %228 = vector.load %arg4[%c0_64, %c0_65] : memref<128x512xf32, #tpu.memory_space<vmem>>, vector<128x512xf32>
    %cst_66 = arith.constant dense<0.000000e+00> : vector<8x512xf32>
    %229 = tpu.matmul %222, %228, %cst_66 {dimension_numbers = #tpu.dot_dimension_numbers<[1], [0], [0], [1], [0, 0, 1, 1], [], []>} : vector<8x128xf32>, vector<128x512xf32>, vector<8x512xf32> -> vector<8x512xf32>
    %230 = arith.addf %227, %229 : vector<8x512xf32>
    %231 = vector.extract_strided_slice %230 {offsets = [0, 0], sizes = [8, 128], strides = [1, 1]} : vector<8x512xf32> to vector<8x128xf32>
    %232 = arith.negf %231 : vector<8x128xf32>
    %233 = math.exp %232 : vector<8x128xf32>
    %cst_67 = arith.constant 1.000000e+00 : f32
    %234 = vector.broadcast %cst_67 : f32 to vector<8x128xf32>
    %235 = arith.addf %234, %233 : vector<8x128xf32>
    %236 = arith.divf %234, %235 : vector<8x128xf32>
    %237 = vector.extract_strided_slice %230 {offsets = [0, 128], sizes = [8, 128], strides = [1, 1]} : vector<8x512xf32> to vector<8x128xf32>
    %238 = arith.negf %237 : vector<8x128xf32>
    %239 = math.exp %238 : vector<8x128xf32>
    %cst_68 = arith.constant 1.000000e+00 : f32
    %240 = vector.broadcast %cst_68 : f32 to vector<8x128xf32>
    %241 = arith.addf %240, %239 : vector<8x128xf32>
    %242 = arith.divf %240, %241 : vector<8x128xf32>
    %243 = vector.extract_strided_slice %230 {offsets = [0, 256], sizes = [8, 128], strides = [1, 1]} : vector<8x512xf32> to vector<8x128xf32>
    %244 = math.tanh %243 : vector<8x128xf32>
    %245 = vector.extract_strided_slice %230 {offsets = [0, 384], sizes = [8, 128], strides = [1, 1]} : vector<8x512xf32> to vector<8x128xf32>
    %246 = arith.negf %245 : vector<8x128xf32>
    %247 = math.exp %246 : vector<8x128xf32>
    %cst_69 = arith.constant 1.000000e+00 : f32
    %248 = vector.broadcast %cst_69 : f32 to vector<8x128xf32>
    %249 = arith.addf %248, %247 : vector<8x128xf32>
    %250 = arith.divf %248, %249 : vector<8x128xf32>
    %251 = arith.mulf %242, %223 : vector<8x128xf32>
    %252 = arith.mulf %236, %244 : vector<8x128xf32>
    %253 = arith.addf %251, %252 : vector<8x128xf32>
    %254 = math.tanh %253 : vector<8x128xf32>
    %255 = arith.mulf %250, %254 : vector<8x128xf32>
    %256 = arith.cmpi slt, %c6_i32, %11 : i32
    %257 = arith.select %256, %255, %222 : vector<8x128xf32>
    %258 = arith.select %256, %253, %223 : vector<8x128xf32>
    %c7_i32 = arith.constant 7 : i32
    %c8_i32_70 = arith.constant 8 : i32
    %259 = arith.muli %c7_i32, %c8_i32_70 : i32
    %260 = tpu.assume_multiple %259, 8 : i32
    %261 = arith.index_cast %260 : i32 to index
    %c0_71 = arith.constant 0 : index
    %262 = vector.load %arg15[%261, %c0_71] : memref<64x512xf32, #tpu.memory_space<vmem>>, vector<8x512xf32>
    %c0_72 = arith.constant 0 : index
    %c0_73 = arith.constant 0 : index
    %263 = vector.load %arg4[%c0_72, %c0_73] : memref<128x512xf32, #tpu.memory_space<vmem>>, vector<128x512xf32>
    %cst_74 = arith.constant dense<0.000000e+00> : vector<8x512xf32>
    %264 = tpu.matmul %257, %263, %cst_74 {dimension_numbers = #tpu.dot_dimension_numbers<[1], [0], [0], [1], [0, 0, 1, 1], [], []>} : vector<8x128xf32>, vector<128x512xf32>, vector<8x512xf32> -> vector<8x512xf32>
    %265 = arith.addf %262, %264 : vector<8x512xf32>
    %266 = vector.extract_strided_slice %265 {offsets = [0, 0], sizes = [8, 128], strides = [1, 1]} : vector<8x512xf32> to vector<8x128xf32>
    %267 = arith.negf %266 : vector<8x128xf32>
    %268 = math.exp %267 : vector<8x128xf32>
    %cst_75 = arith.constant 1.000000e+00 : f32
    %269 = vector.broadcast %cst_75 : f32 to vector<8x128xf32>
    %270 = arith.addf %269, %268 : vector<8x128xf32>
    %271 = arith.divf %269, %270 : vector<8x128xf32>
    %272 = vector.extract_strided_slice %265 {offsets = [0, 128], sizes = [8, 128], strides = [1, 1]} : vector<8x512xf32> to vector<8x128xf32>
    %273 = arith.negf %272 : vector<8x128xf32>
    %274 = math.exp %273 : vector<8x128xf32>
    %cst_76 = arith.constant 1.000000e+00 : f32
    %275 = vector.broadcast %cst_76 : f32 to vector<8x128xf32>
    %276 = arith.addf %275, %274 : vector<8x128xf32>
    %277 = arith.divf %275, %276 : vector<8x128xf32>
    %278 = vector.extract_strided_slice %265 {offsets = [0, 256], sizes = [8, 128], strides = [1, 1]} : vector<8x512xf32> to vector<8x128xf32>
    %279 = math.tanh %278 : vector<8x128xf32>
    %280 = vector.extract_strided_slice %265 {offsets = [0, 384], sizes = [8, 128], strides = [1, 1]} : vector<8x512xf32> to vector<8x128xf32>
    %281 = arith.negf %280 : vector<8x128xf32>
    %282 = math.exp %281 : vector<8x128xf32>
    %cst_77 = arith.constant 1.000000e+00 : f32
    %283 = vector.broadcast %cst_77 : f32 to vector<8x128xf32>
    %284 = arith.addf %283, %282 : vector<8x128xf32>
    %285 = arith.divf %283, %284 : vector<8x128xf32>
    %286 = arith.mulf %277, %258 : vector<8x128xf32>
    %287 = arith.mulf %271, %279 : vector<8x128xf32>
    %288 = arith.addf %286, %287 : vector<8x128xf32>
    %289 = math.tanh %288 : vector<8x128xf32>
    %290 = arith.mulf %285, %289 : vector<8x128xf32>
    %291 = arith.cmpi slt, %c7_i32, %11 : i32
    %292 = arith.select %291, %290, %257 : vector<8x128xf32>
    %293 = arith.select %291, %288, %258 : vector<8x128xf32>
    %c8_i32_78 = arith.constant 8 : i32
    %c0_79 = arith.constant 0 : index
    %c0_80 = arith.constant 0 : index
    %294 = vector.load %arg13[%c0_79, %c0_80] : memref<8x128xf32, #tpu.memory_space<vmem>>, vector<8x128xf32>
    tpu.vector_store %arg13[%c0_79, %c0_80], %292 {strides = array<i32>} : memref<8x128xf32, #tpu.memory_space<vmem>>, vector<8x128xf32>,
    %c0_81 = arith.constant 0 : index
    %c0_82 = arith.constant 0 : index
    %295 = vector.load %arg14[%c0_81, %c0_82] : memref<8x128xf32, #tpu.memory_space<vmem>>, vector<8x128xf32>
    tpu.vector_store %arg14[%c0_81, %c0_82], %293 {strides = array<i32>} : memref<8x128xf32, #tpu.memory_space<vmem>>, vector<8x128xf32>,
    %c0_i32_83 = arith.constant 0 : i32
    %296 = arith.cmpi eq, %arg0, %c0_i32_83 : i32
    %297 = arith.extui %296 : i1 to i32
    %c0_i32_84 = arith.constant 0 : i32
    %298 = arith.cmpi ne, %297, %c0_i32_84 : i32
    scf.if %298 {
      %c56 = arith.constant 56 : index
      %c0_85 = arith.constant 0 : index
      %299 = vector.load %arg1[%c56, %c0_85] : memref<64x128xf32, #tpu.memory_space<vmem>>, vector<8x128xf32>
      %c0_86 = arith.constant 0 : index
      %c0_87 = arith.constant 0 : index
      %300 = vector.load %arg5[%c0_86, %c0_87] : memref<128x512xf32, #tpu.memory_space<vmem>>, vector<128x512xf32>
      %cst_88 = arith.constant dense<0.000000e+00> : vector<8x512xf32>
      %301 = tpu.matmul %299, %300, %cst_88 {dimension_numbers = #tpu.dot_dimension_numbers<[1], [0], [0], [1], [0, 0, 1, 1], [], []>} : vector<8x128xf32>, vector<128x512xf32>, vector<8x512xf32> -> vector<8x512xf32>
      %c0_89 = arith.constant 0 : index
      %c0_90 = arith.constant 0 : index
      %302 = vector.load %arg6[%c0_89, %c0_90] : memref<1x512xf32, #tpu.memory_space<vmem>>, vector<1x512xf32>
      %303 = vector.broadcast %302 : vector<1x512xf32> to vector<8x512xf32>
      %304 = arith.addf %301, %303 : vector<8x512xf32>
      %cst_91 = arith.constant 0.000000e+00 : f32
      %305 = vector.broadcast %cst_91 : f32 to vector<8x128xf32>
      %306 = vector.extract_strided_slice %304 {offsets = [0, 0], sizes = [8, 128], strides = [1, 1]} : vector<8x512xf32> to vector<8x128xf32>
      %307 = arith.negf %306 : vector<8x128xf32>
      %308 = math.exp %307 : vector<8x128xf32>
      %cst_92 = arith.constant 1.000000e+00 : f32
      %309 = vector.broadcast %cst_92 : f32 to vector<8x128xf32>
      %310 = arith.addf %309, %308 : vector<8x128xf32>
      %311 = arith.divf %309, %310 : vector<8x128xf32>
      %312 = vector.extract_strided_slice %304 {offsets = [0, 128], sizes = [8, 128], strides = [1, 1]} : vector<8x512xf32> to vector<8x128xf32>
      %313 = arith.negf %312 : vector<8x128xf32>
      %314 = math.exp %313 : vector<8x128xf32>
      %cst_93 = arith.constant 1.000000e+00 : f32
      %315 = vector.broadcast %cst_93 : f32 to vector<8x128xf32>
      %316 = arith.addf %315, %314 : vector<8x128xf32>
      %317 = arith.divf %315, %316 : vector<8x128xf32>
      %318 = vector.extract_strided_slice %304 {offsets = [0, 256], sizes = [8, 128], strides = [1, 1]} : vector<8x512xf32> to vector<8x128xf32>
      %319 = math.tanh %318 : vector<8x128xf32>
      %320 = vector.extract_strided_slice %304 {offsets = [0, 384], sizes = [8, 128], strides = [1, 1]} : vector<8x512xf32> to vector<8x128xf32>
      %321 = arith.negf %320 : vector<8x128xf32>
      %322 = math.exp %321 : vector<8x128xf32>
      %cst_94 = arith.constant 1.000000e+00 : f32
      %323 = vector.broadcast %cst_94 : f32 to vector<8x128xf32>
      %324 = arith.addf %323, %322 : vector<8x128xf32>
      %325 = arith.divf %323, %324 : vector<8x128xf32>
      %326 = arith.mulf %317, %305 : vector<8x128xf32>
      %327 = arith.mulf %311, %319 : vector<8x128xf32>
      %328 = arith.addf %326, %327 : vector<8x128xf32>
      %329 = math.tanh %328 : vector<8x128xf32>
      %330 = arith.mulf %325, %329 : vector<8x128xf32>
      %c0_95 = arith.constant 0 : index
      %c0_96 = arith.constant 0 : index
      %331 = vector.load %arg7[%c0_95, %c0_96] : memref<128x128xf32, #tpu.memory_space<vmem>>, vector<128x128xf32>
      %cst_97 = arith.constant dense<0.000000e+00> : vector<8x128xf32>
      %332 = tpu.matmul %292, %331, %cst_97 {dimension_numbers = #tpu.dot_dimension_numbers<[1], [0], [0], [1], [0, 0, 1, 1], [], []>} : vector<8x128xf32>, vector<128x128xf32>, vector<8x128xf32> -> vector<8x128xf32>
      %c0_98 = arith.constant 0 : index
      %c0_99 = arith.constant 0 : index
      %333 = vector.load %arg8[%c0_98, %c0_99] : memref<128x128xf32, #tpu.memory_space<vmem>>, vector<128x128xf32>
      %cst_100 = arith.constant dense<0.000000e+00> : vector<8x128xf32>
      %334 = tpu.matmul %330, %333, %cst_100 {dimension_numbers = #tpu.dot_dimension_numbers<[1], [0], [0], [1], [0, 0, 1, 1], [], []>} : vector<8x128xf32>, vector<128x128xf32>, vector<8x128xf32> -> vector<8x128xf32>
      %335 = arith.addf %332, %334 : vector<8x128xf32>
      %c0_101 = arith.constant 0 : index
      %c0_102 = arith.constant 0 : index
      %336 = vector.load %arg9[%c0_101, %c0_102] : memref<1x128xf32, #tpu.memory_space<vmem>>, vector<1x128xf32>
      %337 = vector.broadcast %336 : vector<1x128xf32> to vector<8x128xf32>
      %338 = arith.addf %335, %337 : vector<8x128xf32>
      %cst_103 = arith.constant 0.000000e+00 : f32
      %339 = vector.broadcast %cst_103 : f32 to vector<8x128xf32>
      %340 = arith.maximumf %338, %339 : vector<8x128xf32>
      %c0_104 = arith.constant 0 : index
      %c0_105 = arith.constant 0 : index
      %341 = vector.load %arg10[%c0_104, %c0_105] : memref<128x128xf32, #tpu.memory_space<vmem>>, vector<128x128xf32>
      %cst_106 = arith.constant dense<0.000000e+00> : vector<8x128xf32>
      %342 = tpu.matmul %340, %341, %cst_106 {dimension_numbers = #tpu.dot_dimension_numbers<[1], [0], [0], [1], [0, 0, 1, 1], [], []>} : vector<8x128xf32>, vector<128x128xf32>, vector<8x128xf32> -> vector<8x128xf32>
      %c0_107 = arith.constant 0 : index
      %c0_108 = arith.constant 0 : index
      %343 = vector.load %arg11[%c0_107, %c0_108] : memref<1x128xf32, #tpu.memory_space<vmem>>, vector<1x128xf32>
      %344 = vector.broadcast %343 : vector<1x128xf32> to vector<8x128xf32>
      %345 = arith.addf %342, %344 : vector<8x128xf32>
      %346 = arith.negf %345 : vector<8x128xf32>
      %347 = math.exp %346 : vector<8x128xf32>
      %cst_109 = arith.constant 1.000000e+00 : f32
      %348 = vector.broadcast %cst_109 : f32 to vector<8x128xf32>
      %349 = arith.addf %348, %347 : vector<8x128xf32>
      %350 = arith.divf %348, %349 : vector<8x128xf32>
      %c0_110 = arith.constant 0 : index
      %c0_111 = arith.constant 0 : index
      %351 = vector.load %arg12[%c0_110, %c0_111] : memref<8x128xf32, #tpu.memory_space<vmem>>, vector<8x128xf32>
      tpu.vector_store %arg12[%c0_110, %c0_111], %350 {strides = array<i32>} : memref<8x128xf32, #tpu.memory_space<vmem>>, vector<8x128xf32>,
    } else {
    }
    return
  }
  func.func @transform_0(%arg0: i32) -> (i32, i32) {
    %c0_i32 = arith.constant 0 : i32
    %c0_i32_0 = arith.constant 0 : i32
    return %arg0, %c0_i32 : i32, i32
  }
  func.func @transform_1(%arg0: i32) -> (i32, i32) {
    %c0_i32 = arith.constant 0 : i32
    %c0_i32_0 = arith.constant 0 : i32
    %c0_i32_1 = arith.constant 0 : i32
    return %c0_i32, %c0_i32_0 : i32, i32
  }
  func.func @transform_2(%arg0: i32) -> (i32, i32) {
    %c0_i32 = arith.constant 0 : i32
    %c0_i32_0 = arith.constant 0 : i32
    %c0_i32_1 = arith.constant 0 : i32
    return %c0_i32, %c0_i32_0 : i32, i32
  }
  func.func @transform_3(%arg0: i32) -> (i32, i32) {
    %c0_i32 = arith.constant 0 : i32
    %c0_i32_0 = arith.constant 0 : i32
    %c0_i32_1 = arith.constant 0 : i32
    return %c0_i32, %c0_i32_0 : i32, i32
  }
  func.func @transform_4(%arg0: i32) -> (i32, i32) {
    %c0_i32 = arith.constant 0 : i32
    %c0_i32_0 = arith.constant 0 : i32
    %c0_i32_1 = arith.constant 0 : i32
    return %c0_i32, %c0_i32_0 : i32, i32
  }
  func.func @transform_5(%arg0: i32) -> (i32, i32) {
    %c0_i32 = arith.constant 0 : i32
    %c0_i32_0 = arith.constant 0 : i32
    %c0_i32_1 = arith.constant 0 : i32
    return %c0_i32, %c0_i32_0 : i32, i32
  }
  func.func @transform_6(%arg0: i32) -> (i32, i32) {
    %c0_i32 = arith.constant 0 : i32
    %c0_i32_0 = arith.constant 0 : i32
    %c0_i32_1 = arith.constant 0 : i32
    return %c0_i32, %c0_i32_0 : i32, i32
  }
  func.func @transform_7(%arg0: i32) -> (i32, i32) {
    %c0_i32 = arith.constant 0 : i32
    %c0_i32_0 = arith.constant 0 : i32
    %c0_i32_1 = arith.constant 0 : i32
    return %c0_i32, %c0_i32_0 : i32, i32
  }
  func.func @transform_8(%arg0: i32) -> (i32, i32) {
    %c0_i32 = arith.constant 0 : i32
    %c0_i32_0 = arith.constant 0 : i32
    %c0_i32_1 = arith.constant 0 : i32
    return %c0_i32, %c0_i32_0 : i32, i32
  }
  func.func @transform_9(%arg0: i32) -> (i32, i32) {
    %c0_i32 = arith.constant 0 : i32
    %c0_i32_0 = arith.constant 0 : i32
    %c0_i32_1 = arith.constant 0 : i32
    return %c0_i32, %c0_i32_0 : i32, i32
  }
  func.func @transform_10(%arg0: i32) -> (i32, i32) {
    %c0_i32 = arith.constant 0 : i32
    %c0_i32_0 = arith.constant 0 : i32
    %c0_i32_1 = arith.constant 0 : i32
    return %c0_i32, %c0_i32_0 : i32, i32
  }
  func.func @transform_11(%arg0: i32) -> (i32, i32) {
    %c0_i32 = arith.constant 0 : i32
    %c0_i32_0 = arith.constant 0 : i32
    %c0_i32_1 = arith.constant 0 : i32
    return %c0_i32, %c0_i32_0 : i32, i32
  }
}

</mosaic_0001>

<bundles_post_ra>
// kernel: tpu_custom_call.1
= control target key start
LH: loop header
LB: loop body
LE: loop exit
PB: predicated region body
PF: predicated region fallthrough
CT: control target
= control target key end

     0   :  { %16 = vsyncpa [#allocation6], 0  ;;  %s4362_s0 = inlined_call_operand.hbm [shape: f32[64,128], index: 0, kind: input, shape index: {}]   ;;  %s4363_s1 = inlined_call_operand.hbm [shape: f32[128,512], index: 1, kind: input, shape index: {}]   ;;  %s4364_s2 = inlined_call_operand.hbm [shape: f32[1,512], index: 2, kind: input, shape index: {}]   ;;  %s4365_s3 = inlined_call_operand.hbm [shape: f32[128,512], index: 3, kind: input, shape index: {}]   ;;  %s4366_s4 = inlined_call_operand.hbm [shape: f32[128,512], index: 4, kind: input, shape index: {}]   ;;  %s4367_s5 = inlined_call_operand.vmem [shape: f32[1,512], index: 5, kind: input, shape index: {}]   ;;  %s4368_s6 = inlined_call_operand.hbm [shape: f32[128,128], index: 6, kind: input, shape index: {}]   ;;  %s4369_s7 = inlined_call_operand.hbm [shape: f32[128,128], index: 7, kind: input, shape index: {}]   ;;  %s4370_s8 = inlined_call_operand.vmem [shape: f32[1,128], index: 8, kind: input, shape index: {}]   ;;  %s4371_s9 = inlined_call_operand.hbm [shape: f32[128,128], index: 9, kind: input, shape index: {}]   ;;  %s4372_s10 = inlined_call_operand.vmem [shape: f32[1,128], index: 10, kind: input, shape index: {}]   ;;  %s4373_s11 = inlined_call_operand.hbm [shape: f32[8,128], index: 11, kind: output, shape index: {}]  }
   0x1   :  { %17 = vsyncpa [#allocation9], 0 }
   0x2   :  { %18 = vsyncpa [#allocation12], 0 }
   0x3   :  { %19 = vsyncpa [#allocation15], 0 }
   0x4   :  { %20 = vsyncpa [#allocation18], 0 }
   0x5   :  { %21 = vsyncpa [#allocation7], 0  ;;  %s3206_s17 = smov [#allocation8]  }
   0x6   :  { %s39_s18 = sshll.u32 %s3206_s17, 4  ;;  %s40_s18 = int_to_ptr.vmem [resolvable:$true] %s39_s18 }
   0x7   :  { %s3022_s19 = scalar_lea.vmem %s40_s18, 8192  ;;  %p3027_p1 = scmp.lt.s32.totalorder %s40_s18, %s40_s18 }
   0x8   :  { %p3023_p0 = scmp.ne.s32.totalorder %s40_s18, %s3022_s19  ;;  %p3028_p2 = scmp.lt.s32.totalorder %s3022_s19, %s3022_s19 }
   0xa   :  { %p3029_p3 = por %p3028_p2, %p3027_p1 }
   0xc   :  { %p3030_p4 = pnand %p3029_p3, %p3023_p0 }
   0xe   :  { %3033 = shalt.err (!%p3030_p4)
}
   0xf   :  { %s3207_s20 = smov 512   ;;  %s3208_s21 = smov 32  }
  0x10   :  { %45 = dma.hbm_to_vmem [thread:$0]  %s4363_s1, 8192, %s40_s18, [#allocation9], %s3207_s20, %s3207_s20, %s3208_s21  }
  0x11   :  { %s3209_s24 = smov [#allocation11]  }
  0x12   :  { %s61_s25 = sshll.u32 %s3209_s24, 4  ;;  %s62_s25 = int_to_ptr.vmem [resolvable:$true] %s61_s25 }
  0x13   :  { %s3042_s26 = scalar_lea.vmem %s62_s25, 8192  ;;  %p3047_p6 = scmp.lt.s32.totalorder %s62_s25, %s62_s25 }
  0x14   :  { %p3043_p5 = scmp.ne.s32.totalorder %s62_s25, %s3042_s26  ;;  %p3048_p7 = scmp.lt.s32.totalorder %s3042_s26, %s3042_s26 }
  0x16   :  { %p3049_p8 = por %p3048_p7, %p3047_p6 }
  0x18   :  { %p3050_p9 = pnand %p3049_p8, %p3043_p5 }
  0x1a   :  { %3053 = shalt.err (!%p3050_p9)
}
  0x1b   :  { %67 = dma.hbm_to_vmem [thread:$0]  %s4365_s3, 8192, %s62_s25, [#allocation12], %s3207_s20, %s3207_s20, %s3208_s21  }
  0x1c   :  { %s3210_s29 = smov [#allocation14]   ;;  %s3211_s1 = smov [#allocation5]  }
  0x1d   :  { %s87_s30 = sshll.u32 %s3210_s29, 4  ;;  %s27_s12 = sshll.u32 %s3211_s1, 4  ;;  %s88_s30 = int_to_ptr.vmem [resolvable:$true] %s87_s30  ;;  %s28_s12 = int_to_ptr.vmem [resolvable:$true] %s27_s12 }
  0x1e   :  { %s3062_s13 = scalar_lea.vmem %s88_s30, 2048  ;;  %p3067_p11 = scmp.lt.s32.totalorder %s88_s30, %s88_s30 }
  0x1f   :  { %p3063_p10 = scmp.ne.s32.totalorder %s88_s30, %s3062_s13  ;;  %p3068_p12 = scmp.lt.s32.totalorder %s3062_s13, %s3062_s13 }
  0x21   :  { %p3069_p13 = por %p3068_p12, %p3067_p11 }
  0x23   :  { %p3070_p0 = pnand %p3069_p13, %p3063_p10 }
  0x25   :  { %3073 = shalt.err (!%p3070_p0)
}
  0x26   :  { %s3212_s14 = smov 128   ;;  %s3213_s15 = smov 8  }
  0x27   :  { %93 = dma.hbm_to_vmem [thread:$0]  %s4368_s6, 2048, %s88_s30, [#allocation15], %s3212_s14, %s3212_s14, %s3213_s15  }
  0x28   :  { %s3082_s17 = scalar_lea.vmem %s28_s12, 1024  ;;  %p3087_p2 = scmp.lt.s32.totalorder %s28_s12, %s28_s12 }
  0x29   :  { %p3083_p1 = scmp.ne.s32.totalorder %s28_s12, %s3082_s17  ;;  %p3088_p3 = scmp.lt.s32.totalorder %s3082_s17, %s3082_s17 }
  0x2b   :  { %p3089_p4 = por %p3088_p3, %p3087_p2 }
  0x2d   :  { %p3090_p5 = pnand %p3089_p4, %p3083_p1 }
  0x2f   :  { %3093 = shalt.err (!%p3090_p5)
}
  0x30   :  { %33 = dma.hbm_to_vmem [thread:$0]  %s4362_s0, 1024, %s28_s12, [#allocation6], %s3212_s14, %s3212_s14, %s3213_s15  }
  0x31   :  { %s3214_s22 = smov [#allocation10]   ;;  %s3215_s24 = smov [#allocation13]  }
  0x32   :  { %s52_s23 = sshll.u32 %s3214_s22, 4  ;;  %s73_s25 = sshll.u32 %s3215_s24, 4  ;;  %s53_s23 = int_to_ptr.vmem [resolvable:$true] %s52_s23  ;;  %s74_s25 = int_to_ptr.vmem [resolvable:$true] %s73_s25 }
  0x33   :  { %s3102_s6 = scalar_lea.vmem %s53_s23, 64  ;;  %p3107_p7 = scmp.lt.s32.totalorder %s53_s23, %s53_s23 }
  0x34   :  { %p3103_p6 = scmp.ne.s32.totalorder %s53_s23, %s3102_s6  ;;  %p3108_p8 = scmp.lt.s32.totalorder %s3102_s6, %s3102_s6 }
  0x36   :  { %p3109_p9 = por %p3108_p8, %p3107_p7 }
  0x38   :  { %p3110_p10 = pnand %p3109_p9, %p3103_p6 }
  0x3a   :  { %3113 = shalt.err (!%p3110_p10)
}
  0x3b   :  { %55 = dma.hbm_to_vmem [thread:$0]  %s4364_s2, 64, %s53_s23, [#allocation9]  }
  0x3c   :  { %s3122_s28 = scalar_lea.vmem %s74_s25, 8192  ;;  %p3127_p12 = scmp.lt.s32.totalorder %s74_s25, %s74_s25 }
  0x3d   :  { %p3123_p11 = scmp.ne.s32.totalorder %s74_s25, %s3122_s28  ;;  %p3128_p13 = scmp.lt.s32.totalorder %s3122_s28, %s3122_s28 }
  0x3f   :  { %p3129_p0 = por %p3128_p13, %p3127_p12 }
  0x41   :  { %p3130_p1 = pnand %p3129_p0, %p3123_p11 }
  0x43   :  { %3133 = shalt.err (!%p3130_p1)
}
  0x44   :  { %79 = dma.hbm_to_vmem [thread:$0]  %s4366_s4, 8192, %s74_s25, [#allocation12], %s3207_s20, %s3207_s20, %s3208_s21  }
  0x45   :  { %s3216_s30 = smov [#allocation16]   ;;  %s3217_s12 = smov [#allocation17]  }
  0x46   :  { %s99_s1 = sshll.u32 %s3216_s30, 4  ;;  %s113_s13 = sshll.u32 %s3217_s12, 4  ;;  %s100_s1 = int_to_ptr.vmem [resolvable:$true] %s99_s1  ;;  %s114_s13 = int_to_ptr.vmem [resolvable:$true] %s113_s13 }
  0x47   :  { %s3142_s2 = scalar_lea.vmem %s100_s1, 2048  ;;  %p3147_p3 = scmp.lt.s32.totalorder %s100_s1, %s100_s1 }
  0x48   :  { %p3143_p2 = scmp.ne.s32.totalorder %s100_s1, %s3142_s2  ;;  %p3148_p4 = scmp.lt.s32.totalorder %s3142_s2, %s3142_s2 }
  0x4a   :  { %p3149_p5 = por %p3148_p4, %p3147_p3 }
  0x4c   :  { %p3150_p6 = pnand %p3149_p5, %p3143_p2 }
  0x4e   :  { %3153 = shalt.err (!%p3150_p6)
}
  0x4f   :  { %105 = dma.hbm_to_vmem [thread:$0]  %s4369_s7, 2048, %s100_s1, [#allocation15], %s3212_s14, %s3212_s14, %s3213_s15  }
  0x50   :  { %s3162_s4 = scalar_lea.vmem %s114_s13, 2048  ;;  %p3167_p8 = scmp.lt.s32.totalorder %s114_s13, %s114_s13 }
  0x51   :  { %p3163_p7 = scmp.ne.s32.totalorder %s114_s13, %s3162_s4  ;;  %p3168_p9 = scmp.lt.s32.totalorder %s3162_s4, %s3162_s4 }
  0x53   :  { %p3169_p10 = por %p3168_p9, %p3167_p8 }
  0x55   :  { %p3170_p11 = pnand %p3169_p10, %p3163_p7 }
  0x57   :  { %3173 = shalt.err (!%p3170_p11)
}
  0x58   :  { %119 = dma.hbm_to_vmem [thread:$0]  %s4371_s9, 2048, %s114_s13, [#allocation18], %s3212_s14, %s3212_s14, %s3213_s15  }
  0x59   :  { %3194 = dma.done.wait [#allocation6], 1024  }
  0x5a   :  { %3195 = vsyncadd [#allocation6], 4294966272 }
  0x5b   :  { %3196 = dma.done.wait [#allocation9], 8256  }
  0x5c   :  { %3197 = vsyncadd [#allocation9], 4294959040 }
  0x5d   :  { %3198 = dma.done.wait [#allocation12], 16384  }
  0x5e   :  { %3199 = vsyncadd [#allocation12], 4294950912 }
  0x5f   :  { %3200 = dma.done.wait [#allocation15], 4096  }
  0x60   :  { %3201 = vsyncadd [#allocation15], 4294963200 }
  0x61   :  { %3202 = dma.done.wait [#allocation18], 2048  }
  0x62   :  { %3203 = vsyncadd [#allocation18], 4294965248  ;;  %v4374_v0 = vmov 0.0   ;;  %v221_v1 = vld [vmem:[#allocation8 + $0x1e8] sm:$0xff]  ;;  %v223_v2 = vld [vmem:[#allocation8 + $0x1f8] sm:$0xff]  ;;  %vm3219_vm0 = vmmov 0  }
  0x63   :  { %310 = vmatprep.mubr.f32.mxu0 %v4374_v0  ;;  %423 = vmatprep.mubr.f32.mxu1 %v4374_v0  ;;  %v220_v3 = vld [vmem:[#allocation8 + $0x1e0] sm:$0xff]  ;;  %v222_v4 = vld [vmem:[#allocation8 + $0x1f0] sm:$0xff]  ;;  %v217_v5 = vld [vmem:[#allocation8 + $0x1c8] sm:$0xff]  ;;  %s3220_s18 = smov [#allocation19]  }
  0x64   :  { %246 = vmatprep.subr.mxu0 %v221_v1  ;;  %359 = vmatprep.subr.mxu1 %v223_v2  ;;  %v219_v6 = vld [vmem:[#allocation8 + $0x1d8] sm:$0xff]  ;;  %v216_v7 = vld [vmem:[#allocation8 + $0x1c0] sm:$0xff]  ;;  %v218_v8 = vld [vmem:[#allocation8 + $0x1d0] sm:$0xff]  ;;  %s2581_s19 = sshll.u32 %s3220_s18, 4  ;;  %s2582_s19 = int_to_ptr.vmem [resolvable:$true] %s2581_s19 }
  0x65   :  { %247 = vmatpush1.msra.mxu0 %v220_v3  ;;  %360 = vmatpush1.msra.mxu1 %v222_v4  ;;  %v213_v9 = vld [vmem:[#allocation8 + $0x1a8] sm:$0xff]  ;;  %v215_v10 = vld [vmem:[#allocation8 + $0x1b8] sm:$0xff]  ;;  %v212_v11 = vld [vmem:[#allocation8 + $0x1a0] sm:$0xff]  ;;  %p3179_p13 = scmp.lt.s32.totalorder %s2582_s19, %s2582_s19 }
  0x66   :  { %248 = vmatprep.subr.mxu0 %v217_v5  ;;  %361 = vmatprep.subr.mxu1 %v219_v6  ;;  %v214_v12 = vld [vmem:[#allocation8 + $0x1b0] sm:$0xff]  ;;  %v209_v13 = vld [vmem:[#allocation8 + $0x188] sm:$0xff]  ;;  %v211_v14 = vld [vmem:[#allocation8 + $0x198] sm:$0xff] }
  0x67   :  { %249 = vmatpush1.msra.mxu0 %v216_v7  ;;  %362 = vmatpush1.msra.mxu1 %v218_v8  ;;  %v208_v15 = vld [vmem:[#allocation8 + $0x180] sm:$0xff]  ;;  %v210_v16 = vld [vmem:[#allocation8 + $0x190] sm:$0xff]  ;;  %v205_v17 = vld [vmem:[#allocation8 + $0x168] sm:$0xff] }
  0x68   :  { %250 = vmatprep.subr.mxu0 %v213_v9  ;;  %363 = vmatprep.subr.mxu1 %v215_v10  ;;  %v207_v18 = vld [vmem:[#allocation8 + $0x178] sm:$0xff]  ;;  %v204_v19 = vld [vmem:[#allocation8 + $0x160] sm:$0xff]  ;;  %v206_v20 = vld [vmem:[#allocation8 + $0x170] sm:$0xff] }
  0x69   :  { %251 = vmatpush1.msra.mxu0 %v212_v11  ;;  %364 = vmatpush1.msra.mxu1 %v214_v12  ;;  %v201_v21 = vld [vmem:[#allocation8 + $0x148] sm:$0xff]  ;;  %v203_v22 = vld [vmem:[#allocation8 + $0x158] sm:$0xff]  ;;  %v200_v23 = vld [vmem:[#allocation8 + $0x140] sm:$0xff] }
  0x6a   :  { %252 = vmatprep.subr.mxu0 %v209_v13  ;;  %365 = vmatprep.subr.mxu1 %v211_v14  ;;  %v202_v24 = vld [vmem:[#allocation8 + $0x150] sm:$0xff]  ;;  %v197_v25 = vld [vmem:[#allocation8 + $0x128] sm:$0xff]  ;;  %v199_v26 = vld [vmem:[#allocation8 + $0x138] sm:$0xff] }
  0x6b   :  { %253 = vmatpush1.msra.mxu0 %v208_v15  ;;  %366 = vmatpush1.msra.mxu1 %v210_v16  ;;  %v196_v27 = vld [vmem:[#allocation8 + $0x120] sm:$0xff]  ;;  %v198_v28 = vld [vmem:[#allocation8 + $0x130] sm:$0xff]  ;;  %v193_v29 = vld [vmem:[#allocation8 + $0x108] sm:$0xff] }
  0x6c   :  { %254 = vmatprep.subr.mxu0 %v205_v17  ;;  %367 = vmatprep.subr.mxu1 %v207_v18  ;;  %v195_v30 = vld [vmem:[#allocation8 + $0x118] sm:$0xff]  ;;  %v192_v31 = vld [vmem:[#allocation8 + $0x100] sm:$0xff]  ;;  %v194_v32 = vld [vmem:[#allocation8 + $0x110] sm:$0xff] }
  0x6d   :  { %255 = vmatpush1.msra.mxu0 %v204_v19  ;;  %368 = vmatpush1.msra.mxu1 %v206_v20  ;;  %v189_v33 = vld [vmem:[#allocation8 + $0xe8] sm:$0xff]  ;;  %v191_v34 = vld [vmem:[#allocation8 + $0xf8] sm:$0xff]  ;;  %v188_v35 = vld [vmem:[#allocation8 + $0xe0] sm:$0xff] }
  0x6e   :  { %256 = vmatprep.subr.mxu0 %v201_v21  ;;  %369 = vmatprep.subr.mxu1 %v203_v22  ;;  %v190_v36 = vld [vmem:[#allocation8 + $0xf0] sm:$0xff]  ;;  %v185_v37 = vld [vmem:[#allocation8 + $0xc8] sm:$0xff]  ;;  %v187_v38 = vld [vmem:[#allocation8 + $0xd8] sm:$0xff] }
  0x6f   :  { %257 = vmatpush1.msra.mxu0 %v200_v23  ;;  %370 = vmatpush1.msra.mxu1 %v202_v24  ;;  %v184_v39 = vld [vmem:[#allocation8 + $0xc0] sm:$0xff]  ;;  %v186_v40 = vld [vmem:[#allocation8 + $0xd0] sm:$0xff]  ;;  %v181_v41 = vld [vmem:[#allocation8 + $0xa8] sm:$0xff] }
  0x70   :  { %258 = vmatprep.subr.mxu0 %v197_v25  ;;  %371 = vmatprep.subr.mxu1 %v199_v26  ;;  %v183_v42 = vld [vmem:[#allocation8 + $0xb8] sm:$0xff]  ;;  %v180_v43 = vld [vmem:[#allocation8 + $0xa0] sm:$0xff]  ;;  %v182_v44 = vld [vmem:[#allocation8 + $0xb0] sm:$0xff] }
  0x71   :  { %259 = vmatpush1.msra.mxu0 %v196_v27  ;;  %372 = vmatpush1.msra.mxu1 %v198_v28  ;;  %v177_v45 = vld [vmem:[#allocation8 + $0x88] sm:$0xff]  ;;  %v179_v46 = vld [vmem:[#allocation8 + $0x98] sm:$0xff]  ;;  %v176_v47 = vld [vmem:[#allocation8 + $0x80] sm:$0xff] }
  0x72   :  { %260 = vmatprep.subr.mxu0 %v193_v29  ;;  %373 = vmatprep.subr.mxu1 %v195_v30  ;;  %v178_v48 = vld [vmem:[#allocation8 + $0x90] sm:$0xff]  ;;  %v173_v49 = vld [vmem:[#allocation8 + $0x68] sm:$0xff]  ;;  %v175_v50 = vld [vmem:[#allocation8 + $0x78] sm:$0xff] }
  0x73   :  { %261 = vmatpush1.msra.mxu0 %v192_v31  ;;  %374 = vmatpush1.msra.mxu1 %v194_v32  ;;  %v172_v51 = vld [vmem:[#allocation8 + $0x60] sm:$0xff]  ;;  %v174_v52 = vld [vmem:[#allocation8 + $0x70] sm:$0xff]  ;;  %v169_v53 = vld [vmem:[#allocation8 + $0x48] sm:$0xff] }
  0x74   :  { %262 = vmatprep.subr.mxu0 %v189_v33  ;;  %375 = vmatprep.subr.mxu1 %v191_v34  ;;  %v171_v54 = vld [vmem:[#allocation8 + $0x58] sm:$0xff]  ;;  %v168_v55 = vld [vmem:[#allocation8 + $0x40] sm:$0xff]  ;;  %v170_v56 = vld [vmem:[#allocation8 + $0x50] sm:$0xff] }
  0x75   :  { %263 = vmatpush1.msra.mxu0 %v188_v35  ;;  %376 = vmatpush1.msra.mxu1 %v190_v36  ;;  %v165_v57 = vld [vmem:[#allocation8 + $0x28] sm:$0xff]  ;;  %v167_v58 = vld [vmem:[#allocation8 + $0x38] sm:$0xff]  ;;  %v164_v59 = vld [vmem:[#allocation8 + $0x20] sm:$0xff] }
  0x76   :  { %264 = vmatprep.subr.mxu0 %v185_v37  ;;  %377 = vmatprep.subr.mxu1 %v187_v38  ;;  %v166_v60 = vld [vmem:[#allocation8 + $0x30] sm:$0xff]  ;;  %v161_v61 = vld [vmem:[#allocation8 + $0x8] sm:$0xff]  ;;  %v163_v62 = vld [vmem:[#allocation8 + $0x18] sm:$0xff] }
  0x77   :  { %265 = vmatpush1.msra.mxu0 %v184_v39  ;;  %378 = vmatpush1.msra.mxu1 %v186_v40  ;;  %v160_v63 = vld [vmem:[#allocation8] sm:$0xff]  ;;  %v162_v1 = vld [vmem:[#allocation8 + $0x10] sm:$0xff]  ;;  %v153_v11 = vld [vmem:[#allocation5 + $0x8] sm:$0xff] }
  0x78   :  { %266 = vmatprep.subr.mxu0 %v181_v41  ;;  %379 = vmatprep.subr.mxu1 %v183_v42  ;;  %v152_v2 = vld [vmem:[#allocation5] sm:$0xff]  ;;  %v3328_v3 = vld [vmem:[#allocation11 + $0x1e8] sm:$0xff]  ;;  %v3334_v6 = vld [vmem:[#allocation11 + $0x1f0] sm:$0xff] }
  0x79   :  { %267 = vmatpush1.msra.mxu0 %v180_v43  ;;  %380 = vmatpush1.msra.mxu1 %v182_v44  ;;  %4470 = vst [vmem:[#allocation26_spill] sm:$0xff] %v3328_v3  ;;  %v3330_v4 = vld [vmem:[#allocation11 + $0x1f8] sm:$0xff]  ;;  %v3332_v5 = vld [vmem:[#allocation11 + $0x1e0] sm:$0xff]  ;;  %v3336_v7 = vld [vmem:[#allocation11 + $0x1c8] sm:$0xff] }
  0x7a   :  { %268 = vmatprep.subr.mxu0 %v177_v45  ;;  %381 = vmatprep.subr.mxu1 %v179_v46  ;;  %4471 = vst [vmem:[#allocation27_spill] sm:$0xff] %v3330_v4  ;;  %v3338_v8 = vld [vmem:[#allocation11 + $0x1d8] sm:$0xff]  ;;  %v3344_v9 = vld [vmem:[#allocation11 + $0x1c0] sm:$0xff]  ;;  %v3346_v10 = vld [vmem:[#allocation11 + $0x1d0] sm:$0xff] }
  0x7b   :  { %269 = vmatpush1.msra.mxu0 %v176_v47  ;;  %382 = vmatpush1.msra.mxu1 %v178_v48  ;;  %v3352_v12 = vld [vmem:[#allocation11 + $0x1a8] sm:$0xff]  ;;  %v3354_v13 = vld [vmem:[#allocation11 + $0x1b8] sm:$0xff]  ;;  %v3358_v14 = vld [vmem:[#allocation11 + $0x1a0] sm:$0xff] }
  0x7c   :  { %270 = vmatprep.subr.mxu0 %v173_v49  ;;  %383 = vmatprep.subr.mxu1 %v175_v50  ;;  %v3360_v15 = vld [vmem:[#allocation11 + $0x1b0] sm:$0xff]  ;;  %v3362_v16 = vld [vmem:[#allocation11 + $0x188] sm:$0xff]  ;;  %v3364_v17 = vld [vmem:[#allocation11 + $0x198] sm:$0xff] }
  0x7d   :  { %271 = vmatpush1.msra.mxu0 %v172_v51  ;;  %384 = vmatpush1.msra.mxu1 %v174_v52  ;;  %v3370_v18 = vld [vmem:[#allocation11 + $0x180] sm:$0xff]  ;;  %v3372_v19 = vld [vmem:[#allocation11 + $0x190] sm:$0xff]  ;;  %v3378_v21 = vld [vmem:[#allocation11 + $0x168] sm:$0xff] }
  0x7e   :  { %272 = vmatprep.subr.mxu0 %v169_v53  ;;  %385 = vmatprep.subr.mxu1 %v171_v54  ;;  %v154_v20 = vld [vmem:[#allocation5 + $0x10] sm:$0xff]  ;;  %v3380_v22 = vld [vmem:[#allocation11 + $0x178] sm:$0xff]  ;;  %v3384_v23 = vld [vmem:[#allocation11 + $0x160] sm:$0xff] }
  0x7f   :  { %273 = vmatpush1.msra.mxu0 %v168_v55  ;;  %386 = vmatpush1.msra.mxu1 %v170_v56  ;;  %v3386_v24 = vld [vmem:[#allocation11 + $0x170] sm:$0xff]  ;;  %v3388_v25 = vld [vmem:[#allocation11 + $0x148] sm:$0xff]  ;;  %v3390_v26 = vld [vmem:[#allocation11 + $0x158] sm:$0xff] }
  0x80   :  { %274 = vmatprep.subr.mxu0 %v165_v57  ;;  %387 = vmatprep.subr.mxu1 %v167_v58  ;;  %v3396_v27 = vld [vmem:[#allocation11 + $0x140] sm:$0xff]  ;;  %v3398_v28 = vld [vmem:[#allocation11 + $0x150] sm:$0xff]  ;;  %v3404_v30 = vld [vmem:[#allocation11 + $0x128] sm:$0xff] }
  0x81   :  { %275 = vmatpush1.msra.mxu0 %v164_v59  ;;  %388 = vmatpush1.msra.mxu1 %v166_v60  ;;  %v155_v29 = vld [vmem:[#allocation5 + $0x18] sm:$0xff]  ;;  %v3410_v32 = vld [vmem:[#allocation11 + $0x120] sm:$0xff]  ;;  %v3414_v34 = vld [vmem:[#allocation11 + $0x108] sm:$0xff] }
  0x82   :  { %276 = vmatprep.subr.mxu0 %v161_v61  ;;  %389 = vmatprep.subr.mxu1 %v163_v62  ;;  %v3406_v31 = vld [vmem:[#allocation11 + $0x138] sm:$0xff]  ;;  %v3412_v33 = vld [vmem:[#allocation11 + $0x130] sm:$0xff]  ;;  %v3422_v36 = vld [vmem:[#allocation11 + $0x100] sm:$0xff] }
  0x83   :  { %277 = vmatpush1.msra.mxu0 %v160_v63  ;;  %390 = vmatpush1.msra.mxu1 %v162_v1  ;;  %v3416_v35 = vld [vmem:[#allocation11 + $0x118] sm:$0xff]  ;;  %v3424_v37 = vld [vmem:[#allocation11 + $0x110] sm:$0xff]  ;;  %v3430_v39 = vld [vmem:[#allocation11 + $0xe8] sm:$0xff] }
  0x84   :  { %311 = vmatmul.mubr.f32.vlgmr.msra.gmra.mxu0 %v152_v2  ;;  %424 = vmatmul.mubr.f32.vlgmr.msra.gmra.mxu1 %v152_v2  ;;  %v156_v38 = vld [vmem:[#allocation5 + $0x20] sm:$0xff]  ;;  %v3438_v42 = vld [vmem:[#allocation11 + $0xf0] sm:$0xff]  ;;  %v3440_v43 = vld [vmem:[#allocation11 + $0xc8] sm:$0xff] }
  0x85   :  { %579 = vmatprep.subr.mxu0 %v3328_v3  ;;  %650 = vmatprep.subr.mxu1 %v3330_v4  ;;  %v3432_v40 = vld [vmem:[#allocation11 + $0xf8] sm:$0xff]  ;;  %v3436_v41 = vld [vmem:[#allocation11 + $0xe0] sm:$0xff]  ;;  %v3450_v46 = vld [vmem:[#allocation11 + $0xd0] sm:$0xff] }
  0x86   :  { %580 = vmatpush1.msra.mxu0 %v3332_v5  ;;  %651 = vmatpush1.msra.mxu1 %v3334_v6  ;;  %v3442_v44 = vld [vmem:[#allocation11 + $0xd8] sm:$0xff]  ;;  %v3448_v45 = vld [vmem:[#allocation11 + $0xc0] sm:$0xff]  ;;  %v3456_v48 = vld [vmem:[#allocation11 + $0xa8] sm:$0xff] }
  0x87   :  { %581 = vmatprep.subr.mxu0 %v3336_v7  ;;  %652 = vmatprep.subr.mxu1 %v3338_v8  ;;  %v157_v47 = vld [vmem:[#allocation5 + $0x28] sm:$0xff]  ;;  %v3458_v49 = vld [vmem:[#allocation11 + $0xb8] sm:$0xff]  ;;  %v3464_v51 = vld [vmem:[#allocation11 + $0xb0] sm:$0xff] }
  0x88   :  { %316 = vmatprep.mubr.f32.mxu0 %v4374_v0  ;;  %429 = vmatprep.mubr.f32.mxu1 %v4374_v0  ;;  %v3462_v50 = vld [vmem:[#allocation11 + $0xa0] sm:$0xff]  ;;  %4472 = vst [vmem:[#allocation28_spill] sm:$0xff] %v3464_v51  ;;  %v3466_v52 = vld [vmem:[#allocation11 + $0x88] sm:$0xff]  ;;  %v3468_v53 = vld [vmem:[#allocation11 + $0x98] sm:$0xff] }
  0x89   :  { %582 = vmatpush1.msra.mxu0 %v3344_v9  ;;  %653 = vmatpush1.msra.mxu1 %v3346_v10  ;;  %4473 = vst [vmem:[#allocation29_spill] sm:$0xff] %v3466_v52  ;;  %4474 = vst [vmem:[#allocation30_spill] sm:$0xff] %v3468_v53  ;;  %v3474_v54 = vld [vmem:[#allocation11 + $0x80] sm:$0xff]  ;;  %v3476_v55 = vld [vmem:[#allocation11 + $0x90] sm:$0xff] }
  0x8a   :  { %317 = vmatmul.mubr.f32.gmra.mxu0 %v153_v11  ;;  %430 = vmatmul.mubr.f32.gmra.mxu1 %v153_v11  ;;  %4475 = vst [vmem:[#allocation31_spill] sm:$0xff] %v3474_v54  ;;  %4476 = vst [vmem:[#allocation32_spill] sm:$0xff] %v3476_v55  ;;  %v158_v56 = vld [vmem:[#allocation5 + $0x30] sm:$0xff]  ;;  %v3484_v58 = vld [vmem:[#allocation11 + $0x78] sm:$0xff] }
  0x8b   :  { %583 = vmatprep.subr.mxu0 %v3352_v12  ;;  %654 = vmatprep.subr.mxu1 %v3354_v13  ;;  %v3482_v57 = vld [vmem:[#allocation11 + $0x68] sm:$0xff]  ;;  %4478 = vst [vmem:[#allocation34_spill] sm:$0xff] %v3484_v58  ;;  %v3488_v59 = vld [vmem:[#allocation11 + $0x60] sm:$0xff]  ;;  %v3490_v60 = vld [vmem:[#allocation11 + $0x70] sm:$0xff] }
  0x8c   :  { %584 = vmatpush1.msra.mxu0 %v3358_v14  ;;  %655 = vmatpush1.msra.mxu1 %v3360_v15  ;;  %4477 = vst [vmem:[#allocation33_spill] sm:$0xff] %v3482_v57  ;;  %4479 = vst [vmem:[#allocation35_spill] sm:$0xff] %v3488_v59  ;;  %v3492_v61 = vld [vmem:[#allocation11 + $0x48] sm:$0xff]  ;;  %v3494_v62 = vld [vmem:[#allocation11 + $0x58] sm:$0xff] }
  0x8d   :  { %585 = vmatprep.subr.mxu0 %v3362_v16  ;;  %656 = vmatprep.subr.mxu1 %v3364_v17  ;;  %4480 = vst [vmem:[#allocation36_spill] sm:$0xff] %v3490_v60  ;;  %4481 = vst [vmem:[#allocation37_spill] sm:$0xff] %v3492_v61  ;;  %v3500_v63 = vld [vmem:[#allocation11 + $0x40] sm:$0xff]  ;;  %v3502_v1 = vld [vmem:[#allocation11 + $0x50] sm:$0xff] }
  0x8e   :  { %322 = vmatprep.mubr.f32.mxu0 %v4374_v0  ;;  %435 = vmatprep.mubr.f32.mxu1 %v4374_v0  ;;  %4482 = vst [vmem:[#allocation38_spill] sm:$0xff] %v3494_v62  ;;  %4483 = vst [vmem:[#allocation39_spill] sm:$0xff] %v3500_v63  ;;  %v159_v2 = vld [vmem:[#allocation5 + $0x38] sm:$0xff]  ;;  %v3508_v11 = vld [vmem:[#allocation11 + $0x28] sm:$0xff] }
  0x8f   :  { %586 = vmatpush1.msra.mxu0 %v3370_v18  ;;  %657 = vmatpush1.msra.mxu1 %v3372_v19  ;;  %4484 = vst [vmem:[#allocation40_spill] sm:$0xff] %v3502_v1  ;;  %4485 = vst [vmem:[#allocation41_spill] sm:$0xff] %v3508_v11 }
  0x90   :  { %323 = vmatmul.mubr.f32.gmra.mxu0 %v154_v20  ;;  %436 = vmatmul.mubr.f32.gmra.mxu1 %v154_v20  ;;  %v3510_v20 = vld [vmem:[#allocation11 + $0x38] sm:$0xff] }
  0x91   :  { %587 = vmatprep.subr.mxu0 %v3378_v21  ;;  %658 = vmatprep.subr.mxu1 %v3380_v22  ;;  %4486 = vst [vmem:[#allocation42_spill] sm:$0xff] %v3510_v20 }
  0x92   :  { %588 = vmatpush1.msra.mxu0 %v3384_v23  ;;  %659 = vmatpush1.msra.mxu1 %v3386_v24 }
  0x93   :  { %589 = vmatprep.subr.mxu0 %v3388_v25  ;;  %660 = vmatprep.subr.mxu1 %v3390_v26 }
  0x94   :  { %328 = vmatprep.mubr.f32.mxu0 %v4374_v0  ;;  %441 = vmatprep.mubr.f32.mxu1 %v4374_v0 }
  0x95   :  { %590 = vmatpush1.msra.mxu0 %v3396_v27  ;;  %661 = vmatpush1.msra.mxu1 %v3398_v28 }
  0x96   :  { %329 = vmatmul.mubr.f32.gmra.mxu0 %v155_v29  ;;  %442 = vmatmul.mubr.f32.gmra.mxu1 %v155_v29  ;;  %v3514_v29 = vld [vmem:[#allocation11 + $0x20] sm:$0xff] }
  0x97   :  { %591 = vmatprep.subr.mxu0 %v3404_v30  ;;  %662 = vmatprep.subr.mxu1 %v3406_v31  ;;  %4487 = vst [vmem:[#allocation43_spill] sm:$0xff] %v3514_v29 }
  0x98   :  { %592 = vmatpush1.msra.mxu0 %v3410_v32  ;;  %663 = vmatpush1.msra.mxu1 %v3412_v33 }
  0x99   :  { %593 = vmatprep.subr.mxu0 %v3414_v34  ;;  %664 = vmatprep.subr.mxu1 %v3416_v35 }
  0x9a   :  { %334 = vmatprep.mubr.f32.mxu0 %v4374_v0  ;;  %447 = vmatprep.mubr.f32.mxu1 %v4374_v0 }
  0x9b   :  { %594 = vmatpush1.msra.mxu0 %v3422_v36  ;;  %665 = vmatpush1.msra.mxu1 %v3424_v37 }
  0x9c   :  { %335 = vmatmul.mubr.f32.gmra.mxu0 %v156_v38  ;;  %448 = vmatmul.mubr.f32.gmra.mxu1 %v156_v38  ;;  %v3516_v38 = vld [vmem:[#allocation11 + $0x30] sm:$0xff] }
  0x9d   :  { %595 = vmatprep.subr.mxu0 %v3430_v39  ;;  %666 = vmatprep.subr.mxu1 %v3432_v40  ;;  %4488 = vst [vmem:[#allocation44_spill] sm:$0xff] %v3516_v38 }
  0x9e   :  { %596 = vmatpush1.msra.mxu0 %v3436_v41  ;;  %667 = vmatpush1.msra.mxu1 %v3438_v42 }
  0x9f   :  { %597 = vmatprep.subr.mxu0 %v3440_v43  ;;  %668 = vmatprep.subr.mxu1 %v3442_v44 }
  0xa0   :  { %340 = vmatprep.mubr.f32.mxu0 %v4374_v0  ;;  %453 = vmatprep.mubr.f32.mxu1 %v4374_v0 }
  0xa1   :  { %598 = vmatpush1.msra.mxu0 %v3448_v45  ;;  %669 = vmatpush1.msra.mxu1 %v3450_v46 }
  0xa2   :  { %341 = vmatmul.mubr.f32.gmra.mxu0 %v157_v47  ;;  %454 = vmatmul.mubr.f32.gmra.mxu1 %v157_v47  ;;  %v3518_v47 = vld [vmem:[#allocation11 + $0x8] sm:$0xff] }
  0xa3   :  { %599 = vmatprep.subr.mxu0 %v3456_v48  ;;  %670 = vmatprep.subr.mxu1 %v3458_v49  ;;  %4489 = vst [vmem:[#allocation45_spill] sm:$0xff] %v3518_v47 }
  0xa4   :  { %600 = vmatpush1.msra.mxu0 %v3462_v50  ;;  %671 = vmatpush1.msra.mxu1 %v3464_v51 }
  0xa5   :  { %601 = vmatprep.subr.mxu0 %v3466_v52  ;;  %672 = vmatprep.subr.mxu1 %v3468_v53 }
  0xa6   :  { %346 = vmatprep.mubr.f32.mxu0 %v4374_v0  ;;  %459 = vmatprep.mubr.f32.mxu1 %v4374_v0 }
  0xa7   :  { %602 = vmatpush1.msra.mxu0 %v3474_v54  ;;  %673 = vmatpush1.msra.mxu1 %v3476_v55 }
  0xa8   :  { %347 = vmatmul.mubr.f32.gmra.mxu0 %v158_v56  ;;  %460 = vmatmul.mubr.f32.gmra.mxu1 %v158_v56  ;;  %v3520_v56 = vld [vmem:[#allocation11 + $0x18] sm:$0xff] }
  0xa9   :  { %603 = vmatprep.subr.mxu0 %v3482_v57  ;;  %674 = vmatprep.subr.mxu1 %v3484_v58  ;;  %4490 = vst [vmem:[#allocation46_spill] sm:$0xff] %v3520_v56 }
  0xaa   :  { %604 = vmatpush1.msra.mxu0 %v3488_v59  ;;  %675 = vmatpush1.msra.mxu1 %v3490_v60 }
  0xab   :  { %605 = vmatprep.subr.mxu0 %v3492_v61  ;;  %676 = vmatprep.subr.mxu1 %v3494_v62 }
  0xac   :  { %352 = vmatprep.mubr.f32.mxu0 %v4374_v0  ;;  %465 = vmatprep.mubr.f32.mxu1 %v4374_v0  ;;  %v3524_v0 = vld [vmem:[#allocation11] sm:$0xff] }
  0xad   :  { %606 = vmatpush1.msra.mxu0 %v3500_v63  ;;  %677 = vmatpush1.msra.mxu1 %v3502_v1  ;;  %4491 = vst [vmem:[#allocation47_spill] sm:$0xff] %v3524_v0  ;;  %v3528_v1 = vld [vmem:[#allocation11 + $0x10] sm:$0xff] }
  0xae   :  { %353 = vmatmul.mubr.f32.gmra.mxu0 %v159_v2  ;;  %466 = vmatmul.mubr.f32.gmra.mxu1 %v159_v2  ;;  %4492 = vst [vmem:[#allocation48_spill] sm:$0xff] %v3528_v1  ;;  %v4493_v2 = vmov 0.0  }
  0xaf   :  { %607 = vmatprep.subr.mxu0 %v3508_v11  ;;  %678 = vmatprep.subr.mxu1 %v3510_v20 }
  0xb0   :  { %608 = vmatpush1.msra.mxu0 %v3514_v29  ;;  %679 = vmatpush1.msra.mxu1 %v3516_v38 }
  0xb1   :  { %609 = vmatprep.subr.mxu0 %v3518_v47  ;;  %680 = vmatprep.subr.mxu1 %v3520_v56 }
  0xb2   :  { %610 = vmatpush1.msra.mxu0 %v3524_v0  ;;  %643 = vmatprep.mubr.f32.mxu0 %v4493_v2 }
  0xb3   :  { %681 = vmatpush1.msra.mxu1 %v3528_v1  ;;  %714 = vmatprep.mubr.f32.mxu1 %v4493_v2 }
  0xb4   :  { %644 = vmatmul.mubr.f32.vlgmr.msra.gmra.mxu0 %v4493_v2  ;;  %715 = vmatmul.mubr.f32.vlgmr.msra.gmra.mxu1 %v4493_v2 }
  0xb5   :  { %762 = vmatprep.subr.mxu0 %v3328_v3  ;;  %833 = vmatprep.subr.mxu1 %v3330_v4 }
  0xb6   :  { %763 = vmatpush1.msra.mxu0 %v3332_v5  ;;  %834 = vmatpush1.msra.mxu1 %v3334_v6 }
  0xb7   :  { %764 = vmatprep.subr.mxu0 %v3336_v7  ;;  %835 = vmatprep.subr.mxu1 %v3338_v8 }
  0xb8   :  { %765 = vmatpush1.msra.mxu0 %v3344_v9  ;;  %836 = vmatpush1.msra.mxu1 %v3346_v10 }
  0xb9   :  { %766 = vmatprep.subr.mxu0 %v3352_v12  ;;  %837 = vmatprep.subr.mxu1 %v3354_v13 }
  0xba   :  { %767 = vmatpush1.msra.mxu0 %v3358_v14  ;;  %838 = vmatpush1.msra.mxu1 %v3360_v15 }
  0xbb   :  { %768 = vmatprep.subr.mxu0 %v3362_v16  ;;  %839 = vmatprep.subr.mxu1 %v3364_v17 }
  0xbc   :  { %769 = vmatpush1.msra.mxu0 %v3370_v18  ;;  %840 = vmatpush1.msra.mxu1 %v3372_v19 }
  0xbd   :  { %770 = vmatprep.subr.mxu0 %v3378_v21  ;;  %841 = vmatprep.subr.mxu1 %v3380_v22 }
  0xbe   :  { %771 = vmatpush1.msra.mxu0 %v3384_v23  ;;  %842 = vmatpush1.msra.mxu1 %v3386_v24 }
  0xbf   :  { %772 = vmatprep.subr.mxu0 %v3388_v25  ;;  %843 = vmatprep.subr.mxu1 %v3390_v26 }
  0xc0   :  { %773 = vmatpush1.msra.mxu0 %v3396_v27  ;;  %844 = vmatpush1.msra.mxu1 %v3398_v28 }
  0xc1   :  { %774 = vmatprep.subr.mxu0 %v3404_v30  ;;  %845 = vmatprep.subr.mxu1 %v3406_v31 }
  0xc2   :  { %775 = vmatpush1.msra.mxu0 %v3410_v32  ;;  %846 = vmatpush1.msra.mxu1 %v3412_v33 }
  0xc3   :  { %776 = vmatprep.subr.mxu0 %v3414_v34  ;;  %847 = vmatprep.subr.mxu1 %v3416_v35 }
  0xc4   :  { %777 = vmatpush1.msra.mxu0 %v3422_v36  ;;  %848 = vmatpush1.msra.mxu1 %v3424_v37 }
  0xc5   :  { %778 = vmatprep.subr.mxu0 %v3430_v39  ;;  %849 = vmatprep.subr.mxu1 %v3432_v40 }
  0xc6   :  { %779 = vmatpush1.msra.mxu0 %v3436_v41  ;;  %850 = vmatpush1.msra.mxu1 %v3438_v42 }
  0xc7   :  { %780 = vmatprep.subr.mxu0 %v3440_v43  ;;  %851 = vmatprep.subr.mxu1 %v3442_v44 }
  0xc8   :  { %781 = vmatpush1.msra.mxu0 %v3448_v45  ;;  %852 = vmatpush1.msra.mxu1 %v3450_v46 }
  0xc9   :  { %782 = vmatprep.subr.mxu0 %v3456_v48  ;;  %853 = vmatprep.subr.mxu1 %v3458_v49 }
  0xca   :  { %783 = vmatpush1.msra.mxu0 %v3462_v50  ;;  %854 = vmatpush1.msra.mxu1 %v3464_v51 }
  0xcb   :  { %784 = vmatprep.subr.mxu0 %v3466_v52  ;;  %855 = vmatprep.subr.mxu1 %v3468_v53  ;;  %v4494_v52 = vld [vmem:[#allocation40_spill] sm:$0xff] }
  0xcc   :  { %785 = vmatpush1.msra.mxu0 %v3474_v54  ;;  %856 = vmatpush1.msra.mxu1 %v3476_v55 }
  0xcd   :  { %786 = vmatprep.subr.mxu0 %v3482_v57  ;;  %857 = vmatprep.subr.mxu1 %v3484_v58 }
  0xce   :  { %787 = vmatpush1.msra.mxu0 %v3488_v59  ;;  %858 = vmatpush1.msra.mxu1 %v3490_v60 }
  0xcf   :  { %788 = vmatprep.subr.mxu0 %v3492_v61  ;;  %859 = vmatprep.subr.mxu1 %v3494_v62 }
  0xd0   :  { %789 = vmatpush1.msra.mxu0 %v3500_v63  ;;  %860 = vmatpush1.msra.mxu1 %v4494_v52 }
  0xd1   :  { %790 = vmatprep.subr.mxu0 %v3508_v11  ;;  %861 = vmatprep.subr.mxu1 %v3510_v20  ;;  %v226_v20 = vlaneseq  ;;  %v224_v11 = vld [vmem:[#allocation10] sm:$0xf] }
  0xd2   :  { %791 = vmatpush1.msra.mxu0 %v3514_v29  ;;  %862 = vmatpush1.msra.mxu1 %v3516_v38 }
  0xd3   :  { %792 = vmatprep.subr.mxu0 %v3518_v47  ;;  %863 = vmatprep.subr.mxu1 %v3520_v56  ;;  %v3606_v29 = vshrl.u32 %v226_v20, 7 }
  0xd4   :  { %793 = vmatpush1.msra.mxu0 %v3524_v0  ;;  %826 = vmatprep.mubr.f32.mxu0 %v4493_v2 }
  0xd5   :  { %864 = vmatpush1.msra.mxu1 %v3528_v1  ;;  %897 = vmatprep.mubr.f32.mxu1 %v4493_v2  ;;  %4495 = vst [vmem:[#allocation49_spill] sm:$0xff] %v3606_v29  ;;  %v4413_v56 = vsub.s32 0, %v3606_v29  ;;  %v4416_v0 = vsub.s32 2, %v3606_v29 }
  0xd6   :  { %945 = vmatprep.subr.mxu0 %v3328_v3  ;;  %1016 = vmatprep.subr.mxu1 %v3330_v4  ;;  %v4423_v3 = vsub.s32 1, %v3606_v29  ;;  %v4424_v4 = vsub.s32 3, %v3606_v29 }
  0xd7   :  { %v229_v20 = vrot.slane %v224_v11, %v4413_v56  ;;  %v3624_v2 = vrot.slane %v224_v11, %v4416_v0 }
  0xd8   :  { %v233_v61 = vrot.slane %v224_v11, %v4423_v3  ;;  %v3630_v60 = vrot.slane %v224_v11, %v4424_v4 }
 0x144   :  { %v3608_v38 = vpop.f32.mrf.mxu0  ;;  %v3610_v47 = vpop.f32.mrf.mxu1 }
 0x146   :  { %v3614_v52 = vpop.f32.mrf.mxu0  ;;  %v3616_v1 = vpop.f32.mrf.mxu1 }
 0x14a   :  { %v318_v63 = vpop.f32.mrf.mxu0  ;;  %v431_v62 = vpop.f32.mrf.mxu1 }
 0x14b   :  { %v3632_v59 = vadd.f32 %v318_v63, %v229_v20  ;;  %v3635_v58 = vadd.f32 %v431_v62, %v3624_v2 }
 0x14c   :  { %v320_v57 = vpop.f32.mrf.mxu0  ;;  %v433_v56 = vpop.f32.mrf.mxu1 }
 0x14d   :  { %4496 = vst [vmem:[#allocation50_spill] sm:$0xff] %v3635_v58  ;;  %v3637_v55 = vadd.f32 %v320_v57, %v233_v61  ;;  %v3640_v0 = vadd.f32 %v433_v56, %v3630_v60 }
 0x14f   :  { %4497 = vst [vmem:[#allocation51_spill] sm:$0xff] %v3637_v55  ;;  %4498 = vst [vmem:[#allocation52_spill] sm:$0xff] %v3640_v0 }
 0x150   :  { %v324_v54 = vpop.f32.mrf.mxu0  ;;  %v437_v53 = vpop.f32.mrf.mxu1 }
 0x151   :  { %v3642_v51 = vadd.f32 %v324_v54, %v229_v20  ;;  %v3645_v3 = vadd.f32 %v437_v53, %v3624_v2 }
 0x152   :  { %v326_v11 = vpop.f32.mrf.mxu0  ;;  %v439_v63 = vpop.f32.mrf.mxu1 }
 0x153   :  { %4499 = vst [vmem:[#allocation53_spill] sm:$0xff] %v3642_v51  ;;  %4500 = vst [vmem:[#allocation54_spill] sm:$0xff] %v3645_v3  ;;  %v3647_v4 = vadd.f32 %v326_v11, %v233_v61  ;;  %v3650_v62 = vadd.f32 %v439_v63, %v3630_v60 }
 0x155   :  { %4501 = vst [vmem:[#allocation55_spill] sm:$0xff] %v3647_v4  ;;  %4502 = vst [vmem:[#allocation56_spill] sm:$0xff] %v3650_v62 }
 0x156   :  { %v330_v29 = vpop.f32.mrf.mxu0  ;;  %v443_v57 = vpop.f32.mrf.mxu1 }
 0x157   :  { %v3652_v58 = vadd.f32 %v330_v29, %v229_v20  ;;  %v3655_v56 = vadd.f32 %v443_v57, %v3624_v2 }
 0x158   :  { %v332_v0 = vpop.f32.mrf.mxu0  ;;  %v445_v54 = vpop.f32.mrf.mxu1 }
 0x159   :  { %4503 = vst [vmem:[#allocation57_spill] sm:$0xff] %v3652_v58  ;;  %4504 = vst [vmem:[#allocation58_spill] sm:$0xff] %v3655_v56  ;;  %v3657_v51 = vadd.f32 %v332_v0, %v233_v61  ;;  %v3660_v53 = vadd.f32 %v445_v54, %v3630_v60 }
 0x15b   :  { %4505 = vst [vmem:[#allocation59_spill] sm:$0xff] %v3657_v51  ;;  %4506 = vst [vmem:[#allocation60_spill] sm:$0xff] %v3660_v53 }
 0x15c   :  { %v336_v3 = vpop.f32.mrf.mxu0  ;;  %v449_v11 = vpop.f32.mrf.mxu1 }
 0x15d   :  { %v3662_v4 = vadd.f32 %v336_v3, %v229_v20  ;;  %v3665_v63 = vadd.f32 %v449_v11, %v3624_v2 }
 0x15e   :  { %v338_v62 = vpop.f32.mrf.mxu0  ;;  %v451_v29 = vpop.f32.mrf.mxu1 }
 0x15f   :  { %4507 = vst [vmem:[#allocation61_spill] sm:$0xff] %v3662_v4  ;;  %4508 = vst [vmem:[#allocation62_spill] sm:$0xff] %v3665_v63  ;;  %v3667_v58 = vadd.f32 %v338_v62, %v233_v61  ;;  %v3670_v57 = vadd.f32 %v451_v29, %v3630_v60 }
 0x161   :  { %4509 = vst [vmem:[#allocation63_spill] sm:$0xff] %v3667_v58  ;;  %4510 = vst [vmem:[#allocation64_spill] sm:$0xff] %v3670_v57 }
 0x162   :  { %v342_v56 = vpop.f32.mrf.mxu0  ;;  %v455_v0 = vpop.f32.mrf.mxu1 }
 0x163   :  { %v3672_v51 = vadd.f32 %v342_v56, %v229_v20  ;;  %v3675_v54 = vadd.f32 %v455_v0, %v3624_v2 }
 0x164   :  { %v344_v53 = vpop.f32.mrf.mxu0  ;;  %v457_v3 = vpop.f32.mrf.mxu1 }
 0x165   :  { %4511 = vst [vmem:[#allocation65_spill] sm:$0xff] %v3672_v51  ;;  %4512 = vst [vmem:[#allocation66_spill] sm:$0xff] %v3675_v54  ;;  %v3677_v4 = vadd.f32 %v344_v53, %v233_v61  ;;  %v3680_v11 = vadd.f32 %v457_v3, %v3630_v60 }
 0x167   :  { %4513 = vst [vmem:[#allocation67_spill] sm:$0xff] %v3677_v4  ;;  %4514 = vst [vmem:[#allocation68_spill] sm:$0xff] %v3680_v11 }
 0x168   :  { %v348_v63 = vpop.f32.mrf.mxu0  ;;  %v461_v62 = vpop.f32.mrf.mxu1 }
 0x169   :  { %v3682_v58 = vadd.f32 %v348_v63, %v229_v20  ;;  %v3685_v29 = vadd.f32 %v461_v62, %v3624_v2 }
 0x16a   :  { %v350_v57 = vpop.f32.mrf.mxu0  ;;  %v463_v56 = vpop.f32.mrf.mxu1 }
 0x16b   :  { %4515 = vst [vmem:[#allocation69_spill] sm:$0xff] %v3682_v58  ;;  %4516 = vst [vmem:[#allocation70_spill] sm:$0xff] %v3685_v29  ;;  %v3687_v51 = vadd.f32 %v350_v57, %v233_v61  ;;  %v3690_v0 = vadd.f32 %v463_v56, %v3630_v60  ;;  %v313_v57 = vadd.f32 %v3608_v38, %v229_v20 }
 0x16c   :  { %v315_v56 = vadd.f32 %v3614_v52, %v233_v61 }
 0x16d   :  { %4517 = vst [vmem:[#allocation71_spill] sm:$0xff] %v3687_v51  ;;  %4518 = vst [vmem:[#allocation72_spill] sm:$0xff] %v3690_v0 }
 0x16e   :  { %v354_v54 = vpop.f32.mrf.mxu0  ;;  %v467_v53 = vpop.f32.mrf.mxu1 }
 0x16f   :  { %v3692_v4 = vadd.f32 %v354_v54, %v229_v20  ;;  %v3695_v3 = vadd.f32 %v467_v53, %v3624_v2 }
 0x170   :  { %v356_v11 = vpop.f32.mrf.mxu0  ;;  %v469_v63 = vpop.f32.mrf.mxu1 }
 0x171   :  { %4519 = vst [vmem:[#allocation73_spill] sm:$0xff] %v3692_v4  ;;  %4520 = vst [vmem:[#allocation74_spill] sm:$0xff] %v3695_v3  ;;  %v3697_v58 = vadd.f32 %v356_v11, %v233_v61  ;;  %v3700_v62 = vadd.f32 %v469_v63, %v3630_v60  ;;  %v428_v11 = vadd.f32 %v3616_v1, %v3630_v60 }
 0x172   :  { %v426_v63 = vadd.f32 %v3610_v47, %v3624_v2  ;;  %v4523_v2 = vld [vmem:[#allocation28_spill] sm:$0xff] }
 0x173   :  { %4521 = vst [vmem:[#allocation75_spill] sm:$0xff] %v3697_v58  ;;  %4522 = vst [vmem:[#allocation76_spill] sm:$0xff] %v3700_v62 }
 0x174   :  { %v645_v29 = vpop.f32.mrf.mxu0  ;;  %v716_v4 = vpop.f32.mrf.mxu1 }
 0x175   :  { %v721_v0 = vadd.f32 %v645_v29, %v313_v57  ;;  %v723_v62 = vadd.f32 %v716_v4, %v426_v63  ;;  %v4528_v63 = vld [vmem:[#allocation33_spill] sm:$0xff] }
 0x176   :  { %v647_v51 = vpop.f32.mrf.mxu0  ;;  %v718_v3 = vpop.f32.mrf.mxu1 }
 0x177   :  { %v2601_v55 = vmul.f32 -1.442695, %v721_v0  ;;  %v722_v54 = vadd.f32 %v647_v51, %v315_v56  ;;  %v724_v58 = vadd.f32 %v718_v3, %v428_v11  ;;  %v4527_v11 = vld [vmem:[#allocation32_spill] sm:$0xff] }
 0x179   :  { %2802 = vpow2.f32 %v2601_v55  ;;  %v2602_v53 = vmul.f32 -1.442695, %v722_v54  ;;  %v2603_v38 = vmul.f32 -1.442695, %v724_v58  ;;  %v4525_v54 = vld [vmem:[#allocation30_spill] sm:$0xff] }
 0x17b   :  { %2804 = vpow2.f32 %v2602_v53  ;;  %v4526_v53 = vld [vmem:[#allocation31_spill] sm:$0xff] }
 0x17c   :  { %2806 = vpow2.f32 %v2603_v38  ;;  %v4529_v38 = vld [vmem:[#allocation34_spill] sm:$0xff] }
 0x186   :  { %v2803_v20 = vpop.eup %2802 }
 0x187   :  { %v728_v52 = vadd.f32 1.0, %v2803_v20  ;;  %v4530_v20 = vld [vmem:[#allocation35_spill] sm:$0xff] }
 0x188   :  { %v2805_v61 = vpop.eup %2804 }
 0x189   :  { %2808 = vrcp.f32 %v728_v52  ;;  %v734_v51 = vadd.f32 1.0, %v2805_v61  ;;  %v2807_v55 = vpop.eup %2806  ;;  %v4531_v52 = vld [vmem:[#allocation36_spill] sm:$0xff]  ;;  %v4532_v61 = vld [vmem:[#allocation37_spill] sm:$0xff] }
 0x18a   :  { %2810 = vtanh.f32 %v723_v62  ;;  %v741_v56 = vadd.f32 1.0, %v2807_v55  ;;  %v4524_v62 = vld [vmem:[#allocation29_spill] sm:$0xff]  ;;  %v4534_v55 = vld [vmem:[#allocation39_spill] sm:$0xff] }
 0x18b   :  { %2812 = vrcp.f32 %v734_v51  ;;  %v4533_v51 = vld [vmem:[#allocation38_spill] sm:$0xff] }
 0x18c   :  { %2814 = vrcp.f32 %v741_v56  ;;  %v4538_v56 = vld [vmem:[#allocation43_spill] sm:$0xff] }
 0x196   :  { %v2809_v29 = vpop.eup %2808 }
 0x197   :  { %v2811_v0 = vpop.eup %2810 }
 0x198   :  { %v2813_v57 = vpop.eup %2812  ;;  %v745_v1 = vmul.f32 %v2811_v0, %v2809_v29  ;;  %v4535_v29 = vld [vmem:[#allocation40_spill] sm:$0xff]  ;;  %v4536_v0 = vld [vmem:[#allocation41_spill] sm:$0xff] }
 0x199   :  { %v744_v60 = vmul.f32 0.0, %v2813_v57  ;;  %v2815_v4 = vpop.eup %2814  ;;  %v4537_v57 = vld [vmem:[#allocation42_spill] sm:$0xff] }
 0x19b   :  { %v3708_v3 = vadd.f32 %v745_v1, %v744_v60  ;;  %v4539_v60 = vld [vmem:[#allocation44_spill] sm:$0xff]  ;;  %v4540_v1 = vld [vmem:[#allocation45_spill] sm:$0xff] }
 0x19d   :  { %2816 = vtanh.f32 %v3708_v3 }
 0x1aa   :  { %v2817_v58 = vpop.eup %2816 }
 0x1ab   :  { %v748_v47 = vmul.f32 %v2817_v58, %v2815_v4  ;;  %v4541_v4 = vld [vmem:[#allocation46_spill] sm:$0xff]  ;;  %v4542_v58 = vld [vmem:[#allocation47_spill] sm:$0xff] }
 0x1ad   :  { %827 = vmatmul.mubr.f32.vlgmr.msra.gmra.mxu0 %v748_v47  ;;  %898 = vmatmul.mubr.f32.vlgmr.msra.gmra.mxu1 %v748_v47  ;;  %v4543_v47 = vmov 0.0  }
 0x1ae   :  { %946 = vmatpush1.msra.mxu0 %v3332_v5  ;;  %1017 = vmatpush1.msra.mxu1 %v3334_v6 }
 0x1af   :  { %947 = vmatprep.subr.mxu0 %v3336_v7  ;;  %1018 = vmatprep.subr.mxu1 %v3338_v8 }
 0x1b0   :  { %948 = vmatpush1.msra.mxu0 %v3344_v9  ;;  %1019 = vmatpush1.msra.mxu1 %v3346_v10 }
 0x1b1   :  { %949 = vmatprep.subr.mxu0 %v3352_v12  ;;  %1020 = vmatprep.subr.mxu1 %v3354_v13 }
 0x1b2   :  { %950 = vmatpush1.msra.mxu0 %v3358_v14  ;;  %1021 = vmatpush1.msra.mxu1 %v3360_v15 }
 0x1b3   :  { %951 = vmatprep.subr.mxu0 %v3362_v16  ;;  %1022 = vmatprep.subr.mxu1 %v3364_v17 }
 0x1b4   :  { %952 = vmatpush1.msra.mxu0 %v3370_v18  ;;  %1023 = vmatpush1.msra.mxu1 %v3372_v19 }
 0x1b5   :  { %953 = vmatprep.subr.mxu0 %v3378_v21  ;;  %1024 = vmatprep.subr.mxu1 %v3380_v22 }
 0x1b6   :  { %954 = vmatpush1.msra.mxu0 %v3384_v23  ;;  %1025 = vmatpush1.msra.mxu1 %v3386_v24 }
 0x1b7   :  { %955 = vmatprep.subr.mxu0 %v3388_v25  ;;  %1026 = vmatprep.subr.mxu1 %v3390_v26 }
 0x1b8   :  { %956 = vmatpush1.msra.mxu0 %v3396_v27  ;;  %1027 = vmatpush1.msra.mxu1 %v3398_v28 }
 0x1b9   :  { %957 = vmatprep.subr.mxu0 %v3404_v30  ;;  %1028 = vmatprep.subr.mxu1 %v3406_v31 }
 0x1ba   :  { %958 = vmatpush1.msra.mxu0 %v3410_v32  ;;  %1029 = vmatpush1.msra.mxu1 %v3412_v33 }
 0x1bb   :  { %959 = vmatprep.subr.mxu0 %v3414_v34  ;;  %1030 = vmatprep.subr.mxu1 %v3416_v35 }
 0x1bc   :  { %960 = vmatpush1.msra.mxu0 %v3422_v36  ;;  %1031 = vmatpush1.msra.mxu1 %v3424_v37 }
 0x1bd   :  { %961 = vmatprep.subr.mxu0 %v3430_v39  ;;  %1032 = vmatprep.subr.mxu1 %v3432_v40 }
 0x1be   :  { %962 = vmatpush1.msra.mxu0 %v3436_v41  ;;  %1033 = vmatpush1.msra.mxu1 %v3438_v42 }
 0x1bf   :  { %963 = vmatprep.subr.mxu0 %v3440_v43  ;;  %1034 = vmatprep.subr.mxu1 %v3442_v44 }
 0x1c0   :  { %964 = vmatpush1.msra.mxu0 %v3448_v45  ;;  %1035 = vmatpush1.msra.mxu1 %v3450_v46 }
 0x1c1   :  { %965 = vmatprep.subr.mxu0 %v3456_v48  ;;  %1036 = vmatprep.subr.mxu1 %v3458_v49 }
 0x1c2   :  { %966 = vmatpush1.msra.mxu0 %v3462_v50  ;;  %1037 = vmatpush1.msra.mxu1 %v4523_v2 }
 0x1c3   :  { %967 = vmatprep.subr.mxu0 %v4524_v62  ;;  %1038 = vmatprep.subr.mxu1 %v4525_v54 }
 0x1c4   :  { %968 = vmatpush1.msra.mxu0 %v4526_v53  ;;  %1039 = vmatpush1.msra.mxu1 %v4527_v11 }
 0x1c5   :  { %969 = vmatprep.subr.mxu0 %v4528_v63  ;;  %1040 = vmatprep.subr.mxu1 %v4529_v38  ;;  %v4549_v38 = vld [vmem:[#allocation50_spill] sm:$0xff] }
 0x1c6   :  { %970 = vmatpush1.msra.mxu0 %v4530_v20  ;;  %1041 = vmatpush1.msra.mxu1 %v4531_v52  ;;  %v4548_v20 = vld [vmem:[#allocation52_spill] sm:$0xff] }
 0x1c7   :  { %971 = vmatprep.subr.mxu0 %v4532_v61  ;;  %1042 = vmatprep.subr.mxu1 %v4533_v51  ;;  %v4544_v51 = vld [vmem:[#allocation48_spill] sm:$0xff] }
 0x1c8   :  { %972 = vmatpush1.msra.mxu0 %v4534_v55  ;;  %1043 = vmatpush1.msra.mxu1 %v4535_v29  ;;  %v4545_v29 = vld [vmem:[#allocation26_spill] sm:$0xff] }
 0x1c9   :  { %973 = vmatprep.subr.mxu0 %v4536_v0  ;;  %1044 = vmatprep.subr.mxu1 %v4537_v57  ;;  %v4546_v0 = vld [vmem:[#allocation27_spill] sm:$0xff] }
 0x1ca   :  { %974 = vmatpush1.msra.mxu0 %v4538_v56  ;;  %1045 = vmatpush1.msra.mxu1 %v4539_v60 }
 0x1cb   :  { %975 = vmatprep.subr.mxu0 %v4540_v1  ;;  %1046 = vmatprep.subr.mxu1 %v4541_v4  ;;  %v4547_v1 = vld [vmem:[#allocation51_spill] sm:$0xff] }
 0x1cc   :  { %976 = vmatpush1.msra.mxu0 %v4542_v58  ;;  %1009 = vmatprep.mubr.f32.mxu0 %v4543_v47 }
 0x1cd   :  { %1047 = vmatpush1.msra.mxu1 %v4544_v51  ;;  %1080 = vmatprep.mubr.f32.mxu1 %v4543_v47 }
 0x1ce   :  { %1128 = vmatprep.subr.mxu0 %v4545_v29  ;;  %1199 = vmatprep.subr.mxu1 %v4546_v0 }
 0x26d   :  { %v828_v57 = vpop.f32.mrf.mxu0  ;;  %v899_v4 = vpop.f32.mrf.mxu1 }
 0x26e   :  { %v904_v56 = vadd.f32 %v828_v57, %v3632_v59  ;;  %v906_v47 = vadd.f32 %v899_v4, %v4549_v38 }
 0x26f   :  { %v830_v60 = vpop.f32.mrf.mxu0  ;;  %v901_v52 = vpop.f32.mrf.mxu1 }
 0x270   :  { %v2604_v55 = vmul.f32 -1.442695, %v904_v56  ;;  %v905_v61 = vadd.f32 %v830_v60, %v4547_v1  ;;  %v907_v51 = vadd.f32 %v901_v52, %v4548_v20 }
 0x272   :  { %2818 = vpow2.f32 %v2604_v55  ;;  %v2605_v58 = vmul.f32 -1.442695, %v905_v61  ;;  %v2606_v63 = vmul.f32 -1.442695, %v907_v51 }
 0x274   :  { %2820 = vpow2.f32 %v2605_v58 }
 0x275   :  { %2822 = vtanh.f32 %v906_v47 }
 0x276   :  { %2824 = vpow2.f32 %v2606_v63 }
 0x27f   :  { %v2819_v29 = vpop.eup %2818 }
 0x280   :  { %v911_v11 = vadd.f32 1.0, %v2819_v29 }
 0x281   :  { %v2821_v0 = vpop.eup %2820 }
 0x282   :  { %2826 = vrcp.f32 %v911_v11  ;;  %v917_v59 = vadd.f32 1.0, %v2821_v0  ;;  %v2823_v57 = vpop.eup %2822  ;;  %v4571_v11 = vld [vmem:[#allocation55_spill] sm:$0xff]  ;;  %v4572_v0 = vld [vmem:[#allocation56_spill] sm:$0xff] }
 0x283   :  { %v2825_v56 = vpop.eup %2824 }
 0x284   :  { %2828 = vrcp.f32 %v917_v59  ;;  %v924_v1 = vadd.f32 1.0, %v2825_v56 }
 0x286   :  { %2830 = vrcp.f32 %v924_v1 }
 0x28f   :  { %v2827_v55 = vpop.eup %2826 }
 0x290   :  { %v928_v60 = vmul.f32 %v2827_v55, %v2823_v57  ;;  %v4573_v57 = vld [vmem:[#allocation54_spill] sm:$0xff] }
 0x291   :  { %v2829_v61 = vpop.eup %2828 }
 0x292   :  { %v927_v58 = vmul.f32 %v2829_v61, %v3708_v3 }
 0x293   :  { %v2831_v38 = vpop.eup %2830 }
 0x294   :  { %v3782_v20 = vadd.f32 %v928_v60, %v927_v58 }
 0x296   :  { %2832 = vtanh.f32 %v3782_v20 }
 0x2a3   :  { %v2833_v52 = vpop.eup %2832 }
 0x2a4   :  { %v931_v51 = vmul.f32 %v2833_v52, %v2831_v38 }
 0x2a6   :  { %1010 = vmatmul.mubr.f32.vlgmr.msra.gmra.mxu0 %v931_v51  ;;  %1081 = vmatmul.mubr.f32.vlgmr.msra.gmra.mxu1 %v931_v51 }
 0x2a7   :  { %1129 = vmatpush1.msra.mxu0 %v3332_v5  ;;  %1200 = vmatpush1.msra.mxu1 %v3334_v6  ;;  %v4550_v5 = vld [vmem:[#allocation32_spill] sm:$0xff]  ;;  %v4551_v6 = vld [vmem:[#allocation33_spill] sm:$0xff] }
 0x2a8   :  { %1130 = vmatprep.subr.mxu0 %v3336_v7  ;;  %1201 = vmatprep.subr.mxu1 %v3338_v8  ;;  %v4552_v7 = vld [vmem:[#allocation34_spill] sm:$0xff]  ;;  %v4553_v8 = vld [vmem:[#allocation35_spill] sm:$0xff] }
 0x2a9   :  { %1131 = vmatpush1.msra.mxu0 %v3344_v9  ;;  %1202 = vmatpush1.msra.mxu1 %v3346_v10  ;;  %v4554_v9 = vld [vmem:[#allocation36_spill] sm:$0xff]  ;;  %v4555_v10 = vld [vmem:[#allocation37_spill] sm:$0xff] }
 0x2aa   :  { %1132 = vmatprep.subr.mxu0 %v3352_v12  ;;  %1203 = vmatprep.subr.mxu1 %v3354_v13  ;;  %v4556_v12 = vld [vmem:[#allocation38_spill] sm:$0xff]  ;;  %v4557_v13 = vld [vmem:[#allocation39_spill] sm:$0xff] }
 0x2ab   :  { %1133 = vmatpush1.msra.mxu0 %v3358_v14  ;;  %1204 = vmatpush1.msra.mxu1 %v3360_v15  ;;  %v4558_v14 = vld [vmem:[#allocation40_spill] sm:$0xff]  ;;  %v4559_v15 = vld [vmem:[#allocation41_spill] sm:$0xff] }
 0x2ac   :  { %1134 = vmatprep.subr.mxu0 %v3362_v16  ;;  %1205 = vmatprep.subr.mxu1 %v3364_v17  ;;  %v4560_v16 = vld [vmem:[#allocation42_spill] sm:$0xff]  ;;  %v4561_v17 = vld [vmem:[#allocation43_spill] sm:$0xff] }
 0x2ad   :  { %1135 = vmatpush1.msra.mxu0 %v3370_v18  ;;  %1206 = vmatpush1.msra.mxu1 %v3372_v19  ;;  %v4562_v18 = vld [vmem:[#allocation44_spill] sm:$0xff]  ;;  %v4563_v19 = vld [vmem:[#allocation45_spill] sm:$0xff] }
 0x2ae   :  { %1136 = vmatprep.subr.mxu0 %v3378_v21  ;;  %1207 = vmatprep.subr.mxu1 %v3380_v22  ;;  %v4564_v21 = vld [vmem:[#allocation46_spill] sm:$0xff]  ;;  %v4565_v22 = vld [vmem:[#allocation47_spill] sm:$0xff] }
 0x2af   :  { %1137 = vmatpush1.msra.mxu0 %v3384_v23  ;;  %1208 = vmatpush1.msra.mxu1 %v3386_v24  ;;  %v4566_v23 = vmov 0.0   ;;  %v4567_v24 = vld [vmem:[#allocation48_spill] sm:$0xff] }
 0x2b0   :  { %1138 = vmatprep.subr.mxu0 %v3388_v25  ;;  %1209 = vmatprep.subr.mxu1 %v3390_v26  ;;  %v3849_v25 = vld [vmem:[#allocation11 + $0x1e8] sm:$0xff]  ;;  %v3852_v26 = vld [vmem:[#allocation11 + $0x1f8] sm:$0xff] }
 0x2b1   :  { %1139 = vmatpush1.msra.mxu0 %v3396_v27  ;;  %1210 = vmatpush1.msra.mxu1 %v3398_v28  ;;  %4568 = vst [vmem:[#allocation28_spill] sm:$0xff] %v3849_v25  ;;  %4569 = vst [vmem:[#allocation29_spill] sm:$0xff] %v3852_v26  ;;  %v4570_v28 = vld [vmem:[#allocation53_spill] sm:$0xff] }
 0x2b2   :  { %1140 = vmatprep.subr.mxu0 %v3404_v30  ;;  %1211 = vmatprep.subr.mxu1 %v3406_v31 }
 0x2b3   :  { %1141 = vmatpush1.msra.mxu0 %v3410_v32  ;;  %1212 = vmatpush1.msra.mxu1 %v3412_v33 }
 0x2b4   :  { %1142 = vmatprep.subr.mxu0 %v3414_v34  ;;  %1213 = vmatprep.subr.mxu1 %v3416_v35 }
 0x2b5   :  { %1143 = vmatpush1.msra.mxu0 %v3422_v36  ;;  %1214 = vmatpush1.msra.mxu1 %v3424_v37 }
 0x2b6   :  { %1144 = vmatprep.subr.mxu0 %v3430_v39  ;;  %1215 = vmatprep.subr.mxu1 %v3432_v40 }
 0x2b7   :  { %1145 = vmatpush1.msra.mxu0 %v3436_v41  ;;  %1216 = vmatpush1.msra.mxu1 %v3438_v42 }
 0x2b8   :  { %1146 = vmatprep.subr.mxu0 %v3440_v43  ;;  %1217 = vmatprep.subr.mxu1 %v3442_v44 }
 0x2b9   :  { %1147 = vmatpush1.msra.mxu0 %v3448_v45  ;;  %1218 = vmatpush1.msra.mxu1 %v3450_v46 }
 0x2ba   :  { %1148 = vmatprep.subr.mxu0 %v3456_v48  ;;  %1219 = vmatprep.subr.mxu1 %v3458_v49 }
 0x2bb   :  { %1149 = vmatpush1.msra.mxu0 %v3462_v50  ;;  %1220 = vmatpush1.msra.mxu1 %v4523_v2 }
 0x2bc   :  { %1150 = vmatprep.subr.mxu0 %v4524_v62  ;;  %1221 = vmatprep.subr.mxu1 %v4525_v54 }
 0x2bd   :  { %1151 = vmatpush1.msra.mxu0 %v4526_v53  ;;  %1222 = vmatpush1.msra.mxu1 %v4550_v5 }
 0x2be   :  { %1152 = vmatprep.subr.mxu0 %v4551_v6  ;;  %1223 = vmatprep.subr.mxu1 %v4552_v7 }
 0x2bf   :  { %1153 = vmatpush1.msra.mxu0 %v4553_v8  ;;  %1224 = vmatpush1.msra.mxu1 %v4554_v9 }
 0x2c0   :  { %1154 = vmatprep.subr.mxu0 %v4555_v10  ;;  %1225 = vmatprep.subr.mxu1 %v4556_v12 }
 0x2c1   :  { %1155 = vmatpush1.msra.mxu0 %v4557_v13  ;;  %1226 = vmatpush1.msra.mxu1 %v4558_v14 }
 0x2c2   :  { %1156 = vmatprep.subr.mxu0 %v4559_v15  ;;  %1227 = vmatprep.subr.mxu1 %v4560_v16 }
 0x2c3   :  { %1157 = vmatpush1.msra.mxu0 %v4561_v17  ;;  %1228 = vmatpush1.msra.mxu1 %v4562_v18 }
 0x2c4   :  { %1158 = vmatprep.subr.mxu0 %v4563_v19  ;;  %1229 = vmatprep.subr.mxu1 %v4564_v21 }
 0x2c5   :  { %1159 = vmatpush1.msra.mxu0 %v4565_v22  ;;  %1192 = vmatprep.mubr.f32.mxu0 %v4566_v23 }
 0x2c6   :  { %1230 = vmatpush1.msra.mxu1 %v4567_v24  ;;  %1263 = vmatprep.mubr.f32.mxu1 %v4566_v23 }
 0x2c7   :  { %1311 = vmatprep.subr.mxu0 %v3849_v25  ;;  %1382 = vmatprep.subr.mxu1 %v3852_v26 }
 0x366   :  { %v1011_v27 = vpop.f32.mrf.mxu0  ;;  %v1082_v4 = vpop.f32.mrf.mxu1 }
 0x367   :  { %v1087_v30 = vadd.f32 %v1011_v27, %v4570_v28  ;;  %v1089_v56 = vadd.f32 %v1082_v4, %v4573_v57  ;;  %v3878_v57 = vld [vmem:[#allocation11 + $0x1d0] sm:$0xff] }
 0x368   :  { %v1013_v31 = vpop.f32.mrf.mxu0  ;;  %v1084_v29 = vpop.f32.mrf.mxu1 }
 0x369   :  { %v2607_v3 = vmul.f32 -1.442695, %v1087_v30  ;;  %v1088_v63 = vadd.f32 %v1013_v31, %v4571_v11  ;;  %v1090_v59 = vadd.f32 %v1084_v29, %v4572_v0  ;;  %v3866_v29 = vld [vmem:[#allocation11 + $0x1f0] sm:$0xff]  ;;  %v3869_v0 = vld [vmem:[#allocation11 + $0x1c8] sm:$0xff] }
 0x36b   :  { %2834 = vpow2.f32 %v2607_v3  ;;  %v2608_v47 = vmul.f32 -1.442695, %v1088_v63  ;;  %v2609_v55 = vmul.f32 -1.442695, %v1090_v59  ;;  %v3875_v59 = vld [vmem:[#allocation11 + $0x1c0] sm:$0xff] }
 0x36d   :  { %2836 = vpow2.f32 %v2608_v47  ;;  %v3863_v47 = vld [vmem:[#allocation11 + $0x1e0] sm:$0xff] }
 0x36e   :  { %2838 = vtanh.f32 %v1089_v56  ;;  %v3881_v56 = vld [vmem:[#allocation11 + $0x1a8] sm:$0xff] }
 0x36f   :  { %2840 = vpow2.f32 %v2609_v55  ;;  %v3884_v55 = vld [vmem:[#allocation11 + $0x1b8] sm:$0xff] }
 0x378   :  { %v2835_v60 = vpop.eup %2834 }
 0x379   :  { %v1094_v61 = vadd.f32 1.0, %v2835_v60  ;;  %v3887_v60 = vld [vmem:[#allocation11 + $0x1a0] sm:$0xff] }
 0x37a   :  { %v2837_v1 = vpop.eup %2836 }
 0x37b   :  { %2842 = vrcp.f32 %v1094_v61  ;;  %v1100_v58 = vadd.f32 1.0, %v2837_v1  ;;  %v2839_v38 = vpop.eup %2838  ;;  %v3890_v61 = vld [vmem:[#allocation11 + $0x1b0] sm:$0xff]  ;;  %v3893_v1 = vld [vmem:[#allocation11 + $0x188] sm:$0xff] }
 0x37c   :  { %v2841_v52 = vpop.eup %2840 }
 0x37d   :  { %2844 = vrcp.f32 %v1100_v58  ;;  %v1107_v30 = vadd.f32 1.0, %v2841_v52  ;;  %v3896_v58 = vld [vmem:[#allocation11 + $0x198] sm:$0xff]  ;;  %v3902_v52 = vld [vmem:[#allocation11 + $0x190] sm:$0xff] }
 0x37f   :  { %2846 = vrcp.f32 %v1107_v30  ;;  %v3914_v30 = vld [vmem:[#allocation11 + $0x170] sm:$0xff] }
 0x380   :  { %4575 = vst [vmem:[#allocation31_spill] sm:$0xff] %v3914_v30 }
 0x388   :  { %v2843_v51 = vpop.eup %2842 }
 0x389   :  { %v1111_v27 = vmul.f32 %v2843_v51, %v2839_v38  ;;  %v3899_v38 = vld [vmem:[#allocation11 + $0x180] sm:$0xff]  ;;  %v3905_v51 = vld [vmem:[#allocation11 + $0x168] sm:$0xff] }
 0x38a   :  { %v2845_v28 = vpop.eup %2844 }
 0x38b   :  { %v1110_v31 = vmul.f32 %v2845_v28, %v3782_v20  ;;  %v3872_v20 = vld [vmem:[#allocation11 + $0x1d8] sm:$0xff]  ;;  %v3911_v28 = vld [vmem:[#allocation11 + $0x160] sm:$0xff] }
 0x38c   :  { %v2847_v11 = vpop.eup %2846  ;;  %4574 = vst [vmem:[#allocation30_spill] sm:$0xff] %v3911_v28 }
 0x38d   :  { %v3860_v3 = vadd.f32 %v1111_v27, %v1110_v31  ;;  %v3908_v27 = vld [vmem:[#allocation11 + $0x178] sm:$0xff]  ;;  %v3917_v31 = vld [vmem:[#allocation11 + $0x148] sm:$0xff] }
 0x38f   :  { %2848 = vtanh.f32 %v3860_v3 }
 0x39c   :  { %v2849_v63 = vpop.eup %2848 }
 0x39d   :  { %v1114_v4 = vmul.f32 %v2849_v63, %v2847_v11  ;;  %v3920_v11 = vld [vmem:[#allocation11 + $0x158] sm:$0xff]  ;;  %v3923_v63 = vld [vmem:[#allocation11 + $0x140] sm:$0xff] }
 0x39f   :  { %1193 = vmatmul.mubr.f32.vlgmr.msra.gmra.mxu0 %v1114_v4  ;;  %1264 = vmatmul.mubr.f32.vlgmr.msra.gmra.mxu1 %v1114_v4  ;;  %v3926_v4 = vld [vmem:[#allocation11 + $0x150] sm:$0xff] }
 0x3a0   :  { %1312 = vmatpush1.msra.mxu0 %v3863_v47  ;;  %1383 = vmatpush1.msra.mxu1 %v3866_v29 }
 0x3a1   :  { %1313 = vmatprep.subr.mxu0 %v3869_v0  ;;  %1384 = vmatprep.subr.mxu1 %v3872_v20 }
 0x3a2   :  { %1314 = vmatpush1.msra.mxu0 %v3875_v59  ;;  %1385 = vmatpush1.msra.mxu1 %v3878_v57 }
 0x3a3   :  { %1315 = vmatprep.subr.mxu0 %v3881_v56  ;;  %1386 = vmatprep.subr.mxu1 %v3884_v55 }
 0x3a4   :  { %1316 = vmatpush1.msra.mxu0 %v3887_v60  ;;  %1387 = vmatpush1.msra.mxu1 %v3890_v61 }
 0x3a5   :  { %1317 = vmatprep.subr.mxu0 %v3893_v1  ;;  %1388 = vmatprep.subr.mxu1 %v3896_v58 }
 0x3a6   :  { %1318 = vmatpush1.msra.mxu0 %v3899_v38  ;;  %1389 = vmatpush1.msra.mxu1 %v3902_v52 }
 0x3a7   :  { %1319 = vmatprep.subr.mxu0 %v3905_v51  ;;  %1390 = vmatprep.subr.mxu1 %v3908_v27 }
 0x3a8   :  { %1320 = vmatpush1.msra.mxu0 %v3911_v28  ;;  %1391 = vmatpush1.msra.mxu1 %v3914_v30  ;;  %v3929_v28 = vld [vmem:[#allocation11 + $0x128] sm:$0xff]  ;;  %v3932_v30 = vld [vmem:[#allocation11 + $0x138] sm:$0xff] }
 0x3a9   :  { %1321 = vmatprep.subr.mxu0 %v3917_v31  ;;  %1392 = vmatprep.subr.mxu1 %v3920_v11 }
 0x3aa   :  { %1322 = vmatpush1.msra.mxu0 %v3923_v63  ;;  %1393 = vmatpush1.msra.mxu1 %v3926_v4 }
 0x3ab   :  { %1323 = vmatprep.subr.mxu0 %v3929_v28  ;;  %1394 = vmatprep.subr.mxu1 %v3932_v30 }
 0x3ac   :  { %1324 = vmatpush1.msra.mxu0 %v3410_v32  ;;  %1395 = vmatpush1.msra.mxu1 %v3412_v33  ;;  %v4576_v33 = vld [vmem:[#allocation57_spill] sm:$0xff] }
 0x3ad   :  { %1325 = vmatprep.subr.mxu0 %v3414_v34  ;;  %1396 = vmatprep.subr.mxu1 %v3416_v35 }
 0x3ae   :  { %1326 = vmatpush1.msra.mxu0 %v3422_v36  ;;  %1397 = vmatpush1.msra.mxu1 %v3424_v37  ;;  %v4577_v37 = vld [vmem:[#allocation59_spill] sm:$0xff] }
 0x3af   :  { %1327 = vmatprep.subr.mxu0 %v3430_v39  ;;  %1398 = vmatprep.subr.mxu1 %v3432_v40 }
 0x3b0   :  { %1328 = vmatpush1.msra.mxu0 %v3436_v41  ;;  %1399 = vmatpush1.msra.mxu1 %v3438_v42 }
 0x3b1   :  { %1329 = vmatprep.subr.mxu0 %v3440_v43  ;;  %1400 = vmatprep.subr.mxu1 %v3442_v44  ;;  %v4578_v43 = vld [vmem:[#allocation60_spill] sm:$0xff] }
 0x3b2   :  { %1330 = vmatpush1.msra.mxu0 %v3448_v45  ;;  %1401 = vmatpush1.msra.mxu1 %v3450_v46  ;;  %v4579_v45 = vld [vmem:[#allocation58_spill] sm:$0xff] }
 0x3b3   :  { %1331 = vmatprep.subr.mxu0 %v3456_v48  ;;  %1402 = vmatprep.subr.mxu1 %v3458_v49 }
 0x3b4   :  { %1332 = vmatpush1.msra.mxu0 %v3462_v50  ;;  %1403 = vmatpush1.msra.mxu1 %v4523_v2 }
 0x3b5   :  { %1333 = vmatprep.subr.mxu0 %v4524_v62  ;;  %1404 = vmatprep.subr.mxu1 %v4525_v54 }
 0x3b6   :  { %1334 = vmatpush1.msra.mxu0 %v4526_v53  ;;  %1405 = vmatpush1.msra.mxu1 %v4550_v5 }
 0x3b7   :  { %1335 = vmatprep.subr.mxu0 %v4551_v6  ;;  %1406 = vmatprep.subr.mxu1 %v4552_v7 }
 0x3b8   :  { %1336 = vmatpush1.msra.mxu0 %v4553_v8  ;;  %1407 = vmatpush1.msra.mxu1 %v4554_v9 }
 0x3b9   :  { %1337 = vmatprep.subr.mxu0 %v4555_v10  ;;  %1408 = vmatprep.subr.mxu1 %v4556_v12 }
 0x3ba   :  { %1338 = vmatpush1.msra.mxu0 %v4557_v13  ;;  %1409 = vmatpush1.msra.mxu1 %v4558_v14 }
 0x3bb   :  { %1339 = vmatprep.subr.mxu0 %v4559_v15  ;;  %1410 = vmatprep.subr.mxu1 %v4560_v16  ;;  %v4580_v15 = vld [vmem:[#allocation30_spill] sm:$0xff]  ;;  %v4581_v16 = vld [vmem:[#allocation31_spill] sm:$0xff] }
 0x3bc   :  { %1340 = vmatpush1.msra.mxu0 %v4561_v17  ;;  %1411 = vmatpush1.msra.mxu1 %v4562_v18  ;;  %v4009_v17 = vld [vmem:[#allocation11 + $0x120] sm:$0xff]  ;;  %v4012_v18 = vld [vmem:[#allocation11 + $0x130] sm:$0xff] }
 0x3bd   :  { %1341 = vmatprep.subr.mxu0 %v4563_v19  ;;  %1412 = vmatprep.subr.mxu1 %v4564_v21  ;;  %v4015_v19 = vld [vmem:[#allocation11 + $0x108] sm:$0xff]  ;;  %v4018_v21 = vld [vmem:[#allocation11 + $0x118] sm:$0xff] }
 0x3be   :  { %1342 = vmatpush1.msra.mxu0 %v4565_v22  ;;  %1375 = vmatprep.mubr.f32.mxu0 %v4566_v23  ;;  %v4021_v22 = vld [vmem:[#allocation11 + $0x100] sm:$0xff] }
 0x3bf   :  { %1413 = vmatpush1.msra.mxu1 %v4567_v24  ;;  %1446 = vmatprep.mubr.f32.mxu1 %v4566_v23  ;;  %v4024_v24 = vld [vmem:[#allocation11 + $0x110] sm:$0xff] }
 0x3c0   :  { %1494 = vmatprep.subr.mxu0 %v3849_v25  ;;  %1565 = vmatprep.subr.mxu1 %v3852_v26 }
 0x45f   :  { %v1194_v32 = vpop.f32.mrf.mxu0  ;;  %v1265_v40 = vpop.f32.mrf.mxu1 }
 0x460   :  { %v1270_v34 = vadd.f32 %v1194_v32, %v4576_v33  ;;  %v1272_v46 = vadd.f32 %v1265_v40, %v4579_v45  ;;  %v4030_v32 = vld [vmem:[#allocation11 + $0xf8] sm:$0xff]  ;;  %v4033_v33 = vld [vmem:[#allocation11 + $0xe0] sm:$0xff]  ;;  %v4051_v40 = vld [vmem:[#allocation11 + $0xa8] sm:$0xff] }
 0x461   :  { %v1196_v35 = vpop.f32.mrf.mxu0  ;;  %v1267_v42 = vpop.f32.mrf.mxu1  ;;  %v4066_v45 = vld [vmem:[#allocation11 + $0x98] sm:$0xff] }
 0x462   :  { %v2610_v36 = vmul.f32 -1.442695, %v1270_v34  ;;  %v1271_v39 = vadd.f32 %v1196_v35, %v4577_v37  ;;  %v1273_v44 = vadd.f32 %v1267_v42, %v4578_v43  ;;  %v4036_v34 = vld [vmem:[#allocation11 + $0xf0] sm:$0xff]  ;;  %v4039_v35 = vld [vmem:[#allocation11 + $0xc8] sm:$0xff]  ;;  %v4045_v37 = vld [vmem:[#allocation11 + $0xc0] sm:$0xff] }
 0x463   :  { %v4057_v42 = vld [vmem:[#allocation11 + $0xa0] sm:$0xff]  ;;  %v4060_v43 = vld [vmem:[#allocation11 + $0xb0] sm:$0xff] }
 0x464   :  { %2850 = vpow2.f32 %v2610_v36  ;;  %v2611_v41 = vmul.f32 -1.442695, %v1271_v39  ;;  %v2612_v48 = vmul.f32 -1.442695, %v1273_v44  ;;  %v4042_v36 = vld [vmem:[#allocation11 + $0xd8] sm:$0xff]  ;;  %v4048_v39 = vld [vmem:[#allocation11 + $0xd0] sm:$0xff] }
 0x465   :  { %v4063_v44 = vld [vmem:[#allocation11 + $0x88] sm:$0xff] }
 0x466   :  { %2852 = vpow2.f32 %v2611_v41  ;;  %v4054_v41 = vld [vmem:[#allocation11 + $0xb8] sm:$0xff] }
 0x467   :  { %2854 = vtanh.f32 %v1272_v46  ;;  %v4069_v46 = vld [vmem:[#allocation11 + $0x80] sm:$0xff] }
 0x468   :  { %2856 = vpow2.f32 %v2612_v48  ;;  %v4072_v48 = vld [vmem:[#allocation11 + $0x90] sm:$0xff] }
 0x469   :  { %4582 = vst [vmem:[#allocation26_spill] sm:$0xff] %v4072_v48 }
 0x471   :  { %v2851_v49 = vpop.eup %2850 }
 0x472   :  { %v1277_v50 = vadd.f32 1.0, %v2851_v49  ;;  %v4075_v49 = vld [vmem:[#allocation11 + $0x68] sm:$0xff] }
 0x473   :  { %v2853_v2 = vpop.eup %2852  ;;  %4583 = vst [vmem:[#allocation27_spill] sm:$0xff] %v4075_v49 }
 0x474   :  { %2858 = vrcp.f32 %v1277_v50  ;;  %v1283_v62 = vadd.f32 1.0, %v2853_v2  ;;  %v2855_v54 = vpop.eup %2854  ;;  %v4078_v50 = vld [vmem:[#allocation11 + $0x78] sm:$0xff]  ;;  %v4081_v2 = vld [vmem:[#allocation11 + $0x60] sm:$0xff] }
 0x475   :  { %v2857_v53 = vpop.eup %2856  ;;  %4584 = vst [vmem:[#allocation51_spill] sm:$0xff] %v4078_v50  ;;  %4585 = vst [vmem:[#allocation52_spill] sm:$0xff] %v4081_v2 }
 0x476   :  { %2860 = vrcp.f32 %v1283_v62  ;;  %v1290_v8 = vadd.f32 1.0, %v2857_v53  ;;  %v4084_v62 = vld [vmem:[#allocation11 + $0x70] sm:$0xff]  ;;  %v4090_v53 = vld [vmem:[#allocation11 + $0x58] sm:$0xff] }
 0x477   :  { %4586 = vst [vmem:[#allocation50_spill] sm:$0xff] %v4084_v62  ;;  %4588 = vst [vmem:[#allocation33_spill] sm:$0xff] %v4090_v53 }
 0x478   :  { %2862 = vrcp.f32 %v1290_v8  ;;  %v4102_v8 = vld [vmem:[#allocation11 + $0x38] sm:$0xff] }
 0x479   :  { %4592 = vst [vmem:[#allocation37_spill] sm:$0xff] %v4102_v8 }
 0x481   :  { %v2859_v5 = vpop.eup %2858 }
 0x482   :  { %v1294_v6 = vmul.f32 %v2859_v5, %v2855_v54  ;;  %v4087_v54 = vld [vmem:[#allocation11 + $0x48] sm:$0xff]  ;;  %v4093_v5 = vld [vmem:[#allocation11 + $0x40] sm:$0xff] }
 0x483   :  { %v2861_v7 = vpop.eup %2860  ;;  %4587 = vst [vmem:[#allocation32_spill] sm:$0xff] %v4087_v54  ;;  %4589 = vst [vmem:[#allocation34_spill] sm:$0xff] %v4093_v5 }
 0x484   :  { %v1293_v9 = vmul.f32 %v2861_v7, %v3860_v3  ;;  %v4027_v3 = vld [vmem:[#allocation11 + $0xe8] sm:$0xff] }
 0x485   :  { %v2863_v12 = vpop.eup %2862  ;;  %v4099_v7 = vld [vmem:[#allocation11 + $0x28] sm:$0xff] }
 0x486   :  { %v3982_v10 = vadd.f32 %v1294_v6, %v1293_v9  ;;  %v4096_v6 = vld [vmem:[#allocation11 + $0x50] sm:$0xff]  ;;  %4591 = vst [vmem:[#allocation36_spill] sm:$0xff] %v4099_v7  ;;  %v4105_v9 = vld [vmem:[#allocation11 + $0x20] sm:$0xff] }
 0x487   :  { %4590 = vst [vmem:[#allocation35_spill] sm:$0xff] %v4096_v6  ;;  %4593 = vst [vmem:[#allocation38_spill] sm:$0xff] %v4105_v9 }
 0x488   :  { %2864 = vtanh.f32 %v3982_v10 }
 0x495   :  { %v2865_v13 = vpop.eup %2864 }
 0x496   :  { %v1297_v14 = vmul.f32 %v2865_v13, %v2863_v12  ;;  %v4108_v12 = vld [vmem:[#allocation11 + $0x30] sm:$0xff]  ;;  %v4111_v13 = vld [vmem:[#allocation11 + $0x8] sm:$0xff] }
 0x497   :  { %4594 = vst [vmem:[#allocation39_spill] sm:$0xff] %v4108_v12  ;;  %4595 = vst [vmem:[#allocation40_spill] sm:$0xff] %v4111_v13 }
 0x498   :  { %1376 = vmatmul.mubr.f32.vlgmr.msra.gmra.mxu0 %v1297_v14  ;;  %1447 = vmatmul.mubr.f32.vlgmr.msra.gmra.mxu1 %v1297_v14  ;;  %v4114_v14 = vld [vmem:[#allocation11 + $0x18] sm:$0xff] }
 0x499   :  { %1495 = vmatpush1.msra.mxu0 %v3863_v47  ;;  %1566 = vmatpush1.msra.mxu1 %v3866_v29  ;;  %4596 = vst [vmem:[#allocation41_spill] sm:$0xff] %v4114_v14 }
 0x49a   :  { %1496 = vmatprep.subr.mxu0 %v3869_v0  ;;  %1567 = vmatprep.subr.mxu1 %v3872_v20 }
 0x49b   :  { %1497 = vmatpush1.msra.mxu0 %v3875_v59  ;;  %1568 = vmatpush1.msra.mxu1 %v3878_v57 }
 0x49c   :  { %1498 = vmatprep.subr.mxu0 %v3881_v56  ;;  %1569 = vmatprep.subr.mxu1 %v3884_v55 }
 0x49d   :  { %1499 = vmatpush1.msra.mxu0 %v3887_v60  ;;  %1570 = vmatpush1.msra.mxu1 %v3890_v61 }
 0x49e   :  { %1500 = vmatprep.subr.mxu0 %v3893_v1  ;;  %1571 = vmatprep.subr.mxu1 %v3896_v58 }
 0x49f   :  { %1501 = vmatpush1.msra.mxu0 %v3899_v38  ;;  %1572 = vmatpush1.msra.mxu1 %v3902_v52 }
 0x4a0   :  { %1502 = vmatprep.subr.mxu0 %v3905_v51  ;;  %1573 = vmatprep.subr.mxu1 %v3908_v27 }
 0x4a1   :  { %1503 = vmatpush1.msra.mxu0 %v4580_v15  ;;  %1574 = vmatpush1.msra.mxu1 %v4581_v16 }
 0x4a2   :  { %1504 = vmatprep.subr.mxu0 %v3917_v31  ;;  %1575 = vmatprep.subr.mxu1 %v3920_v11 }
 0x4a3   :  { %1505 = vmatpush1.msra.mxu0 %v3923_v63  ;;  %1576 = vmatpush1.msra.mxu1 %v3926_v4 }
 0x4a4   :  { %1506 = vmatprep.subr.mxu0 %v3929_v28  ;;  %1577 = vmatprep.subr.mxu1 %v3932_v30 }
 0x4a5   :  { %1507 = vmatpush1.msra.mxu0 %v4009_v17  ;;  %1578 = vmatpush1.msra.mxu1 %v4012_v18 }
 0x4a6   :  { %1508 = vmatprep.subr.mxu0 %v4015_v19  ;;  %1579 = vmatprep.subr.mxu1 %v4018_v21 }
 0x4a7   :  { %1509 = vmatpush1.msra.mxu0 %v4021_v22  ;;  %1580 = vmatpush1.msra.mxu1 %v4024_v24 }
 0x4a8   :  { %1510 = vmatprep.subr.mxu0 %v4027_v3  ;;  %1581 = vmatprep.subr.mxu1 %v4030_v32 }
 0x4a9   :  { %1511 = vmatpush1.msra.mxu0 %v4033_v33  ;;  %1582 = vmatpush1.msra.mxu1 %v4036_v34 }
 0x4aa   :  { %1512 = vmatprep.subr.mxu0 %v4039_v35  ;;  %1583 = vmatprep.subr.mxu1 %v4042_v36 }
 0x4ab   :  { %1513 = vmatpush1.msra.mxu0 %v4045_v37  ;;  %1584 = vmatpush1.msra.mxu1 %v4048_v39 }
 0x4ac   :  { %1514 = vmatprep.subr.mxu0 %v4051_v40  ;;  %1585 = vmatprep.subr.mxu1 %v4054_v41 }
 0x4ad   :  { %1515 = vmatpush1.msra.mxu0 %v4057_v42  ;;  %1586 = vmatpush1.msra.mxu1 %v4060_v43 }
 0x4ae   :  { %1516 = vmatprep.subr.mxu0 %v4063_v44  ;;  %1587 = vmatprep.subr.mxu1 %v4066_v45 }
 0x4af   :  { %1517 = vmatpush1.msra.mxu0 %v4069_v46  ;;  %1588 = vmatpush1.msra.mxu1 %v4072_v48 }
 0x4b0   :  { %1518 = vmatprep.subr.mxu0 %v4075_v49  ;;  %1589 = vmatprep.subr.mxu1 %v4078_v50  ;;  %v4602_v50 = vld [vmem:[#allocation62_spill] sm:$0xff] }
 0x4b1   :  { %1519 = vmatpush1.msra.mxu0 %v4081_v2  ;;  %1590 = vmatpush1.msra.mxu1 %v4084_v62  ;;  %v4601_v2 = vld [vmem:[#allocation64_spill] sm:$0xff] }
 0x4b2   :  { %1520 = vmatprep.subr.mxu0 %v4087_v54  ;;  %1591 = vmatprep.subr.mxu1 %v4090_v53 }
 0x4b3   :  { %1521 = vmatpush1.msra.mxu0 %v4093_v5  ;;  %1592 = vmatpush1.msra.mxu1 %v4096_v6  ;;  %v4600_v5 = vld [vmem:[#allocation63_spill] sm:$0xff] }
 0x4b4   :  { %1522 = vmatprep.subr.mxu0 %v4099_v7  ;;  %1593 = vmatprep.subr.mxu1 %v4102_v8  ;;  %v4117_v7 = vld [vmem:[#allocation11] sm:$0xff]  ;;  %v4121_v8 = vld [vmem:[#allocation11 + $0x10] sm:$0xff] }
 0x4b5   :  { %1523 = vmatpush1.msra.mxu0 %v4105_v9  ;;  %1594 = vmatpush1.msra.mxu1 %v4108_v12  ;;  %4597 = vst [vmem:[#allocation42_spill] sm:$0xff] %v4117_v7  ;;  %4598 = vst [vmem:[#allocation43_spill] sm:$0xff] %v4121_v8  ;;  %v4599_v12 = vld [vmem:[#allocation61_spill] sm:$0xff] }
 0x4b6   :  { %1524 = vmatprep.subr.mxu0 %v4111_v13  ;;  %1595 = vmatprep.subr.mxu1 %v4114_v14 }
 0x4b7   :  { %1525 = vmatpush1.msra.mxu0 %v4117_v7  ;;  %1558 = vmatprep.mubr.f32.mxu0 %v4566_v23 }
 0x4b8   :  { %1596 = vmatpush1.msra.mxu1 %v4121_v8  ;;  %1629 = vmatprep.mubr.f32.mxu1 %v4566_v23 }
 0x4b9   :  { %1677 = vmatprep.subr.mxu0 %v3849_v25  ;;  %1748 = vmatprep.subr.mxu1 %v3852_v26 }
 0x558   :  { %v1377_v13 = vpop.f32.mrf.mxu0  ;;  %v1448_v7 = vpop.f32.mrf.mxu1 }
 0x559   :  { %v1453_v9 = vadd.f32 %v1377_v13, %v4599_v12  ;;  %v1455_v23 = vadd.f32 %v1448_v7, %v4602_v50  ;;  %v4608_v7 = vld [vmem:[#allocation32_spill] sm:$0xff] }
 0x55a   :  { %v1379_v14 = vpop.f32.mrf.mxu0  ;;  %v1450_v62 = vpop.f32.mrf.mxu1 }
 0x55b   :  { %v2613_v6 = vmul.f32 -1.442695, %v1453_v9  ;;  %v1454_v53 = vadd.f32 %v1379_v14, %v4600_v5  ;;  %v1456_v8 = vadd.f32 %v1450_v62, %v4601_v2  ;;  %v4607_v62 = vld [vmem:[#allocation50_spill] sm:$0xff] }
 0x55d   :  { %2866 = vpow2.f32 %v2613_v6  ;;  %v2614_v54 = vmul.f32 -1.442695, %v1454_v53  ;;  %v2615_v49 = vmul.f32 -1.442695, %v1456_v8  ;;  %v4609_v8 = vld [vmem:[#allocation33_spill] sm:$0xff] }
 0x55f   :  { %2868 = vpow2.f32 %v2614_v54 }
 0x560   :  { %2870 = vtanh.f32 %v1455_v23 }
 0x561   :  { %2872 = vpow2.f32 %v2615_v49  ;;  %v4606_v49 = vld [vmem:[#allocation52_spill] sm:$0xff] }
 0x56a   :  { %v2867_v25 = vpop.eup %2866 }
 0x56b   :  { %v1460_v48 = vadd.f32 1.0, %v2867_v25 }
 0x56c   :  { %v2869_v26 = vpop.eup %2868 }
 0x56d   :  { %2874 = vrcp.f32 %v1460_v48  ;;  %v1466_v12 = vadd.f32 1.0, %v2869_v26  ;;  %v2871_v9 = vpop.eup %2870  ;;  %v4603_v26 = vld [vmem:[#allocation26_spill] sm:$0xff]  ;;  %v4605_v48 = vld [vmem:[#allocation51_spill] sm:$0xff] }
 0x56e   :  { %v2873_v5 = vpop.eup %2872 }
 0x56f   :  { %2876 = vrcp.f32 %v1466_v12  ;;  %v1473_v54 = vadd.f32 1.0, %v2873_v5  ;;  %v4610_v12 = vld [vmem:[#allocation34_spill] sm:$0xff]  ;;  %v4612_v5 = vld [vmem:[#allocation36_spill] sm:$0xff] }
 0x571   :  { %2878 = vrcp.f32 %v1473_v54  ;;  %v4616_v54 = vld [vmem:[#allocation40_spill] sm:$0xff] }
 0x57a   :  { %v2875_v6 = vpop.eup %2874 }
 0x57b   :  { %v1477_v13 = vmul.f32 %v2875_v6, %v2871_v9  ;;  %v4611_v9 = vld [vmem:[#allocation35_spill] sm:$0xff]  ;;  %v4613_v6 = vld [vmem:[#allocation37_spill] sm:$0xff] }
 0x57c   :  { %v2877_v53 = vpop.eup %2876 }
 0x57d   :  { %v1476_v14 = vmul.f32 %v2877_v53, %v3982_v10  ;;  %v4604_v10 = vld [vmem:[#allocation27_spill] sm:$0xff] }
 0x57e   :  { %v2879_v25 = vpop.eup %2878  ;;  %v4615_v53 = vld [vmem:[#allocation39_spill] sm:$0xff] }
 0x57f   :  { %v4132_v2 = vadd.f32 %v1477_v13, %v1476_v14  ;;  %v4614_v13 = vld [vmem:[#allocation38_spill] sm:$0xff]  ;;  %v4617_v14 = vld [vmem:[#allocation41_spill] sm:$0xff] }
 0x581   :  { %2880 = vtanh.f32 %v4132_v2 }
 0x58e   :  { %v2881_v23 = vpop.eup %2880 }
 0x58f   :  { %v1480_v50 = vmul.f32 %v2881_v23, %v2879_v25  ;;  %v4618_v25 = vld [vmem:[#allocation42_spill] sm:$0xff]  ;;  %v4619_v23 = vmov 0.0  }
 0x591   :  { %1559 = vmatmul.mubr.f32.vlgmr.msra.gmra.mxu0 %v1480_v50  ;;  %1630 = vmatmul.mubr.f32.vlgmr.msra.gmra.mxu1 %v1480_v50  ;;  %v4620_v50 = vld [vmem:[#allocation43_spill] sm:$0xff] }
 0x592   :  { %1678 = vmatpush1.msra.mxu0 %v3863_v47  ;;  %1749 = vmatpush1.msra.mxu1 %v3866_v29 }
 0x593   :  { %1679 = vmatprep.subr.mxu0 %v3869_v0  ;;  %1750 = vmatprep.subr.mxu1 %v3872_v20 }
 0x594   :  { %1680 = vmatpush1.msra.mxu0 %v3875_v59  ;;  %1751 = vmatpush1.msra.mxu1 %v3878_v57 }
 0x595   :  { %1681 = vmatprep.subr.mxu0 %v3881_v56  ;;  %1752 = vmatprep.subr.mxu1 %v3884_v55 }
 0x596   :  { %1682 = vmatpush1.msra.mxu0 %v3887_v60  ;;  %1753 = vmatpush1.msra.mxu1 %v3890_v61 }
 0x597   :  { %1683 = vmatprep.subr.mxu0 %v3893_v1  ;;  %1754 = vmatprep.subr.mxu1 %v3896_v58 }
 0x598   :  { %1684 = vmatpush1.msra.mxu0 %v3899_v38  ;;  %1755 = vmatpush1.msra.mxu1 %v3902_v52 }
 0x599   :  { %1685 = vmatprep.subr.mxu0 %v3905_v51  ;;  %1756 = vmatprep.subr.mxu1 %v3908_v27 }
 0x59a   :  { %1686 = vmatpush1.msra.mxu0 %v4580_v15  ;;  %1757 = vmatpush1.msra.mxu1 %v4581_v16 }
 0x59b   :  { %1687 = vmatprep.subr.mxu0 %v3917_v31  ;;  %1758 = vmatprep.subr.mxu1 %v3920_v11 }
 0x59c   :  { %1688 = vmatpush1.msra.mxu0 %v3923_v63  ;;  %1759 = vmatpush1.msra.mxu1 %v3926_v4 }
 0x59d   :  { %1689 = vmatprep.subr.mxu0 %v3929_v28  ;;  %1760 = vmatprep.subr.mxu1 %v3932_v30 }
 0x59e   :  { %1690 = vmatpush1.msra.mxu0 %v4009_v17  ;;  %1761 = vmatpush1.msra.mxu1 %v4012_v18 }
 0x59f   :  { %1691 = vmatprep.subr.mxu0 %v4015_v19  ;;  %1762 = vmatprep.subr.mxu1 %v4018_v21 }
 0x5a0   :  { %1692 = vmatpush1.msra.mxu0 %v4021_v22  ;;  %1763 = vmatpush1.msra.mxu1 %v4024_v24 }
 0x5a1   :  { %1693 = vmatprep.subr.mxu0 %v4027_v3  ;;  %1764 = vmatprep.subr.mxu1 %v4030_v32 }
 0x5a2   :  { %1694 = vmatpush1.msra.mxu0 %v4033_v33  ;;  %1765 = vmatpush1.msra.mxu1 %v4036_v34 }
 0x5a3   :  { %1695 = vmatprep.subr.mxu0 %v4039_v35  ;;  %1766 = vmatprep.subr.mxu1 %v4042_v36 }
 0x5a4   :  { %1696 = vmatpush1.msra.mxu0 %v4045_v37  ;;  %1767 = vmatpush1.msra.mxu1 %v4048_v39 }
 0x5a5   :  { %1697 = vmatprep.subr.mxu0 %v4051_v40  ;;  %1768 = vmatprep.subr.mxu1 %v4054_v41 }
 0x5a6   :  { %1698 = vmatpush1.msra.mxu0 %v4057_v42  ;;  %1769 = vmatpush1.msra.mxu1 %v4060_v43 }
 0x5a7   :  { %1699 = vmatprep.subr.mxu0 %v4063_v44  ;;  %1770 = vmatprep.subr.mxu1 %v4066_v45 }
 0x5a8   :  { %1700 = vmatpush1.msra.mxu0 %v4069_v46  ;;  %1771 = vmatpush1.msra.mxu1 %v4603_v26 }
 0x5a9   :  { %1701 = vmatprep.subr.mxu0 %v4604_v10  ;;  %1772 = vmatprep.subr.mxu1 %v4605_v48  ;;  %v4626_v48 = vld [vmem:[#allocation66_spill] sm:$0xff] }
 0x5aa   :  { %1702 = vmatpush1.msra.mxu0 %v4606_v49  ;;  %1773 = vmatpush1.msra.mxu1 %v4607_v62  ;;  %v4625_v49 = vld [vmem:[#allocation68_spill] sm:$0xff] }
 0x5ab   :  { %1703 = vmatprep.subr.mxu0 %v4608_v7  ;;  %1774 = vmatprep.subr.mxu1 %v4609_v8 }
 0x5ac   :  { %1704 = vmatpush1.msra.mxu0 %v4610_v12  ;;  %1775 = vmatpush1.msra.mxu1 %v4611_v9  ;;  %v4621_v9 = vld [vmem:[#allocation28_spill] sm:$0xff] }
 0x5ad   :  { %1705 = vmatprep.subr.mxu0 %v4612_v5  ;;  %1776 = vmatprep.subr.mxu1 %v4613_v6  ;;  %v4622_v5 = vld [vmem:[#allocation29_spill] sm:$0xff] }
 0x5ae   :  { %1706 = vmatpush1.msra.mxu0 %v4614_v13  ;;  %1777 = vmatpush1.msra.mxu1 %v4615_v53  ;;  %v4623_v13 = vld [vmem:[#allocation65_spill] sm:$0xff] }
 0x5af   :  { %1707 = vmatprep.subr.mxu0 %v4616_v54  ;;  %1778 = vmatprep.subr.mxu1 %v4617_v14  ;;  %v4624_v54 = vld [vmem:[#allocation67_spill] sm:$0xff] }
 0x5b0   :  { %1708 = vmatpush1.msra.mxu0 %v4618_v25  ;;  %1741 = vmatprep.mubr.f32.mxu0 %v4619_v23 }
 0x5b1   :  { %1779 = vmatpush1.msra.mxu1 %v4620_v50  ;;  %1812 = vmatprep.mubr.f32.mxu1 %v4619_v23 }
 0x5b2   :  { %1860 = vmatprep.subr.mxu0 %v4621_v9  ;;  %1931 = vmatprep.subr.mxu1 %v4622_v5 }
 0x651   :  { %v1560_v6 = vpop.f32.mrf.mxu0  ;;  %v1631_v14 = vpop.f32.mrf.mxu1 }
 0x652   :  { %v1636_v12 = vadd.f32 %v1560_v6, %v4623_v13  ;;  %v1638_v23 = vadd.f32 %v1631_v14, %v4626_v48 }
 0x653   :  { %v1562_v53 = vpop.f32.mrf.mxu0  ;;  %v1633_v62 = vpop.f32.mrf.mxu1 }
 0x654   :  { %v2616_v8 = vmul.f32 -1.442695, %v1636_v12  ;;  %v1637_v7 = vadd.f32 %v1562_v53, %v4624_v54  ;;  %v1639_v50 = vadd.f32 %v1633_v62, %v4625_v49 }
 0x656   :  { %2882 = vpow2.f32 %v2616_v8  ;;  %v2617_v25 = vmul.f32 -1.442695, %v1637_v7  ;;  %v2618_v10 = vmul.f32 -1.442695, %v1639_v50 }
 0x658   :  { %2884 = vpow2.f32 %v2617_v25 }
 0x659   :  { %2886 = vtanh.f32 %v1638_v23 }
 0x65a   :  { %2888 = vpow2.f32 %v2618_v10 }
 0x663   :  { %v2883_v9 = vpop.eup %2882 }
 0x664   :  { %v1643_v26 = vadd.f32 1.0, %v2883_v9  ;;  %v2102_v9 = vld [vmem:[#allocation13 + $0x1e0] sm:$0xff] }
 0x665   :  { %v2885_v5 = vpop.eup %2884 }
 0x666   :  { %2890 = vrcp.f32 %v1643_v26  ;;  %v1649_v6 = vadd.f32 1.0, %v2885_v5  ;;  %v2887_v12 = vpop.eup %2886  ;;  %v2104_v5 = vld [vmem:[#allocation13 + $0x1f0] sm:$0xff] }
 0x667   :  { %v2889_v13 = vpop.eup %2888 }
 0x668   :  { %2892 = vrcp.f32 %v1649_v6  ;;  %v1656_v54 = vadd.f32 1.0, %v2889_v13  ;;  %v2099_v6 = vld [vmem:[#allocation13 + $0x1c8] sm:$0xff]  ;;  %v2098_v13 = vld [vmem:[#allocation13 + $0x1c0] sm:$0xff] }
 0x66a   :  { %2894 = vrcp.f32 %v1656_v54  ;;  %v2094_v54 = vld [vmem:[#allocation13 + $0x1a0] sm:$0xff] }
 0x673   :  { %v2891_v8 = vpop.eup %2890 }
 0x674   :  { %v1660_v53 = vmul.f32 %v2891_v8, %v2887_v12  ;;  %v2101_v12 = vld [vmem:[#allocation13 + $0x1d8] sm:$0xff]  ;;  %v2100_v8 = vld [vmem:[#allocation13 + $0x1d0] sm:$0xff] }
 0x675   :  { %v2893_v7 = vpop.eup %2892 }
 0x676   :  { %v1659_v25 = vmul.f32 %v2893_v7, %v4132_v2  ;;  %v2097_v7 = vld [vmem:[#allocation13 + $0x1b8] sm:$0xff] }
 0x677   :  { %v2895_v48 = vpop.eup %2894 }
 0x678   :  { %v4206_v49 = vadd.f32 %v1660_v53, %v1659_v25  ;;  %v2095_v53 = vld [vmem:[#allocation13 + $0x1a8] sm:$0xff]  ;;  %v2096_v25 = vld [vmem:[#allocation13 + $0x1b0] sm:$0xff] }
 0x67a   :  { %2896 = vtanh.f32 %v4206_v49 }
 0x687   :  { %v2897_v62 = vpop.eup %2896 }
 0x688   :  { %v1663_v14 = vmul.f32 %v2897_v62, %v2895_v48  ;;  %v2093_v48 = vld [vmem:[#allocation13 + $0x198] sm:$0xff]  ;;  %v2090_v62 = vld [vmem:[#allocation13 + $0x180] sm:$0xff] }
 0x68a   :  { %1742 = vmatmul.mubr.f32.vlgmr.msra.gmra.mxu0 %v1663_v14  ;;  %1813 = vmatmul.mubr.f32.vlgmr.msra.gmra.mxu1 %v1663_v14  ;;  %v2092_v14 = vld [vmem:[#allocation13 + $0x190] sm:$0xff] }
 0x68b   :  { %1861 = vmatpush1.msra.mxu0 %v3863_v47  ;;  %1932 = vmatpush1.msra.mxu1 %v3866_v29  ;;  %v4627_v47 = vld [vmem:[#allocation26_spill] sm:$0xff]  ;;  %v4628_v29 = vld [vmem:[#allocation27_spill] sm:$0xff] }
 0x68c   :  { %1862 = vmatprep.subr.mxu0 %v3869_v0  ;;  %1933 = vmatprep.subr.mxu1 %v3872_v20  ;;  %v4629_v0 = vld [vmem:[#allocation51_spill] sm:$0xff]  ;;  %v4630_v20 = vld [vmem:[#allocation52_spill] sm:$0xff] }
 0x68d   :  { %1863 = vmatpush1.msra.mxu0 %v3875_v59  ;;  %1934 = vmatpush1.msra.mxu1 %v3878_v57  ;;  %v4631_v59 = vld [vmem:[#allocation50_spill] sm:$0xff]  ;;  %v4632_v57 = vld [vmem:[#allocation32_spill] sm:$0xff] }
 0x68e   :  { %1864 = vmatprep.subr.mxu0 %v3881_v56  ;;  %1935 = vmatprep.subr.mxu1 %v3884_v55  ;;  %v4633_v56 = vld [vmem:[#allocation33_spill] sm:$0xff]  ;;  %v4634_v55 = vld [vmem:[#allocation34_spill] sm:$0xff] }
 0x68f   :  { %1865 = vmatpush1.msra.mxu0 %v3887_v60  ;;  %1936 = vmatpush1.msra.mxu1 %v3890_v61  ;;  %v4635_v60 = vld [vmem:[#allocation35_spill] sm:$0xff]  ;;  %v4636_v61 = vld [vmem:[#allocation36_spill] sm:$0xff] }
 0x690   :  { %1866 = vmatprep.subr.mxu0 %v3893_v1  ;;  %1937 = vmatprep.subr.mxu1 %v3896_v58  ;;  %v4637_v1 = vld [vmem:[#allocation37_spill] sm:$0xff]  ;;  %v4638_v58 = vld [vmem:[#allocation38_spill] sm:$0xff] }
 0x691   :  { %1867 = vmatpush1.msra.mxu0 %v3899_v38  ;;  %1938 = vmatpush1.msra.mxu1 %v3902_v52  ;;  %v4639_v38 = vld [vmem:[#allocation39_spill] sm:$0xff]  ;;  %v4640_v52 = vld [vmem:[#allocation40_spill] sm:$0xff] }
 0x692   :  { %1868 = vmatprep.subr.mxu0 %v3905_v51  ;;  %1939 = vmatprep.subr.mxu1 %v3908_v27  ;;  %v4641_v51 = vld [vmem:[#allocation41_spill] sm:$0xff]  ;;  %v4642_v27 = vld [vmem:[#allocation42_spill] sm:$0xff] }
 0x693   :  { %1869 = vmatpush1.msra.mxu0 %v4580_v15  ;;  %1940 = vmatpush1.msra.mxu1 %v4581_v16 }
 0x694   :  { %1870 = vmatprep.subr.mxu0 %v3917_v31  ;;  %1941 = vmatprep.subr.mxu1 %v3920_v11  ;;  %v2103_v31 = vld [vmem:[#allocation13 + $0x1e8] sm:$0xff]  ;;  %v2105_v11 = vld [vmem:[#allocation13 + $0x1f8] sm:$0xff] }
 0x695   :  { %1871 = vmatpush1.msra.mxu0 %v3923_v63  ;;  %1942 = vmatpush1.msra.mxu1 %v3926_v4  ;;  %v4645_v4 = vld [vmem:[#allocation69_spill] sm:$0xff] }
 0x696   :  { %1872 = vmatprep.subr.mxu0 %v3929_v28  ;;  %1943 = vmatprep.subr.mxu1 %v3932_v30  ;;  %v4643_v28 = vmov 0.0   ;;  %v4644_v30 = vld [vmem:[#allocation43_spill] sm:$0xff] }
 0x697   :  { %1873 = vmatpush1.msra.mxu0 %v4009_v17  ;;  %1944 = vmatpush1.msra.mxu1 %v4012_v18  ;;  %v4646_v18 = vld [vmem:[#allocation71_spill] sm:$0xff] }
 0x698   :  { %1874 = vmatprep.subr.mxu0 %v4015_v19  ;;  %1945 = vmatprep.subr.mxu1 %v4018_v21 }
 0x699   :  { %1875 = vmatpush1.msra.mxu0 %v4021_v22  ;;  %1946 = vmatpush1.msra.mxu1 %v4024_v24 }
 0x69a   :  { %1876 = vmatprep.subr.mxu0 %v4027_v3  ;;  %1947 = vmatprep.subr.mxu1 %v4030_v32  ;;  %v4647_v3 = vld [vmem:[#allocation72_spill] sm:$0xff] }
 0x69b   :  { %1877 = vmatpush1.msra.mxu0 %v4033_v33  ;;  %1948 = vmatpush1.msra.mxu1 %v4036_v34  ;;  %v4648_v33 = vld [vmem:[#allocation70_spill] sm:$0xff] }
 0x69c   :  { %1878 = vmatprep.subr.mxu0 %v4039_v35  ;;  %1949 = vmatprep.subr.mxu1 %v4042_v36 }
 0x69d   :  { %1879 = vmatpush1.msra.mxu0 %v4045_v37  ;;  %1950 = vmatpush1.msra.mxu1 %v4048_v39 }
 0x69e   :  { %1880 = vmatprep.subr.mxu0 %v4051_v40  ;;  %1951 = vmatprep.subr.mxu1 %v4054_v41 }
 0x69f   :  { %1881 = vmatpush1.msra.mxu0 %v4057_v42  ;;  %1952 = vmatpush1.msra.mxu1 %v4060_v43 }
 0x6a0   :  { %1882 = vmatprep.subr.mxu0 %v4063_v44  ;;  %1953 = vmatprep.subr.mxu1 %v4066_v45 }
 0x6a1   :  { %1883 = vmatpush1.msra.mxu0 %v4069_v46  ;;  %1954 = vmatpush1.msra.mxu1 %v4627_v47  ;;  %v2087_v47 = vld [vmem:[#allocation13 + $0x168] sm:$0xff] }
 0x6a2   :  { %1884 = vmatprep.subr.mxu0 %v4628_v29  ;;  %1955 = vmatprep.subr.mxu1 %v4629_v0  ;;  %v2089_v29 = vld [vmem:[#allocation13 + $0x178] sm:$0xff]  ;;  %v2086_v0 = vld [vmem:[#allocation13 + $0x160] sm:$0xff] }
 0x6a3   :  { %1885 = vmatpush1.msra.mxu0 %v4630_v20  ;;  %1956 = vmatpush1.msra.mxu1 %v4631_v59  ;;  %v2088_v20 = vld [vmem:[#allocation13 + $0x170] sm:$0xff]  ;;  %v2083_v59 = vld [vmem:[#allocation13 + $0x148] sm:$0xff] }
 0x6a4   :  { %1886 = vmatprep.subr.mxu0 %v4632_v57  ;;  %1957 = vmatprep.subr.mxu1 %v4633_v56  ;;  %v2085_v57 = vld [vmem:[#allocation13 + $0x158] sm:$0xff]  ;;  %v2082_v56 = vld [vmem:[#allocation13 + $0x140] sm:$0xff] }
 0x6a5   :  { %1887 = vmatpush1.msra.mxu0 %v4634_v55  ;;  %1958 = vmatpush1.msra.mxu1 %v4635_v60  ;;  %v2084_v55 = vld [vmem:[#allocation13 + $0x150] sm:$0xff]  ;;  %v2079_v60 = vld [vmem:[#allocation13 + $0x128] sm:$0xff] }
 0x6a6   :  { %1888 = vmatprep.subr.mxu0 %v4636_v61  ;;  %1959 = vmatprep.subr.mxu1 %v4637_v1  ;;  %v2081_v61 = vld [vmem:[#allocation13 + $0x138] sm:$0xff]  ;;  %v2078_v1 = vld [vmem:[#allocation13 + $0x120] sm:$0xff] }
 0x6a7   :  { %1889 = vmatpush1.msra.mxu0 %v4638_v58  ;;  %1960 = vmatpush1.msra.mxu1 %v4639_v38  ;;  %v2080_v58 = vld [vmem:[#allocation13 + $0x130] sm:$0xff]  ;;  %v2075_v38 = vld [vmem:[#allocation13 + $0x108] sm:$0xff] }
 0x6a8   :  { %1890 = vmatprep.subr.mxu0 %v4640_v52  ;;  %1961 = vmatprep.subr.mxu1 %v4641_v51  ;;  %v2074_v52 = vld [vmem:[#allocation13 + $0x100] sm:$0xff]  ;;  %v2077_v51 = vld [vmem:[#allocation13 + $0x118] sm:$0xff] }
 0x6a9   :  { %1891 = vmatpush1.msra.mxu0 %v4642_v27  ;;  %1924 = vmatprep.mubr.f32.mxu0 %v4643_v28  ;;  %v2071_v27 = vld [vmem:[#allocation13 + $0xe8] sm:$0xff] }
 0x6aa   :  { %1962 = vmatpush1.msra.mxu1 %v4644_v30  ;;  %1995 = vmatprep.mubr.f32.mxu1 %v4643_v28  ;;  %v2076_v30 = vld [vmem:[#allocation13 + $0x110] sm:$0xff] }
 0x6ab   :  { %2128 = vmatprep.subr.mxu0 %v2103_v31  ;;  %2199 = vmatprep.subr.mxu1 %v2105_v11  ;;  %v2070_v31 = vld [vmem:[#allocation13 + $0xe0] sm:$0xff]  ;;  %v2073_v11 = vld [vmem:[#allocation13 + $0xf8] sm:$0xff] }
 0x74a   :  { %v1743_v63 = vpop.f32.mrf.mxu0  ;;  %v1814_v21 = vpop.f32.mrf.mxu1 }
 0x74b   :  { %v1819_v15 = vadd.f32 %v1743_v63, %v4645_v4  ;;  %v1821_v34 = vadd.f32 %v1814_v21, %v4648_v33  ;;  %v2067_v63 = vld [vmem:[#allocation13 + $0xc8] sm:$0xff]  ;;  %v2072_v4 = vld [vmem:[#allocation13 + $0xf0] sm:$0xff]  ;;  %v2065_v21 = vld [vmem:[#allocation13 + $0xb8] sm:$0xff] }
 0x74c   :  { %v1745_v16 = vpop.f32.mrf.mxu0  ;;  %v1816_v24 = vpop.f32.mrf.mxu1  ;;  %v2055_v33 = vld [vmem:[#allocation13 + $0x68] sm:$0xff] }
 0x74d   :  { %v2619_v17 = vmul.f32 -1.442695, %v1819_v15  ;;  %v1820_v19 = vadd.f32 %v1745_v16, %v4646_v18  ;;  %v1822_v32 = vadd.f32 %v1816_v24, %v4647_v3  ;;  %v2066_v15 = vld [vmem:[#allocation13 + $0xc0] sm:$0xff]  ;;  %v2069_v16 = vld [vmem:[#allocation13 + $0xd8] sm:$0xff]  ;;  %v2068_v18 = vld [vmem:[#allocation13 + $0xd0] sm:$0xff] }
 0x74e   :  { %v2064_v24 = vld [vmem:[#allocation13 + $0xb0] sm:$0xff]  ;;  %v2058_v3 = vld [vmem:[#allocation13 + $0x80] sm:$0xff] }
 0x74f   :  { %2898 = vpow2.f32 %v2619_v17  ;;  %v2620_v22 = vmul.f32 -1.442695, %v1820_v19  ;;  %v2621_v35 = vmul.f32 -1.442695, %v1822_v32  ;;  %v2063_v17 = vld [vmem:[#allocation13 + $0xa8] sm:$0xff]  ;;  %v2062_v19 = vld [vmem:[#allocation13 + $0xa0] sm:$0xff] }
 0x750   :  { %v2061_v32 = vld [vmem:[#allocation13 + $0x98] sm:$0xff] }
 0x751   :  { %2900 = vpow2.f32 %v2620_v22  ;;  %v2059_v22 = vld [vmem:[#allocation13 + $0x88] sm:$0xff] }
 0x752   :  { %2902 = vtanh.f32 %v1821_v34  ;;  %v2060_v34 = vld [vmem:[#allocation13 + $0x90] sm:$0xff] }
 0x753   :  { %2904 = vpow2.f32 %v2621_v35  ;;  %v2054_v35 = vld [vmem:[#allocation13 + $0x60] sm:$0xff] }
 0x75c   :  { %v2899_v36 = vpop.eup %2898 }
 0x75d   :  { %v1826_v37 = vadd.f32 1.0, %v2899_v36  ;;  %v2057_v36 = vld [vmem:[#allocation13 + $0x78] sm:$0xff] }
 0x75e   :  { %v2901_v39 = vpop.eup %2900 }
 0x75f   :  { %2906 = vrcp.f32 %v1826_v37  ;;  %v1832_v40 = vadd.f32 1.0, %v2901_v39  ;;  %v2903_v41 = vpop.eup %2902  ;;  %v2051_v37 = vld [vmem:[#allocation13 + $0x48] sm:$0xff]  ;;  %v2056_v39 = vld [vmem:[#allocation13 + $0x70] sm:$0xff] }
 0x760   :  { %v2905_v42 = vpop.eup %2904 }
 0x761   :  { %2908 = vrcp.f32 %v1832_v40  ;;  %v1839_v46 = vadd.f32 1.0, %v2905_v42  ;;  %v2050_v40 = vld [vmem:[#allocation13 + $0x40] sm:$0xff]  ;;  %v2047_v42 = vld [vmem:[#allocation13 + $0x28] sm:$0xff] }
 0x763   :  { %2910 = vrcp.f32 %v1839_v46  ;;  %v2043_v46 = vld [vmem:[#allocation13 + $0x8] sm:$0xff] }
 0x76c   :  { %v2907_v43 = vpop.eup %2906 }
 0x76d   :  { %v1843_v44 = vmul.f32 %v2907_v43, %v2903_v41  ;;  %v2053_v41 = vld [vmem:[#allocation13 + $0x58] sm:$0xff]  ;;  %v2052_v43 = vld [vmem:[#allocation13 + $0x50] sm:$0xff] }
 0x76e   :  { %v2909_v45 = vpop.eup %2908 }
 0x76f   :  { %v1842_v2 = vmul.f32 %v2909_v45, %v4206_v49  ;;  %v2091_v49 = vld [vmem:[#allocation13 + $0x188] sm:$0xff]  ;;  %v2049_v45 = vld [vmem:[#allocation13 + $0x38] sm:$0xff] }
 0x770   :  { %v2911_v10 = vpop.eup %2910 }
 0x771   :  { %v4278_v26 = vadd.f32 %v1843_v44, %v1842_v2  ;;  %v2046_v44 = vld [vmem:[#allocation13 + $0x20] sm:$0xff]  ;;  %v2048_v2 = vld [vmem:[#allocation13 + $0x30] sm:$0xff] }
 0x773   :  { %2912 = vtanh.f32 %v4278_v26 }
 0x780   :  { %v2913_v23 = vpop.eup %2912 }
 0x781   :  { %v1846_v50 = vmul.f32 %v2913_v23, %v2911_v10  ;;  %v2042_v10 = vld [vmem:[#allocation13] sm:$0xff]  ;;  %v2045_v23 = vld [vmem:[#allocation13 + $0x18] sm:$0xff] }
 0x783   :  { %1925 = vmatmul.mubr.f32.vlgmr.msra.gmra.mxu0 %v1846_v50  ;;  %1996 = vmatmul.mubr.f32.vlgmr.msra.gmra.mxu1 %v1846_v50  ;;  %v2041_v50 = vld [vmem:[#allocation5 + $0x38] sm:$0xff] }
 0x784   :  { %2129 = vmatpush1.msra.mxu0 %v2102_v9  ;;  %2200 = vmatpush1.msra.mxu1 %v2104_v5  ;;  %v2044_v9 = vld [vmem:[#allocation13 + $0x10] sm:$0xff]  ;;  %v2309_v5 = vld [vmem:[#allocation14 + $0x78] sm:$0xff] }
 0x785   :  { %2130 = vmatprep.subr.mxu0 %v2099_v6  ;;  %2201 = vmatprep.subr.mxu1 %v2101_v12  ;;  %v2308_v6 = vld [vmem:[#allocation14 + $0x70] sm:$0xff]  ;;  %v2307_v12 = vld [vmem:[#allocation14 + $0x68] sm:$0xff] }
 0x786   :  { %2131 = vmatpush1.msra.mxu0 %v2098_v13  ;;  %2202 = vmatpush1.msra.mxu1 %v2100_v8  ;;  %v2306_v13 = vld [vmem:[#allocation14 + $0x60] sm:$0xff]  ;;  %v2305_v8 = vld [vmem:[#allocation14 + $0x58] sm:$0xff] }
 0x787   :  { %2132 = vmatprep.subr.mxu0 %v2095_v53  ;;  %2203 = vmatprep.subr.mxu1 %v2097_v7  ;;  %v2304_v53 = vld [vmem:[#allocation14 + $0x50] sm:$0xff]  ;;  %v2303_v7 = vld [vmem:[#allocation14 + $0x48] sm:$0xff] }
 0x788   :  { %2133 = vmatpush1.msra.mxu0 %v2094_v54  ;;  %2204 = vmatpush1.msra.mxu1 %v2096_v25  ;;  %v2302_v54 = vld [vmem:[#allocation14 + $0x40] sm:$0xff]  ;;  %v2301_v25 = vld [vmem:[#allocation14 + $0x38] sm:$0xff] }
 0x789   :  { %2134 = vmatprep.subr.mxu0 %v2091_v49  ;;  %2205 = vmatprep.subr.mxu1 %v2093_v48  ;;  %v2300_v49 = vld [vmem:[#allocation14 + $0x30] sm:$0xff]  ;;  %v2299_v48 = vld [vmem:[#allocation14 + $0x28] sm:$0xff] }
 0x78a   :  { %2135 = vmatpush1.msra.mxu0 %v2090_v62  ;;  %2206 = vmatpush1.msra.mxu1 %v2092_v14  ;;  %v2298_v62 = vld [vmem:[#allocation14 + $0x20] sm:$0xff]  ;;  %v2297_v14 = vld [vmem:[#allocation14 + $0x18] sm:$0xff] }
 0x78b   :  { %2136 = vmatprep.subr.mxu0 %v2087_v47  ;;  %2207 = vmatprep.subr.mxu1 %v2089_v29  ;;  %v2296_v47 = vld [vmem:[#allocation14 + $0x10] sm:$0xff]  ;;  %v2295_v29 = vld [vmem:[#allocation14 + $0x8] sm:$0xff] }
 0x78c   :  { %2137 = vmatpush1.msra.mxu0 %v2086_v0  ;;  %2208 = vmatpush1.msra.mxu1 %v2088_v20  ;;  %v2294_v0 = vld [vmem:[#allocation14] sm:$0xff]  ;;  %v2325_v20 = vld [vmem:[#allocation16 + $0x78] sm:$0xff] }
 0x78d   :  { %2138 = vmatprep.subr.mxu0 %v2083_v59  ;;  %2209 = vmatprep.subr.mxu1 %v2085_v57  ;;  %v2324_v59 = vld [vmem:[#allocation16 + $0x70] sm:$0xff]  ;;  %v2323_v57 = vld [vmem:[#allocation16 + $0x68] sm:$0xff] }
 0x78e   :  { %2139 = vmatpush1.msra.mxu0 %v2082_v56  ;;  %2210 = vmatpush1.msra.mxu1 %v2084_v55  ;;  %v2322_v56 = vld [vmem:[#allocation16 + $0x60] sm:$0xff]  ;;  %v2321_v55 = vld [vmem:[#allocation16 + $0x58] sm:$0xff] }
 0x78f   :  { %2140 = vmatprep.subr.mxu0 %v2079_v60  ;;  %2211 = vmatprep.subr.mxu1 %v2081_v61  ;;  %v2320_v60 = vld [vmem:[#allocation16 + $0x50] sm:$0xff]  ;;  %v2319_v61 = vld [vmem:[#allocation16 + $0x48] sm:$0xff] }
 0x790   :  { %2141 = vmatpush1.msra.mxu0 %v2078_v1  ;;  %2212 = vmatpush1.msra.mxu1 %v2080_v58  ;;  %v2318_v1 = vld [vmem:[#allocation16 + $0x40] sm:$0xff]  ;;  %v2317_v58 = vld [vmem:[#allocation16 + $0x38] sm:$0xff] }
 0x791   :  { %2142 = vmatprep.subr.mxu0 %v2075_v38  ;;  %2192 = vmatprep.mubr.f32.mxu0 %v4643_v28  ;;  %v2316_v38 = vld [vmem:[#allocation16 + $0x30] sm:$0xff] }
 0x792   :  { %2143 = vmatpush1.msra.mxu0 %v2074_v52  ;;  %2213 = vmatprep.subr.mxu1 %v2077_v51  ;;  %v2315_v52 = vld [vmem:[#allocation16 + $0x28] sm:$0xff]  ;;  %v2314_v51 = vld [vmem:[#allocation16 + $0x20] sm:$0xff] }
 0x793   :  { %2144 = vmatprep.subr.mxu0 %v2071_v27  ;;  %2214 = vmatpush1.msra.mxu1 %v2076_v30  ;;  %v2313_v27 = vld [vmem:[#allocation16 + $0x18] sm:$0xff]  ;;  %v2312_v30 = vld [vmem:[#allocation16 + $0x10] sm:$0xff] }
 0x794   :  { %2145 = vmatpush1.msra.mxu0 %v2070_v31  ;;  %2215 = vmatprep.subr.mxu1 %v2073_v11  ;;  %v2311_v31 = vld [vmem:[#allocation16 + $0x8] sm:$0xff]  ;;  %v2310_v11 = vld [vmem:[#allocation16] sm:$0xff] }
 0x795   :  { %2146 = vmatprep.subr.mxu0 %v2067_v63  ;;  %2216 = vmatpush1.msra.mxu1 %v2072_v4  ;;  %v4649_v4 = vld [vmem:[#allocation73_spill] sm:$0xff] }
 0x796   :  { %2147 = vmatpush1.msra.mxu0 %v2066_v15  ;;  %2217 = vmatprep.subr.mxu1 %v2069_v16 }
 0x797   :  { %2148 = vmatprep.subr.mxu0 %v2063_v17  ;;  %2218 = vmatpush1.msra.mxu1 %v2068_v18  ;;  %v4650_v18 = vld [vmem:[#allocation75_spill] sm:$0xff] }
 0x798   :  { %2149 = vmatpush1.msra.mxu0 %v2062_v19  ;;  %2219 = vmatprep.subr.mxu1 %v2065_v21 }
 0x799   :  { %2150 = vmatprep.subr.mxu0 %v2059_v22  ;;  %2220 = vmatpush1.msra.mxu1 %v2064_v24 }
 0x79a   :  { %2151 = vmatpush1.msra.mxu0 %v2058_v3  ;;  %2221 = vmatprep.subr.mxu1 %v2061_v32  ;;  %v4651_v3 = vld [vmem:[#allocation76_spill] sm:$0xff] }
 0x79b   :  { %2152 = vmatprep.subr.mxu0 %v2055_v33  ;;  %2222 = vmatpush1.msra.mxu1 %v2060_v34  ;;  %v4652_v33 = vld [vmem:[#allocation74_spill] sm:$0xff] }
 0x79c   :  { %2153 = vmatpush1.msra.mxu0 %v2054_v35  ;;  %2223 = vmatprep.subr.mxu1 %v2057_v36 }
 0x79d   :  { %2154 = vmatprep.subr.mxu0 %v2051_v37  ;;  %2224 = vmatpush1.msra.mxu1 %v2056_v39 }
 0x79e   :  { %2155 = vmatpush1.msra.mxu0 %v2050_v40  ;;  %2225 = vmatprep.subr.mxu1 %v2053_v41  ;;  %v2106_v41 = vld [vmem:[%s4367_s5] sm:$0xf] }
 0x79f   :  { %2156 = vmatprep.subr.mxu0 %v2047_v42  ;;  %2226 = vmatpush1.msra.mxu1 %v2052_v43  ;;  %v4653_v42 = vld [vmem:[#allocation49_spill] sm:$0xff] }
 0x7a0   :  { %2157 = vmatpush1.msra.mxu0 %v2046_v44  ;;  %2227 = vmatprep.subr.mxu1 %v2049_v45  ;;  %v4654_v43 = vsub.s32 0, %v4653_v42  ;;  %v4655_v45 = vsub.s32 1, %v4653_v42 }
 0x7a1   :  { %2158 = vmatprep.subr.mxu0 %v2043_v46  ;;  %2228 = vmatpush1.msra.mxu1 %v2048_v2 }
 0x7a2   :  { %2159 = vmatpush1.msra.mxu0 %v2042_v10  ;;  %2229 = vmatprep.subr.mxu1 %v2045_v23  ;;  %v2111_v44 = vrot.slane %v2106_v41, %v4654_v43  ;;  %v2115_v46 = vrot.slane %v2106_v41, %v4655_v45 }
 0x7a3   :  { %2193 = vmatmul.mubr.f32.vlgmr.msra.gmra.mxu0 %v2041_v50  ;;  %2230 = vmatpush1.msra.mxu1 %v2044_v9 }
 0x7a4   :  { %2263 = vmatprep.mubr.f32.mxu1 %v4643_v28  ;;  %2717 = vmatprep.subr.mxu1 %v4643_v28 }
 0x7a5   :  { %2264 = vmatmul.mubr.f32.vlgmr.msra.gmra.mxu1 %v2041_v50  ;;  %2682 = vmatprep.subr.mxu0 %v4643_v28 }
 0x7a6   :  { %2718 = vmatpush3.msra.mxu1 %v2309_v5  ;;  %2749 = vmatprep.mubr.msk.f32.mxu1 %vm3219_vm0, %v4643_v28 }
 0x7a7   :  { %2719 = vmatprep.subr.mxu1 %v4643_v28  ;;  %2683 = vmatpush3.msra.mxu0 %v2325_v20 }
 0x7a8   :  { %2720 = vmatpush3.msra.mxu1 %v2308_v6  ;;  %2714 = vmatprep.mubr.msk.f32.mxu0 %vm3219_vm0, %v4643_v28 }
 0x7a9   :  { %2721 = vmatprep.subr.mxu1 %v4643_v28  ;;  %2684 = vmatprep.subr.mxu0 %v4643_v28 }
 0x7aa   :  { %2722 = vmatpush3.msra.mxu1 %v2307_v12  ;;  %2685 = vmatpush3.msra.mxu0 %v2324_v59 }
 0x7ab   :  { %2723 = vmatprep.subr.mxu1 %v4643_v28  ;;  %2686 = vmatprep.subr.mxu0 %v4643_v28 }
 0x7ac   :  { %2724 = vmatpush3.msra.mxu1 %v2306_v13  ;;  %2687 = vmatpush3.msra.mxu0 %v2323_v57 }
 0x7ad   :  { %2725 = vmatprep.subr.mxu1 %v4643_v28  ;;  %2688 = vmatprep.subr.mxu0 %v4643_v28 }
 0x7ae   :  { %2726 = vmatpush3.msra.mxu1 %v2305_v8  ;;  %2689 = vmatpush3.msra.mxu0 %v2322_v56 }
 0x7af   :  { %2727 = vmatprep.subr.mxu1 %v4643_v28  ;;  %2690 = vmatprep.subr.mxu0 %v4643_v28 }
 0x7b0   :  { %2728 = vmatpush3.msra.mxu1 %v2304_v53  ;;  %2691 = vmatpush3.msra.mxu0 %v2321_v55 }
 0x7b1   :  { %2729 = vmatprep.subr.mxu1 %v4643_v28  ;;  %2692 = vmatprep.subr.mxu0 %v4643_v28 }
 0x7b2   :  { %2730 = vmatpush3.msra.mxu1 %v2303_v7  ;;  %2693 = vmatpush3.msra.mxu0 %v2320_v60 }
 0x7b3   :  { %2731 = vmatprep.subr.mxu1 %v4643_v28  ;;  %2694 = vmatprep.subr.mxu0 %v4643_v28 }
 0x7b4   :  { %2732 = vmatpush3.msra.mxu1 %v2302_v54  ;;  %2695 = vmatpush3.msra.mxu0 %v2319_v61 }
 0x7b5   :  { %2733 = vmatprep.subr.mxu1 %v4643_v28  ;;  %2696 = vmatprep.subr.mxu0 %v4643_v28 }
 0x7b6   :  { %2734 = vmatpush3.msra.mxu1 %v2301_v25  ;;  %2697 = vmatpush3.msra.mxu0 %v2318_v1 }
 0x7b7   :  { %2735 = vmatprep.subr.mxu1 %v4643_v28  ;;  %2698 = vmatprep.subr.mxu0 %v4643_v28 }
 0x7b8   :  { %2736 = vmatpush3.msra.mxu1 %v2300_v49  ;;  %2699 = vmatpush3.msra.mxu0 %v2317_v58 }
 0x7b9   :  { %2737 = vmatprep.subr.mxu1 %v4643_v28  ;;  %2700 = vmatprep.subr.mxu0 %v4643_v28 }
 0x7ba   :  { %2738 = vmatpush3.msra.mxu1 %v2299_v48  ;;  %2701 = vmatpush3.msra.mxu0 %v2316_v38  ;;  %v4656_v48 = vsub.s32 3, %v4653_v42 }
 0x7bb   :  { %2739 = vmatprep.subr.mxu1 %v4643_v28  ;;  %2702 = vmatprep.subr.mxu0 %v4643_v28 }
 0x7bc   :  { %2740 = vmatpush3.msra.mxu1 %v2298_v62  ;;  %2703 = vmatpush3.msra.mxu0 %v2315_v52  ;;  %v2123_v62 = vrot.slane %v2106_v41, %v4656_v48 }
 0x7bd   :  { %2741 = vmatprep.subr.mxu1 %v4643_v28  ;;  %2704 = vmatprep.subr.mxu0 %v4643_v28 }
 0x7be   :  { %2742 = vmatpush3.msra.mxu1 %v2297_v14  ;;  %2705 = vmatpush3.msra.mxu0 %v2314_v51 }
 0x7bf   :  { %2743 = vmatprep.subr.mxu1 %v4643_v28  ;;  %2706 = vmatprep.subr.mxu0 %v4643_v28 }
 0x7c0   :  { %2744 = vmatpush3.msra.mxu1 %v2296_v47  ;;  %2707 = vmatpush3.msra.mxu0 %v2313_v27  ;;  %v4657_v47 = vsub.s32 2, %v4653_v42 }
 0x7c1   :  { %2745 = vmatprep.subr.mxu1 %v4643_v28  ;;  %2708 = vmatprep.subr.mxu0 %v4643_v28 }
 0x7c2   :  { %2746 = vmatpush3.msra.mxu1 %v2295_v29  ;;  %2709 = vmatpush3.msra.mxu0 %v2312_v30  ;;  %v2119_v29 = vrot.slane %v2106_v41, %v4657_v47 }
 0x7c3   :  { %2747 = vmatprep.subr.mxu1 %v4643_v28  ;;  %2710 = vmatprep.subr.mxu0 %v4643_v28 }
 0x7c4   :  { %2748 = vmatpush3.msra.mxu1 %v2294_v0  ;;  %2711 = vmatpush3.msra.mxu0 %v2311_v31 }
 0x7c5   :  { %2712 = vmatprep.subr.mxu0 %v4643_v28 }
 0x7c6   :  { %2713 = vmatpush3.msra.mxu0 %v2310_v11 }
 0x7c7   :  { %2752 = vmatprep.subr.mxu0 %v4643_v28 }
 0x843   :  { %v1926_v63 = vpop.f32.mrf.mxu0  ;;  %v1997_v21 = vpop.f32.mrf.mxu1 }
 0x844   :  { %v2002_v15 = vadd.f32 %v1926_v63, %v4649_v4  ;;  %v2004_v34 = vadd.f32 %v1997_v21, %v4652_v33  ;;  %v2486_v21 = vld [vmem:[#allocation17 + $0x58] sm:$0xff]  ;;  %v2481_v33 = vld [vmem:[#allocation17 + $0x30] sm:$0xff] }
 0x845   :  { %v1928_v16 = vpop.f32.mrf.mxu0  ;;  %v1999_v24 = vpop.f32.mrf.mxu1 }
 0x846   :  { %v2622_v17 = vmul.f32 -1.442695, %v2002_v15  ;;  %v2003_v19 = vadd.f32 %v1928_v16, %v4650_v18  ;;  %v2005_v32 = vadd.f32 %v1999_v24, %v4651_v3  ;;  %v2490_v16 = vld [vmem:[#allocation17 + $0x78] sm:$0xff]  ;;  %v2488_v18 = vld [vmem:[#allocation17 + $0x68] sm:$0xff]  ;;  %v2483_v3 = vld [vmem:[#allocation17 + $0x40] sm:$0xff] }
 0x847   :  { %v2484_v24 = vld [vmem:[#allocation17 + $0x48] sm:$0xff] }
 0x848   :  { %2914 = vpow2.f32 %v2622_v17  ;;  %v2623_v22 = vmul.f32 -1.442695, %v2003_v19  ;;  %v2624_v35 = vmul.f32 -1.442695, %v2005_v32  ;;  %v2489_v17 = vld [vmem:[#allocation17 + $0x70] sm:$0xff]  ;;  %v2487_v19 = vld [vmem:[#allocation17 + $0x60] sm:$0xff] }
 0x849   :  { %v2482_v32 = vld [vmem:[#allocation17 + $0x38] sm:$0xff] }
 0x84a   :  { %2916 = vpow2.f32 %v2623_v22  ;;  %v2485_v22 = vld [vmem:[#allocation17 + $0x50] sm:$0xff] }
 0x84b   :  { %2918 = vtanh.f32 %v2004_v34  ;;  %v2480_v34 = vld [vmem:[#allocation17 + $0x28] sm:$0xff] }
 0x84c   :  { %2920 = vpow2.f32 %v2624_v35  ;;  %v2479_v35 = vld [vmem:[#allocation17 + $0x20] sm:$0xff] }
 0x855   :  { %v2915_v36 = vpop.eup %2914 }
 0x856   :  { %v2009_v37 = vadd.f32 1.0, %v2915_v36  ;;  %v2478_v36 = vld [vmem:[#allocation17 + $0x18] sm:$0xff] }
 0x857   :  { %v2917_v39 = vpop.eup %2916 }
 0x858   :  { %2922 = vrcp.f32 %v2009_v37  ;;  %v2015_v40 = vadd.f32 1.0, %v2917_v39  ;;  %v2919_v2 = vpop.eup %2918  ;;  %v2477_v37 = vld [vmem:[#allocation17 + $0x10] sm:$0xff]  ;;  %v2476_v39 = vld [vmem:[#allocation17 + $0x8] sm:$0xff] }
 0x859   :  { %v2921_v23 = vpop.eup %2920 }
 0x85a   :  { %2924 = vrcp.f32 %v2015_v40  ;;  %v2022_v7 = vadd.f32 1.0, %v2921_v23  ;;  %v2475_v40 = vld [vmem:[#allocation17] sm:$0xff]  ;;  %v2629_v23 = vld [vmem:[%s4372_s10] ss:$0 sm:$0xff] }
 0x863   :  { %v2194_v10 = vpop.f32.mrf.mxu0 }
 0x864   :  { %v2195_v50 = vadd.f32 %v2194_v10, %v2111_v44  ;;  %v2628_v44 = vld [vmem:[%s4370_s8] ss:$0 sm:$0xff]  ;;  %s3174_s8 = scalar_lea.vmem %s2582_s19, 128 }
 0x865   :  { %v2923_v9 = vpop.eup %2922  ;;  %v2196_v5 = vpop.f32.mrf.mxu0  ;;  %p3175_p12 = scmp.ne.s32.totalorder %s2582_s19, %s3174_s8  ;;  %p3180_p0 = scmp.lt.s32.totalorder %s3174_s8, %s3174_s8 }
 0x866   :  { %v2026_v6 = vmul.f32 %v2923_v9, %v2919_v2  ;;  %v2625_v12 = vmul.f32 -1.442695, %v2195_v50  ;;  %v2197_v13 = vadd.f32 %v2196_v5, %v2115_v46  ;;  %v2265_v25 = vpop.f32.mrf.mxu1 }
 0x867   :  { %v2925_v8 = vpop.eup %2924  ;;  %v2266_v20 = vadd.f32 %v2265_v25, %v2119_v29  ;;  %p3181_p1 = por %p3180_p0, %p3179_p13 }
 0x868   :  { %v2025_v53 = vmul.f32 %v2925_v8, %v4278_v26  ;;  %2926 = vpow2.f32 %v2625_v12  ;;  %v2626_v54 = vmul.f32 -1.442695, %v2197_v13  ;;  %v2267_v14 = vpop.f32.mrf.mxu1 }
 0x869   :  { %v2268_v0 = vadd.f32 %v2267_v14, %v2123_v62  ;;  %p3182_p2 = pnand %p3181_p1, %p3175_p12 }
 0x86a   :  { %v2027_v49 = vadd.f32 %v2026_v6, %v2025_v53  ;;  %2928 = vpow2.f32 %v2626_v54 }
 0x86b   :  { %2930 = vrcp.f32 %v2022_v7  ;;  %v2627_v59 = vmul.f32 -1.442695, %v2268_v0 }
 0x86c   :  { %2932 = vtanh.f32 %v2027_v49 }
 0x86d   :  { %2934 = vtanh.f32 %v2266_v20 }
 0x86e   :  { %2936 = vpow2.f32 %v2627_v59 }
 0x875   :  { %v2927_v57 = vpop.eup %2926 }
 0x876   :  { %v2273_v26 = vadd.f32 1.0, %v2927_v57 }
 0x877   :  { %v2929_v56 = vpop.eup %2928 }
 0x878   :  { %2938 = vrcp.f32 %v2273_v26  ;;  %v2279_v55 = vadd.f32 1.0, %v2929_v56  ;;  %v2931_v60 = vpop.eup %2930 }
 0x879   :  { %v2933_v61 = vpop.eup %2932 }
 0x87a   :  { %2940 = vrcp.f32 %v2279_v55  ;;  %v2029_v1 = vmul.f32 %v2933_v61, %v2931_v60  ;;  %v2935_v58 = vpop.eup %2934 }
 0x87b   :  { %v2937_v38 = vpop.eup %2936 }
 0x87c   :  { %2750 = vmatmul.mubr.f32.vlgmr.msra.gmra.mxu1 %v2029_v1  ;;  %v2286_v27 = vadd.f32 1.0, %v2937_v38 }
 0x87e   :  { %2942 = vrcp.f32 %v2286_v27 }
 0x885   :  { %v2939_v52 = vpop.eup %2938 }
 0x886   :  { %v2290_v31 = vmul.f32 %v2939_v52, %v2935_v58 }
 0x887   :  { %v2941_v51 = vpop.eup %2940 }
 0x888   :  { %v2289_v30 = vmul.f32 0.0, %v2941_v51 }
 0x88a   :  { %v2291_v11 = vadd.f32 %v2290_v31, %v2289_v30 }
 0x88b   :  { %v2943_v63 = vpop.eup %2942 }
 0x88c   :  { %2944 = vtanh.f32 %v2291_v11 }
 0x899   :  { %v2945_v4 = vpop.eup %2944 }
 0x89a   :  { %v2293_v15 = vmul.f32 %v2945_v4, %v2943_v63 }
 0x89c   :  { %2715 = vmatmul.mubr.f32.vlgmr.msra.gmra.mxu0 %v2293_v15 }
 0x89d   :  { %2784 = vmatprep.mubr.msk.f32.mxu0 %vm3219_vm0, %v4643_v28  ;;  %2753 = vmatpush3.msra.mxu0 %v2490_v16 }
 0x89e   :  { %2754 = vmatprep.subr.mxu0 %v4643_v28 }
 0x89f   :  { %2755 = vmatpush3.msra.mxu0 %v2489_v17 }
 0x8a0   :  { %2756 = vmatprep.subr.mxu0 %v4643_v28 }
 0x8a1   :  { %2757 = vmatpush3.msra.mxu0 %v2488_v18 }
 0x8a2   :  { %2758 = vmatprep.subr.mxu0 %v4643_v28 }
 0x8a3   :  { %2759 = vmatpush3.msra.mxu0 %v2487_v19 }
 0x8a4   :  { %2760 = vmatprep.subr.mxu0 %v4643_v28 }
 0x8a5   :  { %2761 = vmatpush3.msra.mxu0 %v2486_v21 }
 0x8a6   :  { %2762 = vmatprep.subr.mxu0 %v4643_v28 }
 0x8a7   :  { %2763 = vmatpush3.msra.mxu0 %v2485_v22 }
 0x8a8   :  { %2764 = vmatprep.subr.mxu0 %v4643_v28 }
 0x8a9   :  { %2765 = vmatpush3.msra.mxu0 %v2484_v24 }
 0x8aa   :  { %2766 = vmatprep.subr.mxu0 %v4643_v28 }
 0x8ab   :  { %2767 = vmatpush3.msra.mxu0 %v2483_v3 }
 0x8ac   :  { %2768 = vmatprep.subr.mxu0 %v4643_v28 }
 0x8ad   :  { %2769 = vmatpush3.msra.mxu0 %v2482_v32 }
 0x8ae   :  { %2770 = vmatprep.subr.mxu0 %v4643_v28 }
 0x8af   :  { %2771 = vmatpush3.msra.mxu0 %v2481_v33 }
 0x8b0   :  { %2772 = vmatprep.subr.mxu0 %v4643_v28 }
 0x8b1   :  { %2773 = vmatpush3.msra.mxu0 %v2480_v34 }
 0x8b2   :  { %2774 = vmatprep.subr.mxu0 %v4643_v28 }
 0x8b3   :  { %2775 = vmatpush3.msra.mxu0 %v2479_v35 }
 0x8b4   :  { %2776 = vmatprep.subr.mxu0 %v4643_v28 }
 0x8b5   :  { %2777 = vmatpush3.msra.mxu0 %v2478_v36 }
 0x8b6   :  { %2778 = vmatprep.subr.mxu0 %v4643_v28 }
 0x8b7   :  { %2779 = vmatpush3.msra.mxu0 %v2477_v37 }
 0x8b8   :  { %2780 = vmatprep.subr.mxu0 %v4643_v28 }
 0x8b9   :  { %2781 = vmatpush3.msra.mxu0 %v2476_v39 }
 0x8ba   :  { %2782 = vmatprep.subr.mxu0 %v4643_v28 }
 0x8bb   :  { %2783 = vmatpush3.msra.mxu0 %v2475_v40 }
 0x93c   :  { %v2462_v41 = vpop.f32.mrf.mxu1 }
 0x93e   :  { %v2751_v42 = vpop.f32.mrf.mxu1 }
 0x95c   :  { %v2392_v43 = vpop.f32.mrf.mxu0 }
 0x95d   :  { %v2463_v45 = vadd.f32 %v2462_v41, %v2392_v43 }
 0x95e   :  { %v2716_v46 = vpop.f32.mrf.mxu0 }
 0x95f   :  { %v2473_v2 = vadd.f32 %v2628_v44, %v2463_v45 }
 0x961   :  { %v2474_v10 = vmax.f32 %v2473_v2, 0.0 }
 0x963   :  { %2785 = vmatmul.mubr.f32.vlgmr.msra.gmra.mxu0 %v2474_v10 }
 0xa23   :  { %v2564_v50 = vpop.f32.mrf.mxu0 }
 0xa24   :  { %v2565_v28 = vadd.f32 %v2629_v23, %v2564_v50 }
 0xa25   :  { %v2786_v9 = vpop.f32.mrf.mxu0 }
 0xa26   :  { %v2630_v5 = vmul.f32 -1.442695, %v2565_v28 }
 0xa28   :  { %2946 = vpow2.f32 %v2630_v5 }
 0xa35   :  { %v2947_v6 = vpop.eup %2946 }
 0xa36   :  { %v2571_v12 = vadd.f32 1.0, %v2947_v6 }
 0xa38   :  { %2948 = vrcp.f32 %v2571_v12 }
 0xa45   :  { %v2949_v13 = vpop.eup %2948 }
 0xa46   :  { %2574 = vst [vmem:[#allocation19] sm:$0xff] %v2949_v13 }
 0xa47   :  { %3185 = shalt.err (!%p3182_p2)
}
 0xa48   :  { %2584 = dma.vmem_to_hbm [thread:$0]  %s2582_s19, 128, %s4373_s11, [#allocation7]  }
 0xa49   :  { %3204 = dma.done.wait [#allocation7], 128  }
 0xa4a   :  { %3205 = vsyncadd [#allocation7], 4294967168 }
 0xa4b   :  { %2588 = vsyncpa [#allocation6], 1 }
 0xa4c   :  { %2589 = vsyncpa [#allocation9], 1 }
 0xa4d   :  { %2590 = vsyncpa [#allocation12], 1 }
 0xa4e   :  { %2591 = vsyncpa [#allocation15], 1 }
 0xa4f   :  { %2592 = vsyncpa [#allocation18], 1 }
 0xa50   :  { %2593 = vsyncpa [#allocation7], 1 }

</bundles_post_ra>
